<compile_context>
chip_gen: v7x
topology: tpu7x:2x2x1
jax: 0.10.0
libtpu: 0.0.40
codegen_flags: <defaults>
</compile_context>

<pallas_src>
import functools

import jax
import jax.numpy as jnp
from jax.experimental import pallas as pl
from jax.experimental.pallas import tpu as pltpu

_LANES = 128


def _round_up(x, m):
    return ((x + m - 1) // m) * m


def _vmem_limit_bytes():
    """~3/4 of physical VMEM (48 MiB on v7x, 96 MiB on v5e/v6e), capped at 100 MiB."""
    cap = None
    try:
        cap = getattr(pltpu.get_tpu_info(), "vmem_capacity_bytes", None)
    except Exception:
        cap = None
    if not cap:
        cap = 64 * 1024 * 1024
    return int(min(cap * 3 // 4, 100 * 1024 * 1024))


# ---------- fused (depthwise3x3 folded into 9 pointwise taps) + BN-partials kernel ----------

def _fused_dw_pw_stats_kernel(*refs, tap_plan, th, wo, ho, mask_rows):
    """refs = (x_band_refs..., wdw_ref, wpw_ref, y_ref, stats_ref, acc_ref)

      x band refs : (BH, Wsrc, Cp_in)  bf16   one per space-to-depth phase (1 or 4)
      wdw_ref     : (Cp_in, 9)         f32    depthwise taps, column k = tap (kh, kw)
      wpw_ref     : (Cp_in, Cp_out)    f32    pointwise (1x1) weights
      y_ref       : (M, Cp_out)        bf16   pre-BN output tile, M = th * wo
      stats_ref   : (1, 2*Cp_out)      f32    lane-dense [sum || sumsq] partials
      acc_ref     : (M, Cp_out)        f32    VMEM scratch accumulator
    """
    n_x = len(refs) - 5
    x_refs = refs[:n_x]
    wdw_ref, wpw_ref, y_ref, stats_ref, acc_ref = refs[n_x:]

    m = th * wo
    wdw = wdw_ref[...]                      # (Cp_in, 9)  f32, loaded once per grid step
    wpw = wpw_ref[...]                      # (Cp_in, Cp_out) f32, loaded once per grid step

    for k, (src, r0, c0) in enumerate(tap_plan):
        # Static, unit-stride slice of the band (already bf16 -> MXU operand A).
        patch = x_refs[src][r0:r0 + th, c0:c0 + wo, :]
        a = patch.reshape(m, patch.shape[-1])
        # Fold tap k into the pointwise weights: W_k[ci, co] = dw_k[ci] * pw[ci, co].
        wk = (wpw * wdw[:, k:k + 1]).astype(jnp.bfloat16)
        part = jnp.dot(a, wk, preferred_element_type=jnp.float32)
        if k == 0:
            acc_ref[...] = part
        else:
            acc_ref[...] += part

    acc = acc_ref[...]
    if mask_rows:
        # Output rows were padded up to a multiple of th: zero them so the BN partial
        # statistics only contain real rows (the wrapper divides by the real row count).
        t = pl.program_id(1)
        valid = jnp.clip(ho - t * th, 0, th) * wo
        row = jax.lax.broadcasted_iota(jnp.int32, (m, 1), 0)
        acc = jnp.where(row < valid, acc, 0.0)

    y_ref[...] = acc.astype(y_ref.dtype)
    stats_ref[...] = jnp.concatenate(
        [jnp.sum(acc, axis=0, keepdims=True),
         jnp.sum(acc * acc, axis=0, keepdims=True)], axis=-1)


# ----------------------------------- BN apply + ReLU kernel -----------------------------------

def _bn_relu_kernel(y_ref, scale_ref, shift_ref, o_ref):
    y = y_ref[...].astype(jnp.float32)
    o_ref[...] = jnp.maximum(y * scale_ref[...] + shift_ref[...], 0.0).astype(o_ref.dtype)


# ------------------------------------- one SepConv half-block -------------------------------------

def _sepconv_block(x, w_dw, w_pw, gamma, beta, *, stride, c_out, eps, out_dtype, m_target):
    """dw3x3(stride, pad=1) -> 1x1 -> BN(train stats) -> ReLU.

    x: (N, H, W, Cp_in) bf16 NHWC with channels zero-padded to a multiple of 128.
    Returns (N, Ho, Wo, Cp_out) in out_dtype; padded channels stay exactly zero.
    """
    N, H, W, Cp_in = x.shape
    c_in = w_dw.shape[0]
    KH = KW = 3
    pad = 1
    assert stride in (1, 2)
    Ho = (H + 2 * pad - KH) // stride + 1
    Wo = (W + 2 * pad - KW) // stride + 1
    Cp_out = _round_up(c_out, _LANES)

    # --- hardened tile selection: TH multiple of 8, output rows padded to T*TH ---
    rows_target = max(1, m_target // max(Wo, 1))
    TH = _round_up(min(rows_target, max(Ho, 1)), 8)
    Ho_pad = _round_up(Ho, TH)
    T = Ho_pad // TH
    M = TH * Wo
    mask_rows = Ho_pad != Ho

    # --- weights, channel-padded (zeros keep padded lanes zero end-to-end) ---
    wdw = w_dw[:, 0].reshape(c_in, KH * KW).astype(jnp.float32)
    wdw = jnp.pad(wdw, ((0, Cp_in - c_in), (0, 0)))
    wpw = jnp.transpose(w_pw[:, :, 0, 0], (1, 0)).astype(jnp.float32)    # (c_in, c_out)
    wpw = jnp.pad(wpw, ((0, Cp_in - c_in), (0, Cp_out - c_out)))

    # --- halo pad (+ space-to-depth for stride 2) and overlapping row-band split ---
    if stride == 2:
        Hp = _round_up(H + 2 * pad, 2)
        Wp = _round_up(W + 2 * pad, 2)
        xp = jnp.pad(x, ((0, 0), (pad, Hp - H - pad), (pad, Wp - W - pad), (0, 0)))
        srcs = [xp[:, p::2, q::2, :] for p in (0, 1) for q in (0, 1)]     # 4 phases
        BH = TH + 1
        tap_plan = tuple(((kh % 2) * 2 + (kw % 2), kh // 2, kw // 2)
                         for kh in range(KH) for kw in range(KW))
    else:
        xp = jnp.pad(x, ((0, 0), (pad, pad), (pad, pad), (0, 0)))
        srcs = [xp]
        BH = TH + 2
        tap_plan = tuple((0, kh, kw) for kh in range(KH) for kw in range(KW))

    need_rows = Ho_pad + (BH - TH)

    def band_split(src):
        rows = src.shape[1]
        if rows < need_rows:
            src = jnp.pad(src, ((0, 0), (0, need_rows - rows), (0, 0), (0, 0)))
        return jnp.stack([src[:, t * TH:t * TH + BH] for t in range(T)], axis=1)

    bands = [band_split(s) for s in srcs]           # each (N, T, BH, Wsrc, Cp_in) bf16

    vmem_limit = _vmem_limit_bytes()
    kern = functools.partial(_fused_dw_pw_stats_kernel, tap_plan=tap_plan,
                             th=TH, wo=Wo, ho=Ho, mask_rows=mask_rows)
    in_specs = (
        [pl.BlockSpec((None, None, BH, b.shape[3], Cp_in), lambda n, t: (n, t, 0, 0, 0))
         for b in bands]
        + [pl.BlockSpec((Cp_in, KH * KW), lambda n, t: (0, 0)),
           pl.BlockSpec((Cp_in, Cp_out), lambda n, t: (0, 0))])

    y_tiles, part_stats = pl.pallas_call(
        kern,
        out_shape=(jax.ShapeDtypeStruct((N, T, M, Cp_out), jnp.bfloat16),
                   jax.ShapeDtypeStruct((N, T, 1, 2 * Cp_out), jnp.float32)),
        grid=(N, T),
        in_specs=in_specs,
        out_specs=(pl.BlockSpec((None, None, M, Cp_out), lambda n, t: (n, t, 0, 0)),
                   pl.BlockSpec((None, None, 1, 2 * Cp_out), lambda n, t: (n, t, 0, 0))),
        scratch_shapes=[pltpu.VMEM((M, Cp_out), jnp.float32)],
        compiler_params=pltpu.CompilerParams(
            dimension_semantics=("parallel", "parallel"),
            vmem_limit_bytes=vmem_limit),
    )(*bands, wdw, wpw)

    # Phase-2 BN: reduce lane-dense per-tile partials to GLOBAL batch statistics (biased
    # variance over the real N*Ho*Wo rows, as in PyTorch training-mode BN), then apply.
    R = N * Ho * Wo
    sums = jnp.sum(part_stats, axis=(0, 1, 2))                 # (2*Cp_out,)
    mean = sums[:Cp_out] / R
    var = jnp.maximum(sums[Cp_out:] / R - mean * mean, 0.0)
    gam = jnp.pad(gamma.astype(jnp.float32), (0, Cp_out - c_out))
    bet = jnp.pad(beta.astype(jnp.float32), (0, Cp_out - c_out))
    scale = gam * jax.lax.rsqrt(var + eps)
    shift = bet - mean * scale

    act = pl.pallas_call(
        _bn_relu_kernel,
        out_shape=jax.ShapeDtypeStruct((N, T, M, Cp_out), out_dtype),
        grid=(N, T),
        in_specs=[pl.BlockSpec((None, None, M, Cp_out), lambda n, t: (n, t, 0, 0)),
                  pl.BlockSpec((1, Cp_out), lambda n, t: (0, 0)),
                  pl.BlockSpec((1, Cp_out), lambda n, t: (0, 0))],
        out_specs=pl.BlockSpec((None, None, M, Cp_out), lambda n, t: (n, t, 0, 0)),
        compiler_params=pltpu.CompilerParams(
            dimension_semantics=("parallel", "parallel"),
            vmem_limit_bytes=vmem_limit),
    )(y_tiles, scale.reshape(1, Cp_out), shift.reshape(1, Cp_out))

    return act.reshape(N, Ho_pad, Wo, Cp_out)[:, :Ho]


# --------------------------------------------- SepConv ---------------------------------------------

def sepconv_forward(x_nchw, params, *, eps=1e-5, m_target=512):
    N, C_in, H, W = x_nchw.shape
    C_out = params["pw2"].shape[0]
    Cp_in = _round_up(C_in, _LANES)

    x = jnp.transpose(x_nchw, (0, 2, 3, 1)).astype(jnp.bfloat16)        # NCHW -> NHWC, bf16
    x = jnp.pad(x, ((0, 0), (0, 0), (0, 0), (0, Cp_in - C_in)))         # lane-dense channels

    x = _sepconv_block(x, params["dw1"], params["pw1"],
                       params["bn1_gamma"], params["bn1_beta"],
                       stride=2, c_out=C_in, eps=eps,
                       out_dtype=jnp.bfloat16, m_target=m_target)
    x = _sepconv_block(x, params["dw2"], params["pw2"],
                       params["bn2_gamma"], params["bn2_beta"],
                       stride=1, c_out=C_out, eps=eps,
                       out_dtype=jnp.float32, m_target=m_target)

    return jnp.transpose(x[..., :C_out], (0, 3, 1, 2))                  # NHWC -> NCHW


def ref_sepconv_forward(x, p, eps=1e-5):
    """Pure-JAX (XLA) reference used only for correctness checking."""
    hp = jax.lax.Precision.HIGHEST

    def dw(x, w, stride):
        return jax.lax.conv_general_dilated(
            x, w, window_strides=(stride, stride), padding=((1, 1), (1, 1)),
            dimension_numbers=("NCHW", "OIHW", "NCHW"),
            feature_group_count=x.shape[1], precision=hp)

    def pw(x, w):
        return jax.lax.conv_general_dilated(
            x, w, window_strides=(1, 1), padding="VALID",
            dimension_numbers=("NCHW", "OIHW", "NCHW"), precision=hp)

    def bn_relu(x, g, b):
        mean = jnp.mean(x, axis=(0, 2, 3), keepdims=True)
        var = jnp.mean(jnp.square(x - mean), axis=(0, 2, 3), keepdims=True)
        xh = (x - mean) * jax.lax.rsqrt(var + eps)
        return jnp.maximum(xh * g.reshape(1, -1, 1, 1) + b.reshape(1, -1, 1, 1), 0.0)

    x = bn_relu(pw(dw(x, p["dw1"], 2), p["pw1"]), p["bn1_gamma"], p["bn1_beta"])
    x = bn_relu(pw(dw(x, p["dw2"], 1), p["pw2"]), p["bn2_gamma"], p["bn2_beta"])
    return x


def init_params(key, c_in, c_out, kernel_size=3):
    ks = jax.random.split(key, 4)
    f32 = jnp.float32
    return dict(
        dw1=0.1 * jax.random.normal(ks[0], (c_in, 1, kernel_size, kernel_size), f32),
        pw1=0.1 * jax.random.normal(ks[1], (c_in, c_in, 1, 1), f32),
        dw2=0.1 * jax.random.normal(ks[2], (c_in, 1, kernel_size, kernel_size), f32),
        pw2=0.1 * jax.random.normal(ks[3], (c_out, c_in, 1, 1), f32),
        bn1_gamma=jnp.ones((c_in,), f32),
        bn1_beta=jnp.zeros((c_in,), f32),
        bn2_gamma=jnp.ones((c_out,), f32),
        bn2_beta=jnp.zeros((c_out,), f32),
    )


if __name__ == "__main__":
    key = jax.random.PRNGKey(0)
    kx, kp = jax.random.split(key)

    N, C_in, H, W = 2, 4, 16, 16
    C_out = 8
    x = jax.random.normal(kx, (N, C_in, H, W), jnp.float32)
    params = init_params(kp, C_in, C_out, kernel_size=3)

    fwd = jax.jit(sepconv_forward)
    y = jax.block_until_ready(fwd(x, params))

    # stride=2 in the first depthwise conv halves spatial dims: 16 -> 8
    assert y.shape == (N, C_out, H // 2, W // 2), y.shape
    assert y.dtype == jnp.float32
    assert bool(jnp.all(jnp.isfinite(y)))
    assert bool(jnp.all(y >= 0.0))                                # final ReLU

    # bf16 MXU operands / bf16 intermediates -> slightly looser tolerance than pure f32
    y_ref = jax.jit(ref_sepconv_forward)(x, params)
    assert bool(jnp.allclose(y, y_ref, rtol=3e-2, atol=3e-2)), \
        float(jnp.max(jnp.abs(y - y_ref)))

    # Larger spatial size with a small M target to exercise multi-band row tiling
    # (several grid steps per image) on both the stride-2 and stride-1 halves.
    x2 = jax.random.normal(kx, (2, C_in, 32, 32), jnp.float32)
    fwd2 = jax.jit(functools.partial(sepconv_forward, m_target=64))
    y2 = jax.block_until_ready(fwd2(x2, params))
    y2_ref = jax.jit(ref_sepconv_forward)(x2, params)
    assert y2.shape == (2, C_out, 16, 16), y2.shape
    assert bool(jnp.allclose(y2, y2_ref, rtol=3e-2, atol=3e-2)), \
        float(jnp.max(jnp.abs(y2 - y2_ref)))

    # Odd output-row count (Ho=6 padded to 8) exercises the in-kernel masking of padded
    # rows out of the BatchNorm statistics.
    x3 = jax.random.normal(kx, (2, C_in, 12, 16), jnp.float32)
    y3 = jax.block_until_ready(fwd(x3, params))
    y3_ref = jax.jit(ref_sepconv_forward)(x3, params)
    assert y3.shape == (2, C_out, 6, 8), y3.shape
    assert bool(jnp.allclose(y3, y3_ref, rtol=3e-2, atol=3e-2)), \
        float(jnp.max(jnp.abs(y3 - y3_ref)))

    print("KERNEL_OK")
</pallas_src>

<mosaic_0001>
module attributes {stable_mosaic.version = 11 : i64} {
  func.func @_fused_dw_pw_stats_kernel(%arg0: i32, %arg1: i32, %arg2: memref<1x1x9x9x128xbf16, #tpu.memory_space<vmem>>, %arg3: memref<1x1x9x9x128xbf16, #tpu.memory_space<vmem>>, %arg4: memref<1x1x9x9x128xbf16, #tpu.memory_space<vmem>>, %arg5: memref<1x1x9x9x128xbf16, #tpu.memory_space<vmem>>, %arg6: memref<128x9xf32, #tpu.memory_space<vmem>>, %arg7: memref<128x128xf32, #tpu.memory_space<vmem>>, %arg8: memref<1x1x64x128xbf16, #tpu.memory_space<vmem>>, %arg9: memref<1x1x1x256xf32, #tpu.memory_space<vmem>>, %arg10: memref<64x128xf32, #tpu.memory_space<vmem>>) attributes {dimension_semantics = [#tpu.dimension_semantics<parallel>, #tpu.dimension_semantics<parallel>], iteration_bounds = array<i64: 2, 1>, scalar_prefetch = 0 : i64, scratch_operands = 1 : i64, tpu.core_type = #tpu.core_type<tc>, window_params = [{transform_indices = @transform_0, window_bounds = array<i64: 1, 1, 9, 9, 128>}, {transform_indices = @transform_1, window_bounds = array<i64: 1, 1, 9, 9, 128>}, {transform_indices = @transform_2, window_bounds = array<i64: 1, 1, 9, 9, 128>}, {transform_indices = @transform_3, window_bounds = array<i64: 1, 1, 9, 9, 128>}, {pipeline_mode = #tpu.pipeline_mode<synchronous>, transform_indices = @transform_4, window_bounds = array<i64: 128, 9>}, {pipeline_mode = #tpu.pipeline_mode<synchronous>, transform_indices = @transform_5, window_bounds = array<i64: 128, 128>}, {transform_indices = @transform_6, window_bounds = array<i64: 1, 1, 64, 128>}, {transform_indices = @transform_7, window_bounds = array<i64: 1, 1, 1, 256>}]} {
    %c0 = arith.constant 0 : index
    %c0_0 = arith.constant 0 : index
    %0 = vector.load %arg6[%c0, %c0_0] : memref<128x9xf32, #tpu.memory_space<vmem>>, vector<128x9xf32>
    %c0_1 = arith.constant 0 : index
    %c0_2 = arith.constant 0 : index
    %1 = vector.load %arg7[%c0_1, %c0_2] : memref<128x128xf32, #tpu.memory_space<vmem>>, vector<128x128xf32>
    %c0_3 = arith.constant 0 : index
    %c0_4 = arith.constant 0 : index
    %c0_5 = arith.constant 0 : index
    %c0_6 = arith.constant 0 : index
    %c0_7 = arith.constant 0 : index
    %2 = vector.load %arg2[%c0_3, %c0_4, %c0_5, %c0_6, %c0_7] : memref<1x1x9x9x128xbf16, #tpu.memory_space<vmem>>, vector<1x1x8x8x128xbf16>
    %3 = vector.shape_cast %2 : vector<1x1x8x8x128xbf16> to vector<8x8x128xbf16>
    %4 = vector.shape_cast %3 : vector<8x8x128xbf16> to vector<64x128xbf16>
    %5 = vector.extract_strided_slice %0 {offsets = [0, 0], sizes = [128, 1], strides = [1, 1]} : vector<128x9xf32> to vector<128x1xf32>
    %6 = vector.broadcast %5 : vector<128x1xf32> to vector<128x128xf32>
    %7 = arith.mulf %1, %6 : vector<128x128xf32>
    %8 = arith.truncf %7 : vector<128x128xf32> to vector<128x128xbf16>
    %cst = arith.constant dense<0.000000e+00> : vector<64x128xf32>
    %9 = tpu.matmul %4, %8, %cst {dimension_numbers = #tpu.dot_dimension_numbers<[1], [0], [0], [1], [0, 0, 1, 1], [], []>} : vector<64x128xbf16>, vector<128x128xbf16>, vector<64x128xf32> -> vector<64x128xf32>
    %c0_8 = arith.constant 0 : index
    %c0_9 = arith.constant 0 : index
    %10 = vector.load %arg10[%c0_8, %c0_9] : memref<64x128xf32, #tpu.memory_space<vmem>>, vector<64x128xf32>
    tpu.vector_store %arg10[%c0_8, %c0_9], %9 {strides = array<i32>} : memref<64x128xf32, #tpu.memory_space<vmem>>, vector<64x128xf32>,
    %c0_10 = arith.constant 0 : index
    %c0_11 = arith.constant 0 : index
    %c0_12 = arith.constant 0 : index
    %c0_13 = arith.constant 0 : index
    %c0_14 = arith.constant 0 : index
    %11 = vector.load %arg3[%c0_10, %c0_11, %c0_12, %c0_13, %c0_14] : memref<1x1x9x9x128xbf16, #tpu.memory_space<vmem>>, vector<1x1x8x8x128xbf16>
    %12 = vector.shape_cast %11 : vector<1x1x8x8x128xbf16> to vector<8x8x128xbf16>
    %13 = vector.shape_cast %12 : vector<8x8x128xbf16> to vector<64x128xbf16>
    %14 = vector.extract_strided_slice %0 {offsets = [0, 1], sizes = [128, 1], strides = [1, 1]} : vector<128x9xf32> to vector<128x1xf32>
    %15 = vector.broadcast %14 : vector<128x1xf32> to vector<128x128xf32>
    %16 = arith.mulf %1, %15 : vector<128x128xf32>
    %17 = arith.truncf %16 : vector<128x128xf32> to vector<128x128xbf16>
    %cst_15 = arith.constant dense<0.000000e+00> : vector<64x128xf32>
    %18 = tpu.matmul %13, %17, %cst_15 {dimension_numbers = #tpu.dot_dimension_numbers<[1], [0], [0], [1], [0, 0, 1, 1], [], []>} : vector<64x128xbf16>, vector<128x128xbf16>, vector<64x128xf32> -> vector<64x128xf32>
    %c0_16 = arith.constant 0 : index
    %c0_17 = arith.constant 0 : index
    %19 = vector.load %arg10[%c0_16, %c0_17] : memref<64x128xf32, #tpu.memory_space<vmem>>, vector<64x128xf32>
    %20 = arith.addf %19, %18 : vector<64x128xf32>
    %c0_18 = arith.constant 0 : index
    %c0_19 = arith.constant 0 : index
    %21 = vector.load %arg10[%c0_18, %c0_19] : memref<64x128xf32, #tpu.memory_space<vmem>>, vector<64x128xf32>
    tpu.vector_store %arg10[%c0_18, %c0_19], %20 {strides = array<i32>} : memref<64x128xf32, #tpu.memory_space<vmem>>, vector<64x128xf32>,
    %c0_20 = arith.constant 0 : index
    %c0_21 = arith.constant 0 : index
    %c0_22 = arith.constant 0 : index
    %c1 = arith.constant 1 : index
    %c0_23 = arith.constant 0 : index
    %22 = vector.load %arg2[%c0_20, %c0_21, %c0_22, %c1, %c0_23] : memref<1x1x9x9x128xbf16, #tpu.memory_space<vmem>>, vector<1x1x8x8x128xbf16>
    %23 = vector.shape_cast %22 : vector<1x1x8x8x128xbf16> to vector<8x8x128xbf16>
    %24 = vector.shape_cast %23 : vector<8x8x128xbf16> to vector<64x128xbf16>
    %25 = vector.extract_strided_slice %0 {offsets = [0, 2], sizes = [128, 1], strides = [1, 1]} : vector<128x9xf32> to vector<128x1xf32>
    %26 = vector.broadcast %25 : vector<128x1xf32> to vector<128x128xf32>
    %27 = arith.mulf %1, %26 : vector<128x128xf32>
    %28 = arith.truncf %27 : vector<128x128xf32> to vector<128x128xbf16>
    %cst_24 = arith.constant dense<0.000000e+00> : vector<64x128xf32>
    %29 = tpu.matmul %24, %28, %cst_24 {dimension_numbers = #tpu.dot_dimension_numbers<[1], [0], [0], [1], [0, 0, 1, 1], [], []>} : vector<64x128xbf16>, vector<128x128xbf16>, vector<64x128xf32> -> vector<64x128xf32>
    %c0_25 = arith.constant 0 : index
    %c0_26 = arith.constant 0 : index
    %30 = vector.load %arg10[%c0_25, %c0_26] : memref<64x128xf32, #tpu.memory_space<vmem>>, vector<64x128xf32>
    %31 = arith.addf %30, %29 : vector<64x128xf32>
    %c0_27 = arith.constant 0 : index
    %c0_28 = arith.constant 0 : index
    %32 = vector.load %arg10[%c0_27, %c0_28] : memref<64x128xf32, #tpu.memory_space<vmem>>, vector<64x128xf32>
    tpu.vector_store %arg10[%c0_27, %c0_28], %31 {strides = array<i32>} : memref<64x128xf32, #tpu.memory_space<vmem>>, vector<64x128xf32>,
    %c0_29 = arith.constant 0 : index
    %c0_30 = arith.constant 0 : index
    %c0_31 = arith.constant 0 : index
    %c0_32 = arith.constant 0 : index
    %c0_33 = arith.constant 0 : index
    %33 = vector.load %arg4[%c0_29, %c0_30, %c0_31, %c0_32, %c0_33] : memref<1x1x9x9x128xbf16, #tpu.memory_space<vmem>>, vector<1x1x8x8x128xbf16>
    %34 = vector.shape_cast %33 : vector<1x1x8x8x128xbf16> to vector<8x8x128xbf16>
    %35 = vector.shape_cast %34 : vector<8x8x128xbf16> to vector<64x128xbf16>
    %36 = vector.extract_strided_slice %0 {offsets = [0, 3], sizes = [128, 1], strides = [1, 1]} : vector<128x9xf32> to vector<128x1xf32>
    %37 = vector.broadcast %36 : vector<128x1xf32> to vector<128x128xf32>
    %38 = arith.mulf %1, %37 : vector<128x128xf32>
    %39 = arith.truncf %38 : vector<128x128xf32> to vector<128x128xbf16>
    %cst_34 = arith.constant dense<0.000000e+00> : vector<64x128xf32>
    %40 = tpu.matmul %35, %39, %cst_34 {dimension_numbers = #tpu.dot_dimension_numbers<[1], [0], [0], [1], [0, 0, 1, 1], [], []>} : vector<64x128xbf16>, vector<128x128xbf16>, vector<64x128xf32> -> vector<64x128xf32>
    %c0_35 = arith.constant 0 : index
    %c0_36 = arith.constant 0 : index
    %41 = vector.load %arg10[%c0_35, %c0_36] : memref<64x128xf32, #tpu.memory_space<vmem>>, vector<64x128xf32>
    %42 = arith.addf %41, %40 : vector<64x128xf32>
    %c0_37 = arith.constant 0 : index
    %c0_38 = arith.constant 0 : index
    %43 = vector.load %arg10[%c0_37, %c0_38] : memref<64x128xf32, #tpu.memory_space<vmem>>, vector<64x128xf32>
    tpu.vector_store %arg10[%c0_37, %c0_38], %42 {strides = array<i32>} : memref<64x128xf32, #tpu.memory_space<vmem>>, vector<64x128xf32>,
    %c0_39 = arith.constant 0 : index
    %c0_40 = arith.constant 0 : index
    %c0_41 = arith.constant 0 : index
    %c0_42 = arith.constant 0 : index
    %c0_43 = arith.constant 0 : index
    %44 = vector.load %arg5[%c0_39, %c0_40, %c0_41, %c0_42, %c0_43] : memref<1x1x9x9x128xbf16, #tpu.memory_space<vmem>>, vector<1x1x8x8x128xbf16>
    %45 = vector.shape_cast %44 : vector<1x1x8x8x128xbf16> to vector<8x8x128xbf16>
    %46 = vector.shape_cast %45 : vector<8x8x128xbf16> to vector<64x128xbf16>
    %47 = vector.extract_strided_slice %0 {offsets = [0, 4], sizes = [128, 1], strides = [1, 1]} : vector<128x9xf32> to vector<128x1xf32>
    %48 = vector.broadcast %47 : vector<128x1xf32> to vector<128x128xf32>
    %49 = arith.mulf %1, %48 : vector<128x128xf32>
    %50 = arith.truncf %49 : vector<128x128xf32> to vector<128x128xbf16>
    %cst_44 = arith.constant dense<0.000000e+00> : vector<64x128xf32>
    %51 = tpu.matmul %46, %50, %cst_44 {dimension_numbers = #tpu.dot_dimension_numbers<[1], [0], [0], [1], [0, 0, 1, 1], [], []>} : vector<64x128xbf16>, vector<128x128xbf16>, vector<64x128xf32> -> vector<64x128xf32>
    %c0_45 = arith.constant 0 : index
    %c0_46 = arith.constant 0 : index
    %52 = vector.load %arg10[%c0_45, %c0_46] : memref<64x128xf32, #tpu.memory_space<vmem>>, vector<64x128xf32>
    %53 = arith.addf %52, %51 : vector<64x128xf32>
    %c0_47 = arith.constant 0 : index
    %c0_48 = arith.constant 0 : index
    %54 = vector.load %arg10[%c0_47, %c0_48] : memref<64x128xf32, #tpu.memory_space<vmem>>, vector<64x128xf32>
    tpu.vector_store %arg10[%c0_47, %c0_48], %53 {strides = array<i32>} : memref<64x128xf32, #tpu.memory_space<vmem>>, vector<64x128xf32>,
    %c0_49 = arith.constant 0 : index
    %c0_50 = arith.constant 0 : index
    %c0_51 = arith.constant 0 : index
    %c1_52 = arith.constant 1 : index
    %c0_53 = arith.constant 0 : index
    %55 = vector.load %arg4[%c0_49, %c0_50, %c0_51, %c1_52, %c0_53] : memref<1x1x9x9x128xbf16, #tpu.memory_space<vmem>>, vector<1x1x8x8x128xbf16>
    %56 = vector.shape_cast %55 : vector<1x1x8x8x128xbf16> to vector<8x8x128xbf16>
    %57 = vector.shape_cast %56 : vector<8x8x128xbf16> to vector<64x128xbf16>
    %58 = vector.extract_strided_slice %0 {offsets = [0, 5], sizes = [128, 1], strides = [1, 1]} : vector<128x9xf32> to vector<128x1xf32>
    %59 = vector.broadcast %58 : vector<128x1xf32> to vector<128x128xf32>
    %60 = arith.mulf %1, %59 : vector<128x128xf32>
    %61 = arith.truncf %60 : vector<128x128xf32> to vector<128x128xbf16>
    %cst_54 = arith.constant dense<0.000000e+00> : vector<64x128xf32>
    %62 = tpu.matmul %57, %61, %cst_54 {dimension_numbers = #tpu.dot_dimension_numbers<[1], [0], [0], [1], [0, 0, 1, 1], [], []>} : vector<64x128xbf16>, vector<128x128xbf16>, vector<64x128xf32> -> vector<64x128xf32>
    %c0_55 = arith.constant 0 : index
    %c0_56 = arith.constant 0 : index
    %63 = vector.load %arg10[%c0_55, %c0_56] : memref<64x128xf32, #tpu.memory_space<vmem>>, vector<64x128xf32>
    %64 = arith.addf %63, %62 : vector<64x128xf32>
    %c0_57 = arith.constant 0 : index
    %c0_58 = arith.constant 0 : index
    %65 = vector.load %arg10[%c0_57, %c0_58] : memref<64x128xf32, #tpu.memory_space<vmem>>, vector<64x128xf32>
    tpu.vector_store %arg10[%c0_57, %c0_58], %64 {strides = array<i32>} : memref<64x128xf32, #tpu.memory_space<vmem>>, vector<64x128xf32>,
    %c0_59 = arith.constant 0 : index
    %c0_60 = arith.constant 0 : index
    %c1_61 = arith.constant 1 : index
    %c0_62 = arith.constant 0 : index
    %c0_63 = arith.constant 0 : index
    %66 = vector.load %arg2[%c0_59, %c0_60, %c1_61, %c0_62, %c0_63] : memref<1x1x9x9x128xbf16, #tpu.memory_space<vmem>>, vector<1x1x8x8x128xbf16>
    %67 = vector.shape_cast %66 : vector<1x1x8x8x128xbf16> to vector<8x8x128xbf16>
    %68 = vector.shape_cast %67 : vector<8x8x128xbf16> to vector<64x128xbf16>
    %69 = vector.extract_strided_slice %0 {offsets = [0, 6], sizes = [128, 1], strides = [1, 1]} : vector<128x9xf32> to vector<128x1xf32>
    %70 = vector.broadcast %69 : vector<128x1xf32> to vector<128x128xf32>
    %71 = arith.mulf %1, %70 : vector<128x128xf32>
    %72 = arith.truncf %71 : vector<128x128xf32> to vector<128x128xbf16>
    %cst_64 = arith.constant dense<0.000000e+00> : vector<64x128xf32>
    %73 = tpu.matmul %68, %72, %cst_64 {dimension_numbers = #tpu.dot_dimension_numbers<[1], [0], [0], [1], [0, 0, 1, 1], [], []>} : vector<64x128xbf16>, vector<128x128xbf16>, vector<64x128xf32> -> vector<64x128xf32>
    %c0_65 = arith.constant 0 : index
    %c0_66 = arith.constant 0 : index
    %74 = vector.load %arg10[%c0_65, %c0_66] : memref<64x128xf32, #tpu.memory_space<vmem>>, vector<64x128xf32>
    %75 = arith.addf %74, %73 : vector<64x128xf32>
    %c0_67 = arith.constant 0 : index
    %c0_68 = arith.constant 0 : index
    %76 = vector.load %arg10[%c0_67, %c0_68] : memref<64x128xf32, #tpu.memory_space<vmem>>, vector<64x128xf32>
    tpu.vector_store %arg10[%c0_67, %c0_68], %75 {strides = array<i32>} : memref<64x128xf32, #tpu.memory_space<vmem>>, vector<64x128xf32>,
    %c0_69 = arith.constant 0 : index
    %c0_70 = arith.constant 0 : index
    %c1_71 = arith.constant 1 : index
    %c0_72 = arith.constant 0 : index
    %c0_73 = arith.constant 0 : index
    %77 = vector.load %arg3[%c0_69, %c0_70, %c1_71, %c0_72, %c0_73] : memref<1x1x9x9x128xbf16, #tpu.memory_space<vmem>>, vector<1x1x8x8x128xbf16>
    %78 = vector.shape_cast %77 : vector<1x1x8x8x128xbf16> to vector<8x8x128xbf16>
    %79 = vector.shape_cast %78 : vector<8x8x128xbf16> to vector<64x128xbf16>
    %80 = vector.extract_strided_slice %0 {offsets = [0, 7], sizes = [128, 1], strides = [1, 1]} : vector<128x9xf32> to vector<128x1xf32>
    %81 = vector.broadcast %80 : vector<128x1xf32> to vector<128x128xf32>
    %82 = arith.mulf %1, %81 : vector<128x128xf32>
    %83 = arith.truncf %82 : vector<128x128xf32> to vector<128x128xbf16>
    %cst_74 = arith.constant dense<0.000000e+00> : vector<64x128xf32>
    %84 = tpu.matmul %79, %83, %cst_74 {dimension_numbers = #tpu.dot_dimension_numbers<[1], [0], [0], [1], [0, 0, 1, 1], [], []>} : vector<64x128xbf16>, vector<128x128xbf16>, vector<64x128xf32> -> vector<64x128xf32>
    %c0_75 = arith.constant 0 : index
    %c0_76 = arith.constant 0 : index
    %85 = vector.load %arg10[%c0_75, %c0_76] : memref<64x128xf32, #tpu.memory_space<vmem>>, vector<64x128xf32>
    %86 = arith.addf %85, %84 : vector<64x128xf32>
    %c0_77 = arith.constant 0 : index
    %c0_78 = arith.constant 0 : index
    %87 = vector.load %arg10[%c0_77, %c0_78] : memref<64x128xf32, #tpu.memory_space<vmem>>, vector<64x128xf32>
    tpu.vector_store %arg10[%c0_77, %c0_78], %86 {strides = array<i32>} : memref<64x128xf32, #tpu.memory_space<vmem>>, vector<64x128xf32>,
    %c0_79 = arith.constant 0 : index
    %c0_80 = arith.constant 0 : index
    %c1_81 = arith.constant 1 : index
    %c1_82 = arith.constant 1 : index
    %c0_83 = arith.constant 0 : index
    %88 = vector.load %arg2[%c0_79, %c0_80, %c1_81, %c1_82, %c0_83] : memref<1x1x9x9x128xbf16, #tpu.memory_space<vmem>>, vector<1x1x8x8x128xbf16>
    %89 = vector.shape_cast %88 : vector<1x1x8x8x128xbf16> to vector<8x8x128xbf16>
    %90 = vector.shape_cast %89 : vector<8x8x128xbf16> to vector<64x128xbf16>
    %91 = vector.extract_strided_slice %0 {offsets = [0, 8], sizes = [128, 1], strides = [1, 1]} : vector<128x9xf32> to vector<128x1xf32>
    %92 = vector.broadcast %91 : vector<128x1xf32> to vector<128x128xf32>
    %93 = arith.mulf %1, %92 : vector<128x128xf32>
    %94 = arith.truncf %93 : vector<128x128xf32> to vector<128x128xbf16>
    %cst_84 = arith.constant dense<0.000000e+00> : vector<64x128xf32>
    %95 = tpu.matmul %90, %94, %cst_84 {dimension_numbers = #tpu.dot_dimension_numbers<[1], [0], [0], [1], [0, 0, 1, 1], [], []>} : vector<64x128xbf16>, vector<128x128xbf16>, vector<64x128xf32> -> vector<64x128xf32>
    %c0_85 = arith.constant 0 : index
    %c0_86 = arith.constant 0 : index
    %96 = vector.load %arg10[%c0_85, %c0_86] : memref<64x128xf32, #tpu.memory_space<vmem>>, vector<64x128xf32>
    %97 = arith.addf %96, %95 : vector<64x128xf32>
    %c0_87 = arith.constant 0 : index
    %c0_88 = arith.constant 0 : index
    %98 = vector.load %arg10[%c0_87, %c0_88] : memref<64x128xf32, #tpu.memory_space<vmem>>, vector<64x128xf32>
    tpu.vector_store %arg10[%c0_87, %c0_88], %97 {strides = array<i32>} : memref<64x128xf32, #tpu.memory_space<vmem>>, vector<64x128xf32>,
    %c0_89 = arith.constant 0 : index
    %c0_90 = arith.constant 0 : index
    %99 = vector.load %arg10[%c0_89, %c0_90] : memref<64x128xf32, #tpu.memory_space<vmem>>, vector<64x128xf32>
    %100 = arith.truncf %99 : vector<64x128xf32> to vector<64x128xbf16>
    %c0_91 = arith.constant 0 : index
    %c0_92 = arith.constant 0 : index
    %c0_93 = arith.constant 0 : index
    %c0_94 = arith.constant 0 : index
    %101 = vector.load %arg8[%c0_91, %c0_92, %c0_93, %c0_94] : memref<1x1x64x128xbf16, #tpu.memory_space<vmem>>, vector<1x1x64x128xbf16>
    %102 = vector.shape_cast %101 : vector<1x1x64x128xbf16> to vector<64x128xbf16>
    %103 = vector.shape_cast %100 : vector<64x128xbf16> to vector<1x1x64x128xbf16>
    tpu.vector_store %arg8[%c0_91, %c0_92, %c0_93, %c0_94], %103 {strides = array<i32>} : memref<1x1x64x128xbf16, #tpu.memory_space<vmem>>, vector<1x1x64x128xbf16>,
    %cst_95 = arith.constant dense<0.000000e+00> : vector<128xf32>
    %104 = vector.multi_reduction <add>, %99, %cst_95 [0] : vector<64x128xf32> to vector<128xf32>
    %105 = vector.shape_cast %104 : vector<128xf32> to vector<1x128xf32>
    %106 = arith.mulf %99, %99 : vector<64x128xf32>
    %cst_96 = arith.constant dense<0.000000e+00> : vector<128xf32>
    %107 = vector.multi_reduction <add>, %106, %cst_96 [0] : vector<64x128xf32> to vector<128xf32>
    %108 = vector.shape_cast %107 : vector<128xf32> to vector<1x128xf32>
    %109 = tpu.concatenate %105, %108 in 1 : vector<1x128xf32>, vector<1x128xf32> -> vector<1x256xf32>
    %c0_97 = arith.constant 0 : index
    %c0_98 = arith.constant 0 : index
    %c0_99 = arith.constant 0 : index
    %c0_100 = arith.constant 0 : index
    %110 = vector.load %arg9[%c0_97, %c0_98, %c0_99, %c0_100] : memref<1x1x1x256xf32, #tpu.memory_space<vmem>>, vector<1x1x1x256xf32>
    %111 = vector.shape_cast %110 : vector<1x1x1x256xf32> to vector<1x256xf32>
    %112 = vector.shape_cast %109 : vector<1x256xf32> to vector<1x1x1x256xf32>
    tpu.vector_store %arg9[%c0_97, %c0_98, %c0_99, %c0_100], %112 {strides = array<i32>} : memref<1x1x1x256xf32, #tpu.memory_space<vmem>>, vector<1x1x1x256xf32>,
    return
  }
  func.func @transform_0(%arg0: i32, %arg1: i32) -> (i32, i32, i32, i32, i32) {
    %c0_i32 = arith.constant 0 : i32
    %c0_i32_0 = arith.constant 0 : i32
    %c0_i32_1 = arith.constant 0 : i32
    %c0_i32_2 = arith.constant 0 : i32
    return %arg0, %arg1, %c0_i32, %c0_i32_0, %c0_i32_1 : i32, i32, i32, i32, i32
  }
  func.func @transform_1(%arg0: i32, %arg1: i32) -> (i32, i32, i32, i32, i32) {
    %c0_i32 = arith.constant 0 : i32
    %c0_i32_0 = arith.constant 0 : i32
    %c0_i32_1 = arith.constant 0 : i32
    %c0_i32_2 = arith.constant 0 : i32
    return %arg0, %arg1, %c0_i32, %c0_i32_0, %c0_i32_1 : i32, i32, i32, i32, i32
  }
  func.func @transform_2(%arg0: i32, %arg1: i32) -> (i32, i32, i32, i32, i32) {
    %c0_i32 = arith.constant 0 : i32
    %c0_i32_0 = arith.constant 0 : i32
    %c0_i32_1 = arith.constant 0 : i32
    %c0_i32_2 = arith.constant 0 : i32
    return %arg0, %arg1, %c0_i32, %c0_i32_0, %c0_i32_1 : i32, i32, i32, i32, i32
  }
  func.func @transform_3(%arg0: i32, %arg1: i32) -> (i32, i32, i32, i32, i32) {
    %c0_i32 = arith.constant 0 : i32
    %c0_i32_0 = arith.constant 0 : i32
    %c0_i32_1 = arith.constant 0 : i32
    %c0_i32_2 = arith.constant 0 : i32
    return %arg0, %arg1, %c0_i32, %c0_i32_0, %c0_i32_1 : i32, i32, i32, i32, i32
  }
  func.func @transform_4(%arg0: i32, %arg1: i32) -> (i32, i32) {
    %c0_i32 = arith.constant 0 : i32
    %c0_i32_0 = arith.constant 0 : i32
    %c0_i32_1 = arith.constant 0 : i32
    return %c0_i32, %c0_i32_0 : i32, i32
  }
  func.func @transform_5(%arg0: i32, %arg1: i32) -> (i32, i32) {
    %c0_i32 = arith.constant 0 : i32
    %c0_i32_0 = arith.constant 0 : i32
    %c0_i32_1 = arith.constant 0 : i32
    return %c0_i32, %c0_i32_0 : i32, i32
  }
  func.func @transform_6(%arg0: i32, %arg1: i32) -> (i32, i32, i32, i32) {
    %c0_i32 = arith.constant 0 : i32
    %c0_i32_0 = arith.constant 0 : i32
    %c0_i32_1 = arith.constant 0 : i32
    return %arg0, %arg1, %c0_i32, %c0_i32_0 : i32, i32, i32, i32
  }
  func.func @transform_7(%arg0: i32, %arg1: i32) -> (i32, i32, i32, i32) {
    %c0_i32 = arith.constant 0 : i32
    %c0_i32_0 = arith.constant 0 : i32
    %c0_i32_1 = arith.constant 0 : i32
    return %arg0, %arg1, %c0_i32, %c0_i32_0 : i32, i32, i32, i32
  }
}

module attributes {stable_mosaic.version = 11 : i64} {
  func.func @_bn_relu_kernel(%arg0: i32, %arg1: i32, %arg2: memref<1x1x64x128xbf16, #tpu.memory_space<vmem>>, %arg3: memref<1x128xf32, #tpu.memory_space<vmem>>, %arg4: memref<1x128xf32, #tpu.memory_space<vmem>>, %arg5: memref<1x1x64x128xbf16, #tpu.memory_space<vmem>>) attributes {dimension_semantics = [#tpu.dimension_semantics<parallel>, #tpu.dimension_semantics<parallel>], iteration_bounds = array<i64: 2, 1>, scalar_prefetch = 0 : i64, scratch_operands = 0 : i64, tpu.core_type = #tpu.core_type<tc>, window_params = [{transform_indices = @transform_0, window_bounds = array<i64: 1, 1, 64, 128>}, {pipeline_mode = #tpu.pipeline_mode<synchronous>, transform_indices = @transform_1, window_bounds = array<i64: 1, 128>}, {pipeline_mode = #tpu.pipeline_mode<synchronous>, transform_indices = @transform_2, window_bounds = array<i64: 1, 128>}, {transform_indices = @transform_3, window_bounds = array<i64: 1, 1, 64, 128>}]} {
    %c0 = arith.constant 0 : index
    %c0_0 = arith.constant 0 : index
    %c0_1 = arith.constant 0 : index
    %c0_2 = arith.constant 0 : index
    %0 = vector.load %arg2[%c0, %c0_0, %c0_1, %c0_2] : memref<1x1x64x128xbf16, #tpu.memory_space<vmem>>, vector<1x1x64x128xbf16>
    %1 = vector.shape_cast %0 : vector<1x1x64x128xbf16> to vector<64x128xbf16>
    %2 = arith.extf %1 : vector<64x128xbf16> to vector<64x128xf32>
    %c0_3 = arith.constant 0 : index
    %c0_4 = arith.constant 0 : index
    %3 = vector.load %arg3[%c0_3, %c0_4] : memref<1x128xf32, #tpu.memory_space<vmem>>, vector<1x128xf32>
    %4 = vector.broadcast %3 : vector<1x128xf32> to vector<64x128xf32>
    %5 = arith.mulf %2, %4 : vector<64x128xf32>
    %c0_5 = arith.constant 0 : index
    %c0_6 = arith.constant 0 : index
    %6 = vector.load %arg4[%c0_5, %c0_6] : memref<1x128xf32, #tpu.memory_space<vmem>>, vector<1x128xf32>
    %7 = vector.broadcast %6 : vector<1x128xf32> to vector<64x128xf32>
    %8 = arith.addf %5, %7 : vector<64x128xf32>
    %cst = arith.constant 0.000000e+00 : f32
    %9 = vector.broadcast %cst : f32 to vector<64x128xf32>
    %10 = arith.maximumf %8, %9 : vector<64x128xf32>
    %11 = arith.truncf %10 : vector<64x128xf32> to vector<64x128xbf16>
    %c0_7 = arith.constant 0 : index
    %c0_8 = arith.constant 0 : index
    %c0_9 = arith.constant 0 : index
    %c0_10 = arith.constant 0 : index
    %12 = vector.load %arg5[%c0_7, %c0_8, %c0_9, %c0_10] : memref<1x1x64x128xbf16, #tpu.memory_space<vmem>>, vector<1x1x64x128xbf16>
    %13 = vector.shape_cast %12 : vector<1x1x64x128xbf16> to vector<64x128xbf16>
    %14 = vector.shape_cast %11 : vector<64x128xbf16> to vector<1x1x64x128xbf16>
    tpu.vector_store %arg5[%c0_7, %c0_8, %c0_9, %c0_10], %14 {strides = array<i32>} : memref<1x1x64x128xbf16, #tpu.memory_space<vmem>>, vector<1x1x64x128xbf16>,
    return
  }
  func.func @transform_0(%arg0: i32, %arg1: i32) -> (i32, i32, i32, i32) {
    %c0_i32 = arith.constant 0 : i32
    %c0_i32_0 = arith.constant 0 : i32
    %c0_i32_1 = arith.constant 0 : i32
    return %arg0, %arg1, %c0_i32, %c0_i32_0 : i32, i32, i32, i32
  }
  func.func @transform_1(%arg0: i32, %arg1: i32) -> (i32, i32) {
    %c0_i32 = arith.constant 0 : i32
    %c0_i32_0 = arith.constant 0 : i32
    %c0_i32_1 = arith.constant 0 : i32
    return %c0_i32, %c0_i32_0 : i32, i32
  }
  func.func @transform_2(%arg0: i32, %arg1: i32) -> (i32, i32) {
    %c0_i32 = arith.constant 0 : i32
    %c0_i32_0 = arith.constant 0 : i32
    %c0_i32_1 = arith.constant 0 : i32
    return %c0_i32, %c0_i32_0 : i32, i32
  }
  func.func @transform_3(%arg0: i32, %arg1: i32) -> (i32, i32, i32, i32) {
    %c0_i32 = arith.constant 0 : i32
    %c0_i32_0 = arith.constant 0 : i32
    %c0_i32_1 = arith.constant 0 : i32
    return %arg0, %arg1, %c0_i32, %c0_i32_0 : i32, i32, i32, i32
  }
}

module attributes {stable_mosaic.version = 11 : i64} {
  func.func @_fused_dw_pw_stats_kernel(%arg0: i32, %arg1: i32, %arg2: memref<1x1x10x10x128xbf16, #tpu.memory_space<vmem>>, %arg3: memref<128x9xf32, #tpu.memory_space<vmem>>, %arg4: memref<128x128xf32, #tpu.memory_space<vmem>>, %arg5: memref<1x1x64x128xbf16, #tpu.memory_space<vmem>>, %arg6: memref<1x1x1x256xf32, #tpu.memory_space<vmem>>, %arg7: memref<64x128xf32, #tpu.memory_space<vmem>>) attributes {dimension_semantics = [#tpu.dimension_semantics<parallel>, #tpu.dimension_semantics<parallel>], iteration_bounds = array<i64: 2, 1>, scalar_prefetch = 0 : i64, scratch_operands = 1 : i64, tpu.core_type = #tpu.core_type<tc>, window_params = [{transform_indices = @transform_0, window_bounds = array<i64: 1, 1, 10, 10, 128>}, {pipeline_mode = #tpu.pipeline_mode<synchronous>, transform_indices = @transform_1, window_bounds = array<i64: 128, 9>}, {pipeline_mode = #tpu.pipeline_mode<synchronous>, transform_indices = @transform_2, window_bounds = array<i64: 128, 128>}, {transform_indices = @transform_3, window_bounds = array<i64: 1, 1, 64, 128>}, {transform_indices = @transform_4, window_bounds = array<i64: 1, 1, 1, 256>}]} {
    %c0 = arith.constant 0 : index
    %c0_0 = arith.constant 0 : index
    %0 = vector.load %arg3[%c0, %c0_0] : memref<128x9xf32, #tpu.memory_space<vmem>>, vector<128x9xf32>
    %c0_1 = arith.constant 0 : index
    %c0_2 = arith.constant 0 : index
    %1 = vector.load %arg4[%c0_1, %c0_2] : memref<128x128xf32, #tpu.memory_space<vmem>>, vector<128x128xf32>
    %c0_3 = arith.constant 0 : index
    %c0_4 = arith.constant 0 : index
    %c0_5 = arith.constant 0 : index
    %c0_6 = arith.constant 0 : index
    %c0_7 = arith.constant 0 : index
    %2 = vector.load %arg2[%c0_3, %c0_4, %c0_5, %c0_6, %c0_7] : memref<1x1x10x10x128xbf16, #tpu.memory_space<vmem>>, vector<1x1x8x8x128xbf16>
    %3 = vector.shape_cast %2 : vector<1x1x8x8x128xbf16> to vector<8x8x128xbf16>
    %4 = vector.shape_cast %3 : vector<8x8x128xbf16> to vector<64x128xbf16>
    %5 = vector.extract_strided_slice %0 {offsets = [0, 0], sizes = [128, 1], strides = [1, 1]} : vector<128x9xf32> to vector<128x1xf32>
    %6 = vector.broadcast %5 : vector<128x1xf32> to vector<128x128xf32>
    %7 = arith.mulf %1, %6 : vector<128x128xf32>
    %8 = arith.truncf %7 : vector<128x128xf32> to vector<128x128xbf16>
    %cst = arith.constant dense<0.000000e+00> : vector<64x128xf32>
    %9 = tpu.matmul %4, %8, %cst {dimension_numbers = #tpu.dot_dimension_numbers<[1], [0], [0], [1], [0, 0, 1, 1], [], []>} : vector<64x128xbf16>, vector<128x128xbf16>, vector<64x128xf32> -> vector<64x128xf32>
    %c0_8 = arith.constant 0 : index
    %c0_9 = arith.constant 0 : index
    %10 = vector.load %arg7[%c0_8, %c0_9] : memref<64x128xf32, #tpu.memory_space<vmem>>, vector<64x128xf32>
    tpu.vector_store %arg7[%c0_8, %c0_9], %9 {strides = array<i32>} : memref<64x128xf32, #tpu.memory_space<vmem>>, vector<64x128xf32>,
    %c0_10 = arith.constant 0 : index
    %c0_11 = arith.constant 0 : index
    %c0_12 = arith.constant 0 : index
    %c1 = arith.constant 1 : index
    %c0_13 = arith.constant 0 : index
    %11 = vector.load %arg2[%c0_10, %c0_11, %c0_12, %c1, %c0_13] : memref<1x1x10x10x128xbf16, #tpu.memory_space<vmem>>, vector<1x1x8x8x128xbf16>
    %12 = vector.shape_cast %11 : vector<1x1x8x8x128xbf16> to vector<8x8x128xbf16>
    %13 = vector.shape_cast %12 : vector<8x8x128xbf16> to vector<64x128xbf16>
    %14 = vector.extract_strided_slice %0 {offsets = [0, 1], sizes = [128, 1], strides = [1, 1]} : vector<128x9xf32> to vector<128x1xf32>
    %15 = vector.broadcast %14 : vector<128x1xf32> to vector<128x128xf32>
    %16 = arith.mulf %1, %15 : vector<128x128xf32>
    %17 = arith.truncf %16 : vector<128x128xf32> to vector<128x128xbf16>
    %cst_14 = arith.constant dense<0.000000e+00> : vector<64x128xf32>
    %18 = tpu.matmul %13, %17, %cst_14 {dimension_numbers = #tpu.dot_dimension_numbers<[1], [0], [0], [1], [0, 0, 1, 1], [], []>} : vector<64x128xbf16>, vector<128x128xbf16>, vector<64x128xf32> -> vector<64x128xf32>
    %c0_15 = arith.constant 0 : index
    %c0_16 = arith.constant 0 : index
    %19 = vector.load %arg7[%c0_15, %c0_16] : memref<64x128xf32, #tpu.memory_space<vmem>>, vector<64x128xf32>
    %20 = arith.addf %19, %18 : vector<64x128xf32>
    %c0_17 = arith.constant 0 : index
    %c0_18 = arith.constant 0 : index
    %21 = vector.load %arg7[%c0_17, %c0_18] : memref<64x128xf32, #tpu.memory_space<vmem>>, vector<64x128xf32>
    tpu.vector_store %arg7[%c0_17, %c0_18], %20 {strides = array<i32>} : memref<64x128xf32, #tpu.memory_space<vmem>>, vector<64x128xf32>,
    %c0_19 = arith.constant 0 : index
    %c0_20 = arith.constant 0 : index
    %c0_21 = arith.constant 0 : index
    %c2 = arith.constant 2 : index
    %c0_22 = arith.constant 0 : index
    %22 = vector.load %arg2[%c0_19, %c0_20, %c0_21, %c2, %c0_22] : memref<1x1x10x10x128xbf16, #tpu.memory_space<vmem>>, vector<1x1x8x8x128xbf16>
    %23 = vector.shape_cast %22 : vector<1x1x8x8x128xbf16> to vector<8x8x128xbf16>
    %24 = vector.shape_cast %23 : vector<8x8x128xbf16> to vector<64x128xbf16>
    %25 = vector.extract_strided_slice %0 {offsets = [0, 2], sizes = [128, 1], strides = [1, 1]} : vector<128x9xf32> to vector<128x1xf32>
    %26 = vector.broadcast %25 : vector<128x1xf32> to vector<128x128xf32>
    %27 = arith.mulf %1, %26 : vector<128x128xf32>
    %28 = arith.truncf %27 : vector<128x128xf32> to vector<128x128xbf16>
    %cst_23 = arith.constant dense<0.000000e+00> : vector<64x128xf32>
    %29 = tpu.matmul %24, %28, %cst_23 {dimension_numbers = #tpu.dot_dimension_numbers<[1], [0], [0], [1], [0, 0, 1, 1], [], []>} : vector<64x128xbf16>, vector<128x128xbf16>, vector<64x128xf32> -> vector<64x128xf32>
    %c0_24 = arith.constant 0 : index
    %c0_25 = arith.constant 0 : index
    %30 = vector.load %arg7[%c0_24, %c0_25] : memref<64x128xf32, #tpu.memory_space<vmem>>, vector<64x128xf32>
    %31 = arith.addf %30, %29 : vector<64x128xf32>
    %c0_26 = arith.constant 0 : index
    %c0_27 = arith.constant 0 : index
    %32 = vector.load %arg7[%c0_26, %c0_27] : memref<64x128xf32, #tpu.memory_space<vmem>>, vector<64x128xf32>
    tpu.vector_store %arg7[%c0_26, %c0_27], %31 {strides = array<i32>} : memref<64x128xf32, #tpu.memory_space<vmem>>, vector<64x128xf32>,
    %c0_28 = arith.constant 0 : index
    %c0_29 = arith.constant 0 : index
    %c1_30 = arith.constant 1 : index
    %c0_31 = arith.constant 0 : index
    %c0_32 = arith.constant 0 : index
    %33 = vector.load %arg2[%c0_28, %c0_29, %c1_30, %c0_31, %c0_32] : memref<1x1x10x10x128xbf16, #tpu.memory_space<vmem>>, vector<1x1x8x8x128xbf16>
    %34 = vector.shape_cast %33 : vector<1x1x8x8x128xbf16> to vector<8x8x128xbf16>
    %35 = vector.shape_cast %34 : vector<8x8x128xbf16> to vector<64x128xbf16>
    %36 = vector.extract_strided_slice %0 {offsets = [0, 3], sizes = [128, 1], strides = [1, 1]} : vector<128x9xf32> to vector<128x1xf32>
    %37 = vector.broadcast %36 : vector<128x1xf32> to vector<128x128xf32>
    %38 = arith.mulf %1, %37 : vector<128x128xf32>
    %39 = arith.truncf %38 : vector<128x128xf32> to vector<128x128xbf16>
    %cst_33 = arith.constant dense<0.000000e+00> : vector<64x128xf32>
    %40 = tpu.matmul %35, %39, %cst_33 {dimension_numbers = #tpu.dot_dimension_numbers<[1], [0], [0], [1], [0, 0, 1, 1], [], []>} : vector<64x128xbf16>, vector<128x128xbf16>, vector<64x128xf32> -> vector<64x128xf32>
    %c0_34 = arith.constant 0 : index
    %c0_35 = arith.constant 0 : index
    %41 = vector.load %arg7[%c0_34, %c0_35] : memref<64x128xf32, #tpu.memory_space<vmem>>, vector<64x128xf32>
    %42 = arith.addf %41, %40 : vector<64x128xf32>
    %c0_36 = arith.constant 0 : index
    %c0_37 = arith.constant 0 : index
    %43 = vector.load %arg7[%c0_36, %c0_37] : memref<64x128xf32, #tpu.memory_space<vmem>>, vector<64x128xf32>
    tpu.vector_store %arg7[%c0_36, %c0_37], %42 {strides = array<i32>} : memref<64x128xf32, #tpu.memory_space<vmem>>, vector<64x128xf32>,
    %c0_38 = arith.constant 0 : index
    %c0_39 = arith.constant 0 : index
    %c1_40 = arith.constant 1 : index
    %c1_41 = arith.constant 1 : index
    %c0_42 = arith.constant 0 : index
    %44 = vector.load %arg2[%c0_38, %c0_39, %c1_40, %c1_41, %c0_42] : memref<1x1x10x10x128xbf16, #tpu.memory_space<vmem>>, vector<1x1x8x8x128xbf16>
    %45 = vector.shape_cast %44 : vector<1x1x8x8x128xbf16> to vector<8x8x128xbf16>
    %46 = vector.shape_cast %45 : vector<8x8x128xbf16> to vector<64x128xbf16>
    %47 = vector.extract_strided_slice %0 {offsets = [0, 4], sizes = [128, 1], strides = [1, 1]} : vector<128x9xf32> to vector<128x1xf32>
    %48 = vector.broadcast %47 : vector<128x1xf32> to vector<128x128xf32>
    %49 = arith.mulf %1, %48 : vector<128x128xf32>
    %50 = arith.truncf %49 : vector<128x128xf32> to vector<128x128xbf16>
    %cst_43 = arith.constant dense<0.000000e+00> : vector<64x128xf32>
    %51 = tpu.matmul %46, %50, %cst_43 {dimension_numbers = #tpu.dot_dimension_numbers<[1], [0], [0], [1], [0, 0, 1, 1], [], []>} : vector<64x128xbf16>, vector<128x128xbf16>, vector<64x128xf32> -> vector<64x128xf32>
    %c0_44 = arith.constant 0 : index
    %c0_45 = arith.constant 0 : index
    %52 = vector.load %arg7[%c0_44, %c0_45] : memref<64x128xf32, #tpu.memory_space<vmem>>, vector<64x128xf32>
    %53 = arith.addf %52, %51 : vector<64x128xf32>
    %c0_46 = arith.constant 0 : index
    %c0_47 = arith.constant 0 : index
    %54 = vector.load %arg7[%c0_46, %c0_47] : memref<64x128xf32, #tpu.memory_space<vmem>>, vector<64x128xf32>
    tpu.vector_store %arg7[%c0_46, %c0_47], %53 {strides = array<i32>} : memref<64x128xf32, #tpu.memory_space<vmem>>, vector<64x128xf32>,
    %c0_48 = arith.constant 0 : index
    %c0_49 = arith.constant 0 : index
    %c1_50 = arith.constant 1 : index
    %c2_51 = arith.constant 2 : index
    %c0_52 = arith.constant 0 : index
    %55 = vector.load %arg2[%c0_48, %c0_49, %c1_50, %c2_51, %c0_52] : memref<1x1x10x10x128xbf16, #tpu.memory_space<vmem>>, vector<1x1x8x8x128xbf16>
    %56 = vector.shape_cast %55 : vector<1x1x8x8x128xbf16> to vector<8x8x128xbf16>
    %57 = vector.shape_cast %56 : vector<8x8x128xbf16> to vector<64x128xbf16>
    %58 = vector.extract_strided_slice %0 {offsets = [0, 5], sizes = [128, 1], strides = [1, 1]} : vector<128x9xf32> to vector<128x1xf32>
    %59 = vector.broadcast %58 : vector<128x1xf32> to vector<128x128xf32>
    %60 = arith.mulf %1, %59 : vector<128x128xf32>
    %61 = arith.truncf %60 : vector<128x128xf32> to vector<128x128xbf16>
    %cst_53 = arith.constant dense<0.000000e+00> : vector<64x128xf32>
    %62 = tpu.matmul %57, %61, %cst_53 {dimension_numbers = #tpu.dot_dimension_numbers<[1], [0], [0], [1], [0, 0, 1, 1], [], []>} : vector<64x128xbf16>, vector<128x128xbf16>, vector<64x128xf32> -> vector<64x128xf32>
    %c0_54 = arith.constant 0 : index
    %c0_55 = arith.constant 0 : index
    %63 = vector.load %arg7[%c0_54, %c0_55] : memref<64x128xf32, #tpu.memory_space<vmem>>, vector<64x128xf32>
    %64 = arith.addf %63, %62 : vector<64x128xf32>
    %c0_56 = arith.constant 0 : index
    %c0_57 = arith.constant 0 : index
    %65 = vector.load %arg7[%c0_56, %c0_57] : memref<64x128xf32, #tpu.memory_space<vmem>>, vector<64x128xf32>
    tpu.vector_store %arg7[%c0_56, %c0_57], %64 {strides = array<i32>} : memref<64x128xf32, #tpu.memory_space<vmem>>, vector<64x128xf32>,
    %c0_58 = arith.constant 0 : index
    %c0_59 = arith.constant 0 : index
    %c2_60 = arith.constant 2 : index
    %c0_61 = arith.constant 0 : index
    %c0_62 = arith.constant 0 : index
    %66 = vector.load %arg2[%c0_58, %c0_59, %c2_60, %c0_61, %c0_62] : memref<1x1x10x10x128xbf16, #tpu.memory_space<vmem>>, vector<1x1x8x8x128xbf16>
    %67 = vector.shape_cast %66 : vector<1x1x8x8x128xbf16> to vector<8x8x128xbf16>
    %68 = vector.shape_cast %67 : vector<8x8x128xbf16> to vector<64x128xbf16>
    %69 = vector.extract_strided_slice %0 {offsets = [0, 6], sizes = [128, 1], strides = [1, 1]} : vector<128x9xf32> to vector<128x1xf32>
    %70 = vector.broadcast %69 : vector<128x1xf32> to vector<128x128xf32>
    %71 = arith.mulf %1, %70 : vector<128x128xf32>
    %72 = arith.truncf %71 : vector<128x128xf32> to vector<128x128xbf16>
    %cst_63 = arith.constant dense<0.000000e+00> : vector<64x128xf32>
    %73 = tpu.matmul %68, %72, %cst_63 {dimension_numbers = #tpu.dot_dimension_numbers<[1], [0], [0], [1], [0, 0, 1, 1], [], []>} : vector<64x128xbf16>, vector<128x128xbf16>, vector<64x128xf32> -> vector<64x128xf32>
    %c0_64 = arith.constant 0 : index
    %c0_65 = arith.constant 0 : index
    %74 = vector.load %arg7[%c0_64, %c0_65] : memref<64x128xf32, #tpu.memory_space<vmem>>, vector<64x128xf32>
    %75 = arith.addf %74, %73 : vector<64x128xf32>
    %c0_66 = arith.constant 0 : index
    %c0_67 = arith.constant 0 : index
    %76 = vector.load %arg7[%c0_66, %c0_67] : memref<64x128xf32, #tpu.memory_space<vmem>>, vector<64x128xf32>
    tpu.vector_store %arg7[%c0_66, %c0_67], %75 {strides = array<i32>} : memref<64x128xf32, #tpu.memory_space<vmem>>, vector<64x128xf32>,
    %c0_68 = arith.constant 0 : index
    %c0_69 = arith.constant 0 : index
    %c2_70 = arith.constant 2 : index
    %c1_71 = arith.constant 1 : index
    %c0_72 = arith.constant 0 : index
    %77 = vector.load %arg2[%c0_68, %c0_69, %c2_70, %c1_71, %c0_72] : memref<1x1x10x10x128xbf16, #tpu.memory_space<vmem>>, vector<1x1x8x8x128xbf16>
    %78 = vector.shape_cast %77 : vector<1x1x8x8x128xbf16> to vector<8x8x128xbf16>
    %79 = vector.shape_cast %78 : vector<8x8x128xbf16> to vector<64x128xbf16>
    %80 = vector.extract_strided_slice %0 {offsets = [0, 7], sizes = [128, 1], strides = [1, 1]} : vector<128x9xf32> to vector<128x1xf32>
    %81 = vector.broadcast %80 : vector<128x1xf32> to vector<128x128xf32>
    %82 = arith.mulf %1, %81 : vector<128x128xf32>
    %83 = arith.truncf %82 : vector<128x128xf32> to vector<128x128xbf16>
    %cst_73 = arith.constant dense<0.000000e+00> : vector<64x128xf32>
    %84 = tpu.matmul %79, %83, %cst_73 {dimension_numbers = #tpu.dot_dimension_numbers<[1], [0], [0], [1], [0, 0, 1, 1], [], []>} : vector<64x128xbf16>, vector<128x128xbf16>, vector<64x128xf32> -> vector<64x128xf32>
    %c0_74 = arith.constant 0 : index
    %c0_75 = arith.constant 0 : index
    %85 = vector.load %arg7[%c0_74, %c0_75] : memref<64x128xf32, #tpu.memory_space<vmem>>, vector<64x128xf32>
    %86 = arith.addf %85, %84 : vector<64x128xf32>
    %c0_76 = arith.constant 0 : index
    %c0_77 = arith.constant 0 : index
    %87 = vector.load %arg7[%c0_76, %c0_77] : memref<64x128xf32, #tpu.memory_space<vmem>>, vector<64x128xf32>
    tpu.vector_store %arg7[%c0_76, %c0_77], %86 {strides = array<i32>} : memref<64x128xf32, #tpu.memory_space<vmem>>, vector<64x128xf32>,
    %c0_78 = arith.constant 0 : index
    %c0_79 = arith.constant 0 : index
    %c2_80 = arith.constant 2 : index
    %c2_81 = arith.constant 2 : index
    %c0_82 = arith.constant 0 : index
    %88 = vector.load %arg2[%c0_78, %c0_79, %c2_80, %c2_81, %c0_82] : memref<1x1x10x10x128xbf16, #tpu.memory_space<vmem>>, vector<1x1x8x8x128xbf16>
    %89 = vector.shape_cast %88 : vector<1x1x8x8x128xbf16> to vector<8x8x128xbf16>
    %90 = vector.shape_cast %89 : vector<8x8x128xbf16> to vector<64x128xbf16>
    %91 = vector.extract_strided_slice %0 {offsets = [0, 8], sizes = [128, 1], strides = [1, 1]} : vector<128x9xf32> to vector<128x1xf32>
    %92 = vector.broadcast %91 : vector<128x1xf32> to vector<128x128xf32>
    %93 = arith.mulf %1, %92 : vector<128x128xf32>
    %94 = arith.truncf %93 : vector<128x128xf32> to vector<128x128xbf16>
    %cst_83 = arith.constant dense<0.000000e+00> : vector<64x128xf32>
    %95 = tpu.matmul %90, %94, %cst_83 {dimension_numbers = #tpu.dot_dimension_numbers<[1], [0], [0], [1], [0, 0, 1, 1], [], []>} : vector<64x128xbf16>, vector<128x128xbf16>, vector<64x128xf32> -> vector<64x128xf32>
    %c0_84 = arith.constant 0 : index
    %c0_85 = arith.constant 0 : index
    %96 = vector.load %arg7[%c0_84, %c0_85] : memref<64x128xf32, #tpu.memory_space<vmem>>, vector<64x128xf32>
    %97 = arith.addf %96, %95 : vector<64x128xf32>
    %c0_86 = arith.constant 0 : index
    %c0_87 = arith.constant 0 : index
    %98 = vector.load %arg7[%c0_86, %c0_87] : memref<64x128xf32, #tpu.memory_space<vmem>>, vector<64x128xf32>
    tpu.vector_store %arg7[%c0_86, %c0_87], %97 {strides = array<i32>} : memref<64x128xf32, #tpu.memory_space<vmem>>, vector<64x128xf32>,
    %c0_88 = arith.constant 0 : index
    %c0_89 = arith.constant 0 : index
    %99 = vector.load %arg7[%c0_88, %c0_89] : memref<64x128xf32, #tpu.memory_space<vmem>>, vector<64x128xf32>
    %100 = arith.truncf %99 : vector<64x128xf32> to vector<64x128xbf16>
    %c0_90 = arith.constant 0 : index
    %c0_91 = arith.constant 0 : index
    %c0_92 = arith.constant 0 : index
    %c0_93 = arith.constant 0 : index
    %101 = vector.load %arg5[%c0_90, %c0_91, %c0_92, %c0_93] : memref<1x1x64x128xbf16, #tpu.memory_space<vmem>>, vector<1x1x64x128xbf16>
    %102 = vector.shape_cast %101 : vector<1x1x64x128xbf16> to vector<64x128xbf16>
    %103 = vector.shape_cast %100 : vector<64x128xbf16> to vector<1x1x64x128xbf16>
    tpu.vector_store %arg5[%c0_90, %c0_91, %c0_92, %c0_93], %103 {strides = array<i32>} : memref<1x1x64x128xbf16, #tpu.memory_space<vmem>>, vector<1x1x64x128xbf16>,
    %cst_94 = arith.constant dense<0.000000e+00> : vector<128xf32>
    %104 = vector.multi_reduction <add>, %99, %cst_94 [0] : vector<64x128xf32> to vector<128xf32>
    %105 = vector.shape_cast %104 : vector<128xf32> to vector<1x128xf32>
    %106 = arith.mulf %99, %99 : vector<64x128xf32>
    %cst_95 = arith.constant dense<0.000000e+00> : vector<128xf32>
    %107 = vector.multi_reduction <add>, %106, %cst_95 [0] : vector<64x128xf32> to vector<128xf32>
    %108 = vector.shape_cast %107 : vector<128xf32> to vector<1x128xf32>
    %109 = tpu.concatenate %105, %108 in 1 : vector<1x128xf32>, vector<1x128xf32> -> vector<1x256xf32>
    %c0_96 = arith.constant 0 : index
    %c0_97 = arith.constant 0 : index
    %c0_98 = arith.constant 0 : index
    %c0_99 = arith.constant 0 : index
    %110 = vector.load %arg6[%c0_96, %c0_97, %c0_98, %c0_99] : memref<1x1x1x256xf32, #tpu.memory_space<vmem>>, vector<1x1x1x256xf32>
    %111 = vector.shape_cast %110 : vector<1x1x1x256xf32> to vector<1x256xf32>
    %112 = vector.shape_cast %109 : vector<1x256xf32> to vector<1x1x1x256xf32>
    tpu.vector_store %arg6[%c0_96, %c0_97, %c0_98, %c0_99], %112 {strides = array<i32>} : memref<1x1x1x256xf32, #tpu.memory_space<vmem>>, vector<1x1x1x256xf32>,
    return
  }
  func.func @transform_0(%arg0: i32, %arg1: i32) -> (i32, i32, i32, i32, i32) {
    %c0_i32 = arith.constant 0 : i32
    %c0_i32_0 = arith.constant 0 : i32
    %c0_i32_1 = arith.constant 0 : i32
    %c0_i32_2 = arith.constant 0 : i32
    return %arg0, %arg1, %c0_i32, %c0_i32_0, %c0_i32_1 : i32, i32, i32, i32, i32
  }
  func.func @transform_1(%arg0: i32, %arg1: i32) -> (i32, i32) {
    %c0_i32 = arith.constant 0 : i32
    %c0_i32_0 = arith.constant 0 : i32
    %c0_i32_1 = arith.constant 0 : i32
    return %c0_i32, %c0_i32_0 : i32, i32
  }
  func.func @transform_2(%arg0: i32, %arg1: i32) -> (i32, i32) {
    %c0_i32 = arith.constant 0 : i32
    %c0_i32_0 = arith.constant 0 : i32
    %c0_i32_1 = arith.constant 0 : i32
    return %c0_i32, %c0_i32_0 : i32, i32
  }
  func.func @transform_3(%arg0: i32, %arg1: i32) -> (i32, i32, i32, i32) {
    %c0_i32 = arith.constant 0 : i32
    %c0_i32_0 = arith.constant 0 : i32
    %c0_i32_1 = arith.constant 0 : i32
    return %arg0, %arg1, %c0_i32, %c0_i32_0 : i32, i32, i32, i32
  }
  func.func @transform_4(%arg0: i32, %arg1: i32) -> (i32, i32, i32, i32) {
    %c0_i32 = arith.constant 0 : i32
    %c0_i32_0 = arith.constant 0 : i32
    %c0_i32_1 = arith.constant 0 : i32
    return %arg0, %arg1, %c0_i32, %c0_i32_0 : i32, i32, i32, i32
  }
}

module attributes {stable_mosaic.version = 11 : i64} {
  func.func @_bn_relu_kernel(%arg0: i32, %arg1: i32, %arg2: memref<1x1x64x128xbf16, #tpu.memory_space<vmem>>, %arg3: memref<1x128xf32, #tpu.memory_space<vmem>>, %arg4: memref<1x128xf32, #tpu.memory_space<vmem>>, %arg5: memref<1x1x64x128xf32, #tpu.memory_space<vmem>>) attributes {dimension_semantics = [#tpu.dimension_semantics<parallel>, #tpu.dimension_semantics<parallel>], iteration_bounds = array<i64: 2, 1>, scalar_prefetch = 0 : i64, scratch_operands = 0 : i64, tpu.core_type = #tpu.core_type<tc>, window_params = [{transform_indices = @transform_0, window_bounds = array<i64: 1, 1, 64, 128>}, {pipeline_mode = #tpu.pipeline_mode<synchronous>, transform_indices = @transform_1, window_bounds = array<i64: 1, 128>}, {pipeline_mode = #tpu.pipeline_mode<synchronous>, transform_indices = @transform_2, window_bounds = array<i64: 1, 128>}, {transform_indices = @transform_3, window_bounds = array<i64: 1, 1, 64, 128>}]} {
    %c0 = arith.constant 0 : index
    %c0_0 = arith.constant 0 : index
    %c0_1 = arith.constant 0 : index
    %c0_2 = arith.constant 0 : index
    %0 = vector.load %arg2[%c0, %c0_0, %c0_1, %c0_2] : memref<1x1x64x128xbf16, #tpu.memory_space<vmem>>, vector<1x1x64x128xbf16>
    %1 = vector.shape_cast %0 : vector<1x1x64x128xbf16> to vector<64x128xbf16>
    %2 = arith.extf %1 : vector<64x128xbf16> to vector<64x128xf32>
    %c0_3 = arith.constant 0 : index
    %c0_4 = arith.constant 0 : index
    %3 = vector.load %arg3[%c0_3, %c0_4] : memref<1x128xf32, #tpu.memory_space<vmem>>, vector<1x128xf32>
    %4 = vector.broadcast %3 : vector<1x128xf32> to vector<64x128xf32>
    %5 = arith.mulf %2, %4 : vector<64x128xf32>
    %c0_5 = arith.constant 0 : index
    %c0_6 = arith.constant 0 : index
    %6 = vector.load %arg4[%c0_5, %c0_6] : memref<1x128xf32, #tpu.memory_space<vmem>>, vector<1x128xf32>
    %7 = vector.broadcast %6 : vector<1x128xf32> to vector<64x128xf32>
    %8 = arith.addf %5, %7 : vector<64x128xf32>
    %cst = arith.constant 0.000000e+00 : f32
    %9 = vector.broadcast %cst : f32 to vector<64x128xf32>
    %10 = arith.maximumf %8, %9 : vector<64x128xf32>
    %c0_7 = arith.constant 0 : index
    %c0_8 = arith.constant 0 : index
    %c0_9 = arith.constant 0 : index
    %c0_10 = arith.constant 0 : index
    %11 = vector.load %arg5[%c0_7, %c0_8, %c0_9, %c0_10] : memref<1x1x64x128xf32, #tpu.memory_space<vmem>>, vector<1x1x64x128xf32>
    %12 = vector.shape_cast %11 : vector<1x1x64x128xf32> to vector<64x128xf32>
    %13 = vector.shape_cast %10 : vector<64x128xf32> to vector<1x1x64x128xf32>
    tpu.vector_store %arg5[%c0_7, %c0_8, %c0_9, %c0_10], %13 {strides = array<i32>} : memref<1x1x64x128xf32, #tpu.memory_space<vmem>>, vector<1x1x64x128xf32>,
    return
  }
  func.func @transform_0(%arg0: i32, %arg1: i32) -> (i32, i32, i32, i32) {
    %c0_i32 = arith.constant 0 : i32
    %c0_i32_0 = arith.constant 0 : i32
    %c0_i32_1 = arith.constant 0 : i32
    return %arg0, %arg1, %c0_i32, %c0_i32_0 : i32, i32, i32, i32
  }
  func.func @transform_1(%arg0: i32, %arg1: i32) -> (i32, i32) {
    %c0_i32 = arith.constant 0 : i32
    %c0_i32_0 = arith.constant 0 : i32
    %c0_i32_1 = arith.constant 0 : i32
    return %c0_i32, %c0_i32_0 : i32, i32
  }
  func.func @transform_2(%arg0: i32, %arg1: i32) -> (i32, i32) {
    %c0_i32 = arith.constant 0 : i32
    %c0_i32_0 = arith.constant 0 : i32
    %c0_i32_1 = arith.constant 0 : i32
    return %c0_i32, %c0_i32_0 : i32, i32
  }
  func.func @transform_3(%arg0: i32, %arg1: i32) -> (i32, i32, i32, i32) {
    %c0_i32 = arith.constant 0 : i32
    %c0_i32_0 = arith.constant 0 : i32
    %c0_i32_1 = arith.constant 0 : i32
    return %arg0, %arg1, %c0_i32, %c0_i32_0 : i32, i32, i32, i32
  }
}

</mosaic_0001>

<bundles_post_ra>
// kernel: sepconv_forward.7
= control target key start
LH: loop header
LB: loop body
LE: loop exit
PB: predicated region body
PF: predicated region fallthrough
CT: control target
= control target key end

     0   :  { %s463_s12 = smov 0   ;;  %s465_s13 = smov 0   ;;  %s506_s0 = inlined_call_operand.vmem [shape: bf16[2,1,64,128], index: 0, kind: input, shape index: {}]   ;;  %s507_s1 = inlined_call_operand.vmem [shape: f32[1,128], index: 1, kind: input, shape index: {}]   ;;  %s508_s2 = inlined_call_operand.vmem [shape: f32[1,128], index: 2, kind: input, shape index: {}]   ;;  %s509_s3 = inlined_call_operand.vmem [shape: f32[2,1,64,128], index: 3, kind: output, shape index: {}]  }
   0x1   :  { %s467_s14 = smov 0  }
   0x2 LB: > { %s25_s15 = sadd.s32 1, %s437_s13  ;;  %p365_p0 = scmp.ge.s32.totalorder %s441_s14, 1  ;;  %s441_s14 = sphi %s467_s14, %s13_s14   ;;  %s437_s13 = sphi %s465_s13, %s511_s13   ;;  %s433_s12 = sphi %s463_s12, %s510_s12  }
   0x3   : > { %p27_p1 = scmp.ge.s32.totalorder %s25_s15, 2  ;;  %p157_p2 = scmp.lt.s32.totalorder %s441_s14, 3 }
   0x5   : > { %s513_s15 = smov (%p27_p1, %s25_s15), 0  ;;  %p158_p3 = pnand %p365_p0, %p157_p2 }
   0x6   : > { %p189_p4 = scmp.lt.s32.totalorder (!%p158_p3), %s433_s12, 1  ;;  %v370_v0 = vld [vmem:[%s507_s1] ss:$0 sm:$0xff] (!%p158_p3) }
   0x7   : > { %161 = sbr.rel (%p158_p3) target bundleno = 30 (0x1e), region = 32  ;;  %v371_v9 = vld [vmem:[%s508_s2] ss:$0 sm:$0xff] (!%p158_p3) }
   0xe   : > { %s515_s12 = smov (!%p189_p4, %s433_s12), 1 }
   0xf   : > { %s374_s16 = sshll.u32 %s515_s12, 5  ;;  %s375_s24 = sshll.u32 %s515_s12, 6 }
  0x10   : > { %s197_s19 = scalar_lea.vmem %s506_s0, %s374_s16  ;;  %s206_s27 = scalar_lea.vmem %s509_s3, %s375_s24 }
  0x11   : > { %v377_v1 = vld [vmem:[%s197_s19] sm:$0xff]   ;;  %v392_v2 = vld [vmem:[%s197_s19 + $0x8] sm:$0xff]   ;;  %v393_v3 = vld [vmem:[%s197_s19 + $0x10] sm:$0xff]  }
  0x12   : > { %v378_v4 = vunpack.c.l.bf16 %v377_v1  ;;  %v379_v5 = vunpack.c.h.bf16 %v377_v1  ;;  %v382_v6 = vunpack.c.l.bf16 %v392_v2  ;;  %v383_v7 = vunpack.c.h.bf16 %v392_v2  ;;  %v394_v8 = vld [vmem:[%s197_s19 + $0x18] sm:$0xff]  }
  0x13   : > { %v386_v10 = vunpack.c.l.bf16 %v393_v3  ;;  %v387_v11 = vunpack.c.h.bf16 %v393_v3  ;;  %v390_v12 = vunpack.c.l.bf16 %v394_v8  ;;  %v391_v13 = vunpack.c.h.bf16 %v394_v8 }
  0x14   : > { %v230_v14 = vmul.f32 %v378_v4, %v370_v0  ;;  %v231_v15 = vmul.f32 %v379_v5, %v370_v0  ;;  %v232_v16 = vmul.f32 %v382_v6, %v370_v0  ;;  %v233_v17 = vmul.f32 %v383_v7, %v370_v0 }
  0x15   : > { %v234_v18 = vmul.f32 %v386_v10, %v370_v0  ;;  %v235_v19 = vmul.f32 %v387_v11, %v370_v0  ;;  %v236_v20 = vmul.f32 %v390_v12, %v370_v0  ;;  %v237_v21 = vmul.f32 %v391_v13, %v370_v0 }
  0x16   : > { %v245_v22 = vadd.f32 %v371_v9, %v230_v14  ;;  %v246_v23 = vadd.f32 %v371_v9, %v231_v15  ;;  %v247_v24 = vadd.f32 %v371_v9, %v232_v16  ;;  %v248_v25 = vadd.f32 %v371_v9, %v233_v17 }
  0x17   : > { %v249_v26 = vadd.f32 %v371_v9, %v234_v18  ;;  %v250_v27 = vadd.f32 %v371_v9, %v235_v19  ;;  %v251_v28 = vadd.f32 %v371_v9, %v236_v20  ;;  %v252_v29 = vadd.f32 %v371_v9, %v237_v21 }
  0x18   : > { %v253_v30 = vmax.f32 %v245_v22, 0.0  ;;  %v254_v31 = vmax.f32 %v246_v23, 0.0  ;;  %v255_v32 = vmax.f32 %v247_v24, 0.0  ;;  %v256_v33 = vmax.f32 %v248_v25, 0.0 }
  0x19   : > { %v257_v34 = vmax.f32 %v249_v26, 0.0  ;;  %v258_v35 = vmax.f32 %v250_v27, 0.0  ;;  %v259_v36 = vmax.f32 %v251_v28, 0.0  ;;  %v260_v37 = vmax.f32 %v252_v29, 0.0 }
  0x1a   : > { %261 = vst [vmem:[%s206_s27] sm:$0xff] %v253_v30  ;;  %262 = vst [vmem:[%s206_s27 + $0x8] sm:$0xff] %v254_v31 }
  0x1b   : > { %263 = vst [vmem:[%s206_s27 + $0x10] sm:$0xff] %v255_v32  ;;  %264 = vst [vmem:[%s206_s27 + $0x18] sm:$0xff] %v256_v33 }
  0x1c   : > { %265 = vst [vmem:[%s206_s27 + $0x20] sm:$0xff] %v257_v34  ;;  %266 = vst [vmem:[%s206_s27 + $0x28] sm:$0xff] %v258_v35 }
  0x1d   : > { %267 = vst [vmem:[%s206_s27 + $0x30] sm:$0xff] %v259_v36  ;;  %268 = vst [vmem:[%s206_s27 + $0x38] sm:$0xff] %v260_v37 }
  0x1e PF: > { %s13_s14 = sadd.s32 1, %s441_s14   ;;  %s510_s12 = smov %s437_s13 }
  0x1f   : > { %p10_p5 = scmp.ge.s32.totalorder %s13_s14, 4   ;;  %s511_s13 = smov %s513_s15 }
  0x21   :  { %12 = sbr.rel (!%p10_p5) target bundleno = 2 (0x2), region = 62 }

// kernel: sepconv_forward.5
= control target key start
LH: loop header
LB: loop body
LE: loop exit
PB: predicated region body
PF: predicated region fallthrough
CT: control target
= control target key end

     0   :  { %s534_s12 = smov 0   ;;  %s536_s13 = smov 0   ;;  %s580_s0 = inlined_call_operand.vmem [shape: bf16[2,1,64,128], index: 0, kind: input, shape index: {}]   ;;  %s581_s1 = inlined_call_operand.vmem [shape: f32[1,128], index: 1, kind: input, shape index: {}]   ;;  %s582_s2 = inlined_call_operand.vmem [shape: f32[1,128], index: 2, kind: input, shape index: {}]   ;;  %s583_s3 = inlined_call_operand.vmem [shape: bf16[2,1,64,128], index: 3, kind: output, shape index: {}]  }
   0x1   :  { %s538_s14 = smov 0  }
   0x2 LB: > { %s25_s15 = sadd.s32 1, %s508_s13  ;;  %p397_p0 = scmp.ge.s32.totalorder %s512_s14, 1  ;;  %s512_s14 = sphi %s538_s14, %s13_s14   ;;  %s508_s13 = sphi %s536_s13, %s585_s13   ;;  %s504_s12 = sphi %s534_s12, %s584_s12  }
   0x3   : > { %p27_p1 = scmp.ge.s32.totalorder %s25_s15, 2  ;;  %p157_p2 = scmp.lt.s32.totalorder %s512_s14, 3 }
   0x5   : > { %s587_s15 = smov (%p27_p1, %s25_s15), 0  ;;  %p158_p3 = pnand %p397_p0, %p157_p2 }
   0x6   : > { %p189_p4 = scmp.lt.s32.totalorder (!%p158_p3), %s504_s12, 1  ;;  %v402_v0 = vld [vmem:[%s581_s1] ss:$0 sm:$0xff] (!%p158_p3) }
   0x7   : > { %161 = sbr.rel (%p158_p3) target bundleno = 30 (0x1e), region = 32  ;;  %v403_v9 = vld [vmem:[%s582_s2] ss:$0 sm:$0xff] (!%p158_p3) }
   0xe   : > { %s589_s12 = smov (!%p189_p4, %s504_s12), 1 }
   0xf   : > { %s414_s16 = sshll.u32 %s589_s12, 5 }
  0x10   : > { %s197_s19 = scalar_lea.vmem %s580_s0, %s414_s16  ;;  %s206_s26 = scalar_lea.vmem %s583_s3, %s414_s16 }
  0x11   : > { %v425_v1 = vld [vmem:[%s197_s19] sm:$0xff]   ;;  %v460_v2 = vld [vmem:[%s197_s19 + $0x8] sm:$0xff]   ;;  %v461_v3 = vld [vmem:[%s197_s19 + $0x10] sm:$0xff]  }
  0x12   : > { %v426_v4 = vunpack.c.l.bf16 %v425_v1  ;;  %v427_v5 = vunpack.c.h.bf16 %v425_v1  ;;  %v430_v6 = vunpack.c.l.bf16 %v460_v2  ;;  %v431_v7 = vunpack.c.h.bf16 %v460_v2  ;;  %v462_v8 = vld [vmem:[%s197_s19 + $0x18] sm:$0xff]  }
  0x13   : > { %v434_v10 = vunpack.c.l.bf16 %v461_v3  ;;  %v435_v11 = vunpack.c.h.bf16 %v461_v3  ;;  %v438_v12 = vunpack.c.l.bf16 %v462_v8  ;;  %v439_v13 = vunpack.c.h.bf16 %v462_v8 }
  0x14   : > { %v230_v14 = vmul.f32 %v426_v4, %v402_v0  ;;  %v231_v15 = vmul.f32 %v427_v5, %v402_v0  ;;  %v232_v16 = vmul.f32 %v430_v6, %v402_v0  ;;  %v233_v17 = vmul.f32 %v431_v7, %v402_v0 }
  0x15   : > { %v234_v18 = vmul.f32 %v434_v10, %v402_v0  ;;  %v235_v19 = vmul.f32 %v435_v11, %v402_v0  ;;  %v236_v20 = vmul.f32 %v438_v12, %v402_v0  ;;  %v237_v21 = vmul.f32 %v439_v13, %v402_v0 }
  0x16   : > { %v245_v22 = vadd.f32 %v403_v9, %v230_v14  ;;  %v246_v23 = vadd.f32 %v403_v9, %v231_v15  ;;  %v247_v24 = vadd.f32 %v403_v9, %v232_v16  ;;  %v248_v25 = vadd.f32 %v403_v9, %v233_v17 }
  0x17   : > { %v249_v26 = vadd.f32 %v403_v9, %v234_v18  ;;  %v250_v27 = vadd.f32 %v403_v9, %v235_v19  ;;  %v251_v28 = vadd.f32 %v403_v9, %v236_v20  ;;  %v252_v29 = vadd.f32 %v403_v9, %v237_v21 }
  0x18   : > { %v253_v30 = vmax.f32 %v245_v22, 0.0  ;;  %v254_v31 = vmax.f32 %v246_v23, 0.0  ;;  %v255_v32 = vmax.f32 %v247_v24, 0.0  ;;  %v256_v33 = vmax.f32 %v248_v25, 0.0 }
  0x19   : > { %v257_v34 = vmax.f32 %v249_v26, 0.0  ;;  %v258_v35 = vmax.f32 %v250_v27, 0.0  ;;  %v259_v36 = vmax.f32 %v251_v28, 0.0  ;;  %v260_v37 = vmax.f32 %v252_v29, 0.0 }
  0x1a   : > { %v443_v38 = vpack.c.bf16 %v254_v31, %v253_v30  ;;  %v448_v39 = vpack.c.bf16 %v256_v33, %v255_v32 }
  0x1b   : > { %v453_v40 = vpack.c.bf16 %v258_v35, %v257_v34  ;;  %v458_v41 = vpack.c.bf16 %v260_v37, %v259_v36 }
  0x1c   : > { %444 = vst [vmem:[%s206_s26] sm:$0xff] %v443_v38   ;;  %463 = vst [vmem:[%s206_s26 + $0x8] sm:$0xff] %v448_v39  }
  0x1d   : > { %464 = vst [vmem:[%s206_s26 + $0x10] sm:$0xff] %v453_v40   ;;  %465 = vst [vmem:[%s206_s26 + $0x18] sm:$0xff] %v458_v41  }
  0x1e PF: > { %s13_s14 = sadd.s32 1, %s512_s14   ;;  %s584_s12 = smov %s508_s13 }
  0x1f   : > { %p10_p5 = scmp.ge.s32.totalorder %s13_s14, 4   ;;  %s585_s13 = smov %s587_s15 }
  0x21   :  { %12 = sbr.rel (!%p10_p5) target bundleno = 2 (0x2), region = 62 }

// kernel: sepconv_forward.4
= control target key start
LH: loop header
LB: loop body
LE: loop exit
PB: predicated region body
PF: predicated region fallthrough
CT: control target
= control target key end

     0   :  { %s3743_s24 = smov 0   ;;  %s3745_s25 = smov 0   ;;  %s4612_s0 = inlined_call_operand.vmem [shape: bf16[2,1,9,9,128], index: 0, kind: input, shape index: {}]   ;;  %s4613_s1 = inlined_call_operand.vmem [shape: bf16[2,1,9,9,128], index: 1, kind: input, shape index: {}]   ;;  %s4614_s2 = inlined_call_operand.vmem [shape: bf16[2,1,9,9,128], index: 2, kind: input, shape index: {}]   ;;  %s4615_s3 = inlined_call_operand.vmem [shape: bf16[2,1,9,9,128], index: 3, kind: input, shape index: {}]   ;;  %s4616_s4 = inlined_call_operand.vmem [shape: f32[128,9], index: 4, kind: input, shape index: {}]   ;;  %s4617_s5 = inlined_call_operand.vmem [shape: f32[128,128], index: 5, kind: input, shape index: {}]   ;;  %s4618_s6 = inlined_call_operand.vmem [shape: bf16[2,1,64,128], index: 6, kind: output, shape index: {0}]   ;;  %s4619_s7 = inlined_call_operand.vmem [shape: f32[2,1,1,256], index: 7, kind: output, shape index: {1}]  }
   0x1   :  { %s3747_s26 = smov 0  }
   0x2 LB: > { %s30_s27 = sadd.s32 1, %s3687_s25  ;;  %p3004_p0 = scmp.ge.s32.totalorder %s3691_s26, 1  ;;  %s3691_s26 = sphi %s3747_s26, %s18_s26   ;;  %s3687_s25 = sphi %s3745_s25, %s4623_s25   ;;  %s3683_s24 = sphi %s3743_s24, %s4622_s24  }
   0x3   : > { %p32_p1 = scmp.ge.s32.totalorder %s30_s27, 2  ;;  %p310_p2 = scmp.lt.s32.totalorder %s3691_s26, 3 }
   0x5   : > { %s4625_s27 = smov (%p32_p1, %s30_s27), 0  ;;  %p311_p3 = pnand %p3004_p0, %p310_p2 }
   0x6   : > { %v3766_v0 = vld [vmem:[%s4616_s4 + $0x10] sm:$0xff] (!%p311_p3)  ;;  %v3771_v1 = vld [vmem:[%s4616_s4] sm:$0xff] (!%p311_p3)  ;;  %v3693_v2 = vmov (!%p311_p3), 0   ;;  %v3778_v3 = vld [vmem:[%s4616_s4 + $0x18] sm:$0xff] (!%p311_p3)  ;;  %v3694_v17 = vmov (!%p311_p3), 1   ;;  %v3695_v18 = vmov (!%p311_p3), 4  }
   0x7   : > { %314 = sbr.rel (%p311_p3) target bundleno = 768 (0x300), region = 44  ;;  %3562 = vset.pattern.permute.xlu1 (!%p311_p3), %v3693_v2  ;;  %3561 = vset.pattern.permute.xlu0 (!%p311_p3), %v3693_v2  ;;  %v3783_v4 = vld [vmem:[%s4616_s4 + $0x8] sm:$0xff] (!%p311_p3)  ;;  %v3795_v6 = vld [vmem:[%s4616_s4 + $0x20] sm:$0xff] (!%p311_p3)  ;;  %v3802_v7 = vld [vmem:[%s4616_s4 + $0x38] sm:$0xff] (!%p311_p3)  ;;  %v3696_v19 = vmov (!%p311_p3), 5   ;;  %p385_p4 = scmp.lt.s32.totalorder (!%p311_p3), %s3683_s24, 1 }
   0x8   : > { %491 = vperm.xlu1 (!%p311_p3), %3562, %v3766_v0   ;;  %481 = vperm.xlu0 (!%p311_p3), %3561, %v3771_v1   ;;  %v3790_v5 = vld [vmem:[%s4616_s4 + $0x28] sm:$0xff] (!%p311_p3)  ;;  %v3807_v8 = vld [vmem:[%s4616_s4 + $0x30] sm:$0xff] (!%p311_p3)  ;;  %v3819_v10 = vld [vmem:[%s4616_s4 + $0x40] sm:$0xff] (!%p311_p3)  ;;  %v3697_v22 = vmov (!%p311_p3), 6   ;;  %v3698_v52 = vmov (!%p311_p3), 2  }
   0x9   : > { %v3814_v9 = vld [vmem:[%s4616_s4 + $0x48] sm:$0xff] (!%p311_p3)  ;;  %v3826_v11 = vld [vmem:[%s4616_s4 + $0x58] sm:$0xff] (!%p311_p3)  ;;  %v3831_v12 = vld [vmem:[%s4616_s4 + $0x50] sm:$0xff] (!%p311_p3)  ;;  %vm905_vm0 = vsmask.f32 (!%p311_p3), 3328 }
   0xa   : > { %v3838_v13 = vld [vmem:[%s4616_s4 + $0x68] sm:$0xff] (!%p311_p3)  ;;  %v3843_v14 = vld [vmem:[%s4616_s4 + $0x60] sm:$0xff] (!%p311_p3)  ;;  %v3850_v15 = vld [vmem:[%s4616_s4 + $0x78] sm:$0xff] (!%p311_p3)  ;;  %vm906_vm1 = vsmask.f32 (!%p311_p3), 7440 }
   0xb   : > { %v3855_v16 = vld [vmem:[%s4616_s4 + $0x70] sm:$0xff] (!%p311_p3)  ;;  %v3940_v24 = vld [vmem:[%s4617_s5] sm:$0xff] (!%p311_p3)  ;;  %v3946_v26 = vld [vmem:[%s4617_s5 + $0x18] sm:$0xff] (!%p311_p3) }
   0xc   : > { %496 = vperm.xlu1 (!%p311_p3), %3562, %v3778_v3   ;;  %486 = vperm.xlu0 (!%p311_p3), %3561, %v3783_v4   ;;  %v3951_v27 = vld [vmem:[%s4617_s5 + $0x8] sm:$0xff] (!%p311_p3)  ;;  %v3957_v29 = vld [vmem:[%s4617_s5 + $0x10] sm:$0xff] (!%p311_p3)  ;;  %v3971_v35 = vld [vmem:[%s4617_s5 + $0x20] sm:$0xff] (!%p311_p3) }
   0xd   : > { %v3966_v34 = vld [vmem:[%s4617_s5 + $0x28] sm:$0xff] (!%p311_p3)  ;;  %v3981_v43 = vld [vmem:[%s4617_s5 + $0x38] sm:$0xff] (!%p311_p3)  ;;  %v3986_v44 = vld [vmem:[%s4617_s5 + $0x30] sm:$0xff] (!%p311_p3) }
   0xe   : > { %s4627_s24 = smov (!%p385_p4, %s3683_s24), 1  ;;  %v3996_v50 = vld [vmem:[%s4617_s5 + $0x48] sm:$0xff]  ;;  %v4001_v51 = vld [vmem:[%s4617_s5 + $0x40] sm:$0xff]  ;;  %v4011_v58 = vld [vmem:[%s4617_s5 + $0x58] sm:$0xff] }
   0xf   : > { %s3526_s18 = smul.u32 72, %s4627_s24  ;;  %v4016_v59 = vld [vmem:[%s4617_s5 + $0x50] sm:$0xff]  ;;  %vm4150_vm2 = vmor %vm905_vm0, %vm906_vm1  ;;  %s3011_s13 = sshll.u32 %s4627_s24, 1 }
  0x10   : > { %506 = vperm.xlu1 %3562, %v3790_v5   ;;  %501 = vperm.xlu0 %3561, %v3795_v6   ;;  %s437_s15 = scalar_lea.vmem %s4619_s7, %s3011_s13 }
  0x11   : > { %s3896_s21 = scalar_lea.vmem %s4615_s3, %s3526_s18  ;;  %s3905_s28 = scalar_lea.vmem %s4612_s0, %s3526_s18 }
  0x12   : > { %v3614_v20 = vld [vmem:[%s3896_s21] ss:$8 sps:$4 sm:$0xff]   ;;  %s3913_s8 = scalar_lea.vmem %s4613_s1, %s3526_s18  ;;  %s3922_s11 = scalar_lea.vmem %s4614_s2, %s3526_s18 }
  0x13   : > { %3342 = vmatprep.mubr.bf16.mxu0 %v3614_v20  ;;  %v3616_v21 = vld [vmem:[%s3905_s28] ss:$8 sps:$4 sm:$0xff]  }
  0x14   : > { %516 = vperm.xlu1 %3562, %v3802_v7   ;;  %511 = vperm.xlu0 %3561, %v3807_v8  }
  0x15   : > { %3246 = vmatprep.mubr.bf16.mxu1 %v3616_v21 }
  0x18   : > { %526 = vperm.xlu1 %3562, %v3814_v9   ;;  %521 = vperm.xlu0 %3561, %v3819_v10  }
  0x1c   : > { %536 = vperm.xlu1 %3562, %v3826_v11   ;;  %531 = vperm.xlu0 %3561, %v3831_v12  }
  0x20   : > { %546 = vperm.xlu1 %3562, %v3838_v13   ;;  %541 = vperm.xlu0 %3561, %v3843_v14  }
  0x24   : > { %556 = vperm.xlu1 %3562, %v3850_v15   ;;  %551 = vperm.xlu0 %3561, %v3855_v16  }
  0x28   : > { %3563 = vset.pattern.permute.xlu1 %v3694_v17  ;;  %3565 = vset.pattern.permute.xlu0 %v3695_v18 }
  0x29   : > { %693 = vperm.xlu1 %3563, %v3783_v4   ;;  %1435 = vperm.xlu0 %3565, %v3783_v4  }
  0x2d   : > { %697 = vperm.xlu1 %3563, %v3766_v0   ;;  %1447 = vperm.xlu0 %3565, %v3795_v6  }
  0x31   : > { %705 = vperm.xlu1 %3563, %v3795_v6   ;;  %1455 = vperm.xlu0 %3565, %v3807_v8  }
  0x35   : > { %713 = vperm.xlu1 %3563, %v3807_v8   ;;  %1463 = vperm.xlu0 %3565, %v3819_v10  }
  0x39   : > { %3564 = vset.pattern.permute.xlu1 %v3695_v18  ;;  %1471 = vperm.xlu0 %3565, %v3831_v12   ;;  %v4025_v18 = vld [vmem:[%s4617_s5 + $0x68] sm:$0xff] }
  0x3a   : > { %1431 = vperm.xlu1 %3564, %v3771_v1  }
  0x3d   : > { %1479 = vperm.xlu0 %3565, %v3843_v14  }
  0x3e   : > { %1439 = vperm.xlu1 %3564, %v3766_v0  }
  0x41   : > { %1487 = vperm.xlu0 %3565, %v3855_v16  }
  0x42   : > { %1443 = vperm.xlu1 %3564, %v3778_v3  }
  0x45   : > { %3566 = vset.pattern.permute.xlu0 %v3696_v19 }
  0x46   : > { %1451 = vperm.xlu1 %3564, %v3790_v5   ;;  %1760 = vperm.xlu0 %3566, %v3771_v1  }
  0x4a   : > { %1459 = vperm.xlu1 %3564, %v3802_v7   ;;  %1772 = vperm.xlu0 %3566, %v3778_v3  }
  0x4e   : > { %1467 = vperm.xlu1 %3564, %v3814_v9   ;;  %1780 = vperm.xlu0 %3566, %v3790_v5  }
  0x52   : > { %1475 = vperm.xlu1 %3564, %v3826_v11   ;;  %1788 = vperm.xlu0 %3566, %v3802_v7  }
  0x56   : > { %1483 = vperm.xlu1 %3564, %v3838_v13   ;;  %1796 = vperm.xlu0 %3566, %v3814_v9  }
  0x5a   : > { %1491 = vperm.xlu1 %3564, %v3850_v15   ;;  %1804 = vperm.xlu0 %3566, %v3826_v11  }
  0x5e   : > { %3567 = vset.pattern.permute.xlu1 %v3696_v19  ;;  %1816 = vperm.xlu0 %3566, %v3855_v16  }
  0x5f   : > { %1764 = vperm.xlu1 %3567, %v3783_v4  }
  0x62   : > { %3571 = vset.pattern.permute.xlu0 %v3694_v17 }
  0x63   : > { %1768 = vperm.xlu1 %3567, %v3766_v0   ;;  %689 = vperm.xlu0 %3571, %v3771_v1  }
  0x67   : > { %1776 = vperm.xlu1 %3567, %v3795_v6   ;;  %701 = vperm.xlu0 %3571, %v3778_v3  }
  0x6b   : > { %1784 = vperm.xlu1 %3567, %v3807_v8   ;;  %709 = vperm.xlu0 %3571, %v3790_v5  }
  0x6f   : > { %1792 = vperm.xlu1 %3567, %v3819_v10   ;;  %717 = vperm.xlu0 %3571, %v3802_v7  }
  0x73   : > { %1800 = vperm.xlu1 %3567, %v3831_v12   ;;  %725 = vperm.xlu0 %3571, %v3814_v9  }
  0x77   : > { %3568 = vset.pattern.permute.xlu1 %v3694_v17  ;;  %729 = vperm.xlu0 %3571, %v3831_v12  }
  0x78   : > { %721 = vperm.xlu1 %3568, %v3819_v10  }
  0x7b   : > { %741 = vperm.xlu0 %3571, %v3838_v13  }
  0x7c   : > { %3569 = vset.pattern.permute.xlu1 %v3696_v19 }
  0x7d   : > { %1808 = vperm.xlu1 %3569, %v3843_v14  }
  0x7f   : > { %745 = vperm.xlu0 %3571, %v3855_v16  }
  0x81   : > { %1812 = vperm.xlu1 %3569, %v3838_v13  }
  0x83   : > { %3576 = vset.pattern.permute.xlu0 %v3697_v22 }
  0x84   : > { %1970 = vperm.xlu0 %3576, %v3766_v0  }
  0x85   : > { %3570 = vset.pattern.permute.xlu1 %v3694_v17 }
  0x86   : > { %733 = vperm.xlu1 %3570, %v3826_v11  }
  0x87   : > { %v492_v23 = vpop.permute.xlu1 %491  ;;  %v482_v25 = vpop.permute.xlu0 %481 }
  0x88   : > { %1986 = vperm.xlu0 %3576, %v3807_v8   ;;  %v559_v28 = vmul.f32 %v482_v25, %v3940_v24  ;;  %v561_v36 = vmul.f32 %v492_v23, %v3957_v29 }
  0x8a   : > { %3572 = vset.pattern.permute.xlu1 %v3696_v19  ;;  %v4030_v19 = vld [vmem:[%s4617_s5 + $0x60] sm:$0xff] }
  0x8b   : > { %v497_v30 = vpop.permute.xlu1 %496  ;;  %1820 = vperm.xlu1 %3572, %v3850_v15   ;;  %v487_v31 = vpop.permute.xlu0 %486 }
  0x8c   : > { %v562_v32 = vmul.f32 %v497_v30, %v3946_v26  ;;  %v560_v33 = vmul.f32 %v487_v31, %v3951_v27  ;;  %2002 = vperm.xlu0 %3576, %v3831_v12   ;;  %v4044_v30 = vld [vmem:[%s4617_s5 + $0x70] sm:$0xff] }
  0x8e   : > { %v575_v37 = vpack.c.bf16 %v560_v33, %v559_v28  ;;  %v576_v40 = vpack.c.bf16 %v562_v32, %v561_v36  ;;  %v4039_v28 = vld [vmem:[%s4617_s5 + $0x78] sm:$0xff] }
  0x8f   : > { %v507_v38 = vpop.permute.xlu1 %506  ;;  %3573 = vset.pattern.permute.xlu1 %v3694_v17  ;;  %v502_v39 = vpop.permute.xlu0 %501 }
  0x90   : > { %v564_v41 = vmul.f32 %v507_v38, %v3966_v34  ;;  %v563_v42 = vmul.f32 %v502_v39, %v3971_v35  ;;  %737 = vperm.xlu1 %3573, %v3843_v14   ;;  %3230 = vmatprep.subr.bf16.mxu1 %v575_v37 }
  0x91   : > { %3231 = vmatpush3.bf16.msra.mxu1 %v575_v37  ;;  %2018 = vperm.xlu0 %3576, %v3855_v16  }
  0x92   : > { %3232 = vmatprep.subr.bf16.mxu1 %v576_v40  ;;  %v577_v47 = vpack.c.bf16 %v564_v41, %v563_v42 }
  0x93   : > { %v517_v45 = vpop.permute.xlu1 %516  ;;  %v512_v46 = vpop.permute.xlu0 %511 }
  0x94   : > { %v566_v48 = vmul.f32 %v517_v45, %v3981_v43  ;;  %v565_v49 = vmul.f32 %v512_v46, %v3986_v44  ;;  %3574 = vset.pattern.permute.xlu1 %v3697_v22  ;;  %v3617_v45 = vld [vmem:[%s3905_s28 + $0x10] ss:$8 sps:$4 sm:$0xff]   ;;  %v3620_v46 = vld [vmem:[%s3905_s28 + $0x20] ss:$8 sps:$4 sm:$0xff]  }
  0x95   : > { %1962 = vperm.xlu1 %3574, %v3771_v1   ;;  %3233 = vmatpush3.bf16.msra.mxu1 %v576_v40 }
  0x96   : > { %3234 = vmatprep.subr.bf16.mxu1 %v577_v47  ;;  %3589 = vset.pattern.permute.xlu0 %v3698_v52  ;;  %v578_v55 = vpack.c.bf16 %v566_v48, %v565_v49 }
  0x97   : > { %v527_v53 = vpop.permute.xlu1 %526  ;;  %v522_v54 = vpop.permute.xlu0 %521  ;;  %1025 = vperm.xlu0 %3589, %v3783_v4  }
  0x98   : > { %v568_v56 = vmul.f32 %v527_v53, %v3996_v50  ;;  %v567_v57 = vmul.f32 %v522_v54, %v4001_v51  ;;  %v3621_v54 = vld [vmem:[%s3905_s28 + $0x30] ss:$8 sps:$4 sm:$0xff]  }
  0x99   : > { %1966 = vperm.xlu1 %3574, %v3783_v4   ;;  %3235 = vmatpush3.bf16.msra.mxu1 %v577_v47 }
  0x9a   : > { %3236 = vmatprep.subr.bf16.mxu1 %v578_v55  ;;  %v579_v62 = vpack.c.bf16 %v568_v56, %v567_v57  ;;  %v3699_v56 = vmov 7  }
  0x9b   : > { %v537_v60 = vpop.permute.xlu1 %536  ;;  %v532_v61 = vpop.permute.xlu0 %531  ;;  %1029 = vperm.xlu0 %3589, %v3766_v0  }
  0x9c   : > { %v570_v63 = vmul.f32 %v537_v60, %v4011_v58  ;;  %v569_v2 = vmul.f32 %v532_v61, %v4016_v59 }
  0x9d   : > { %3575 = vset.pattern.permute.xlu1 %v3694_v17  ;;  %3237 = vmatpush3.bf16.msra.mxu1 %v578_v55  ;;  %v3622_v55 = vld [vmem:[%s3913_s8] ss:$8 sps:$4 sm:$0xff]  }
  0x9e   : > { %749 = vperm.xlu1 %3575, %v3850_v15   ;;  %3238 = vmatprep.subr.bf16.mxu1 %v579_v62  ;;  %v580_v23 = vpack.c.bf16 %v570_v63, %v569_v2 }
  0x9f   : > { %v547_v20 = vpop.permute.xlu1 %546  ;;  %v542_v21 = vpop.permute.xlu0 %541  ;;  %1041 = vperm.xlu0 %3589, %v3790_v5  }
  0xa0   : > { %v572_v17 = vmul.f32 %v547_v20, %v4025_v18  ;;  %v571_v25 = vmul.f32 %v542_v21, %v4030_v19 }
  0xa1   : > { %3239 = vmatpush3.bf16.msra.mxu1 %v579_v62 }
  0xa2   : > { %3577 = vset.pattern.permute.xlu1 %v3697_v22  ;;  %3240 = vmatprep.subr.bf16.mxu1 %v580_v23  ;;  %v581_v33 = vpack.c.bf16 %v572_v17, %v571_v25 }
  0xa3   : > { %v557_v31 = vpop.permute.xlu1 %556  ;;  %1974 = vperm.xlu1 %3577, %v3778_v3   ;;  %v552_v32 = vpop.permute.xlu0 %551  ;;  %1045 = vperm.xlu0 %3589, %v3807_v8  }
  0xa4   : > { %v574_v36 = vmul.f32 %v557_v31, %v4039_v28  ;;  %v573_v37 = vmul.f32 %v552_v32, %v4044_v30 }
  0xa5   : > { %3241 = vmatpush3.bf16.msra.mxu1 %v580_v23 }
  0xa6   : > { %3242 = vmatprep.subr.bf16.mxu1 %v581_v33  ;;  %v582_v38 = vpack.c.bf16 %v574_v36, %v573_v37 }
  0xa7   : > { %3578 = vset.pattern.permute.xlu1 %v3698_v52  ;;  %1057 = vperm.xlu0 %3589, %v3814_v9  }
  0xa8   : > { %v4053_v39 = vpop.permute.xlu1 %693  ;;  %1021 = vperm.xlu1 %3578, %v3771_v1   ;;  %v1436_v40 = vpop.permute.xlu0 %1435 }
  0xa9   : > { %3243 = vmatpush3.bf16.msra.mxu1 %v581_v33  ;;  %v1495_v57 = vmul.f32 %v1436_v40, %v3951_v27 }
  0xaa   : > { %3244 = vmatprep.subr.bf16.mxu1 %v582_v38 }
  0xab   : > { %1061 = vperm.xlu0 %3589, %v3831_v12  }
  0xac   : > { %v4057_v41 = vpop.permute.xlu1 %697  ;;  %3579 = vset.pattern.permute.xlu1 %v3697_v22  ;;  %v1448_v42 = vpop.permute.xlu0 %1447 }
  0xad   : > { %1978 = vperm.xlu1 %3579, %v3795_v6   ;;  %3245 = vmatpush3.bf16.msra.mxu1 %v582_v38  ;;  %v1498_v25 = vmul.f32 %v1448_v42, %v3971_v35  ;;  %v3700_v38 = vmov 3  }
  0xaf   : > { %1073 = vperm.xlu0 %3589, %v3838_v13  }
  0xb0   : > { %v4064_v47 = vpop.permute.xlu1 %705  ;;  %v1456_v48 = vpop.permute.xlu0 %1455  ;;  %3247 = vmatmul.mubr.bf16.vlgmr.msra.gmra.mrb[0].mxu1 %v3617_v45 }
  0xb1   : > { %1982 = vperm.xlu1 %3579, %v3790_v5   ;;  %3250 = vmatprep.mubr.bf16.mxu1 %v3620_v46  ;;  %v1500_v36 = vmul.f32 %v1456_v48, %v3986_v44 }
  0xb3   : > { %1077 = vperm.xlu0 %3589, %v3855_v16  }
  0xb4   : > { %v4068_v49 = vpop.permute.xlu1 %713  ;;  %v1464_v53 = vpop.permute.xlu0 %1463 }
  0xb5   : > { %3580 = vset.pattern.permute.xlu1 %v3698_v52  ;;  %v1502_v46 = vmul.f32 %v1464_v53, %v4001_v51 }
  0xb6   : > { %1033 = vperm.xlu1 %3580, %v3778_v3  }
  0xb7   : > { %3594 = vset.pattern.permute.xlu0 %v3699_v56 }
  0xb8   : > { %v1472_v60 = vpop.permute.xlu0 %1471  ;;  %2180 = vperm.xlu0 %3594, %v3766_v0   ;;  %3251 = vmatmul.mubr.bf16.gmra.mrb[4].mxu1 %v3621_v54 }
  0xb9   : > { %v1432_v61 = vpop.permute.xlu1 %1431  ;;  %3270 = vmatprep.mubr.bf16.mxu1 %v3622_v55 }
  0xba   : > { %v1494_v62 = vmul.f32 %v1432_v61, %v3940_v24  ;;  %3581 = vset.pattern.permute.xlu1 %v3697_v22  ;;  %v1504_v61 = vmul.f32 %v1472_v60, %v4016_v59 }
  0xbb   : > { %1990 = vperm.xlu1 %3581, %v3802_v7  }
  0xbc   : > { %v1510_v63 = vpack.c.bf16 %v1495_v57, %v1494_v62  ;;  %v1480_v2 = vpop.permute.xlu0 %1479  ;;  %2196 = vperm.xlu0 %3594, %v3807_v8  }
  0xbd   : > { %v1440_v3 = vpop.permute.xlu1 %1439 }
  0xbe   : > { %3326 = vmatprep.subr.bf16.mxu0 %v1510_v63  ;;  %v1496_v23 = vmul.f32 %v1440_v3, %v3957_v29 }
  0xbf   : > { %3582 = vset.pattern.permute.xlu1 %v3698_v52  ;;  %3327 = vmatpush3.bf16.msra.mxu0 %v1510_v63 }
  0xc0   : > { %1037 = vperm.xlu1 %3582, %v3795_v6   ;;  %v1488_v20 = vpop.permute.xlu0 %1487  ;;  %2212 = vperm.xlu0 %3594, %v3831_v12  }
  0xc1   : > { %v1444_v21 = vpop.permute.xlu1 %1443 }
  0xc2   : > { %v1497_v17 = vmul.f32 %v1444_v21, %v3946_v26  ;;  %v1631_v21 = vld [vmem:[%s3922_s11] sm:$0xf] }
  0xc4   : > { %v1511_v31 = vpack.c.bf16 %v1497_v17, %v1496_v23  ;;  %3583 = vset.pattern.permute.xlu1 %v3697_v22  ;;  %2228 = vperm.xlu0 %3594, %v3855_v16   ;;  %v1633_v23 = vld [vmem:[%s3922_s11 + $0x8] sm:$0xf]  ;;  %v1506_v17 = vmul.f32 %v1480_v2, %v4030_v19  ;;  %v1508_v2 = vmul.f32 %v1488_v20, %v4044_v30 }
  0xc5   : > { %1994 = vperm.xlu1 %3583, %v3819_v10   ;;  %v1452_v32 = vpop.permute.xlu1 %1451  ;;  %v4090_v33 = vpop.permute.xlu0 %1760 }
  0xc6   : > { %v1499_v6 = vmul.f32 %v1452_v32, %v3966_v34  ;;  %3328 = vmatprep.subr.bf16.mxu0 %v1511_v31  ;;  %v1648_v32 = vshrl.u32 %v1631_v21, 16 }
  0xc7   : > { %3329 = vmatpush3.bf16.msra.mxu0 %v1511_v31 }
  0xc8   : > { %v1512_v37 = vpack.c.bf16 %v1499_v6, %v1498_v25  ;;  %3607 = vset.pattern.permute.xlu0 %v3700_v38 }
  0xc9   : > { %1998 = vperm.xlu1 %3583, %v3814_v9   ;;  %v1460_v40 = vpop.permute.xlu1 %1459  ;;  %v4096_v42 = vpop.permute.xlu0 %1772  ;;  %1226 = vperm.xlu0 %3607, %v3783_v4  }
  0xca   : > { %v1501_v45 = vmul.f32 %v1460_v40, %v3981_v43  ;;  %3330 = vmatprep.subr.bf16.mxu0 %v1512_v37  ;;  %v1665_v40 = vshll.u32 %v1633_v23, 16 }
  0xcb   : > { %3331 = vmatpush3.bf16.msra.mxu0 %v1512_v37  ;;  %v1662_v37 = vshrl.u32 %v1633_v23, 16 }
  0xcc   : > { %v1513_v54 = vpack.c.bf16 %v1501_v45, %v1500_v36  ;;  %v1651_v36 = vshll.u32 %v1631_v21, 16 }
  0xcd   : > { %3584 = vset.pattern.permute.xlu1 %v3698_v52  ;;  %v1468_v48 = vpop.permute.xlu1 %1467  ;;  %v4102_v55 = vpop.permute.xlu0 %1780  ;;  %1230 = vperm.xlu0 %3607, %v3766_v0  }
  0xce   : > { %v1503_v57 = vmul.f32 %v1468_v48, %v3996_v50  ;;  %1049 = vperm.xlu1 %3584, %v3802_v7   ;;  %3332 = vmatprep.subr.bf16.mxu0 %v1513_v54 }
  0xcf   : > { %3333 = vmatpush3.bf16.msra.mxu0 %v1513_v54 }
  0xd0   : > { %v1514_v62 = vpack.c.bf16 %v1503_v57, %v1502_v46  ;;  %v1653_v57 = vrot.slane %v1651_v36, 5 }
  0xd1   : > { %v1476_v53 = vpop.permute.xlu1 %1475  ;;  %v4108_v63 = vpop.permute.xlu0 %1788  ;;  %1242 = vperm.xlu0 %3607, %v3790_v5  }
  0xd2   : > { %v1505_v3 = vmul.f32 %v1476_v53, %v4011_v58  ;;  %3585 = vset.pattern.permute.xlu1 %v3697_v22  ;;  %3334 = vmatprep.subr.bf16.mxu0 %v1514_v62  ;;  %v1632_v53 = vld [vmem:[%s3922_s11 + $0x4] sm:$0x1] }
  0xd3   : > { %2006 = vperm.xlu1 %3585, %v3826_v11   ;;  %3335 = vmatpush3.bf16.msra.mxu0 %v1514_v62  ;;  %v1667_v62 = vrot.slane %v1665_v40, 5 }
  0xd4   : > { %v1515_v25 = vpack.c.bf16 %v1505_v3, %v1504_v61  ;;  %v1664_v61 = vrot.slane %v1662_v37, 4  ;;  %v1634_v3 = vld [vmem:[%s3922_s11 + $0xc] sm:$0x1]  ;;  %v3618_v37 = vld [vmem:[%s3896_s21 + $0x20] ss:$8 sps:$4 sm:$0xff]  }
  0xd5   : > { %v1484_v60 = vpop.permute.xlu1 %1483  ;;  %v4117_v31 = vpop.permute.xlu0 %1796  ;;  %1246 = vperm.xlu0 %3607, %v3807_v8   ;;  %v1650_v8 = vrot.slane %v1648_v32, 4 }
  0xd6   : > { %v1507_v6 = vmul.f32 %v1484_v60, %v4025_v18  ;;  %3336 = vmatprep.subr.bf16.mxu0 %v1515_v25  ;;  %v1657_v60 = vshll.u32 %v1632_v53, 16  ;;  %v1668_v32 = vor.u32 %v1667_v62, %v1664_v61  ;;  %v1828_v53 = vmul.f32 %v4102_v55, %v3966_v34 }
  0xd7   : > { %3586 = vset.pattern.permute.xlu1 %v3698_v52  ;;  %3337 = vmatpush3.bf16.msra.mxu0 %v1515_v25  ;;  %v1654_v25 = vor.u32 %v1653_v57, %v1650_v8  ;;  %v753_v57 = vmul.f32 %v4053_v39, %v3951_v27  ;;  %v754_v55 = vmul.f32 %v4057_v41, %v3957_v29 }
  0xd8   : > { %v1516_v45 = vpack.c.bf16 %v1507_v6, %v1506_v17  ;;  %1053 = vperm.xlu1 %3586, %v3819_v10   ;;  %v1823_v10 = vmul.f32 %v4090_v33, %v3940_v24  ;;  %v3615_v17 = vld [vmem:[%s3896_s21 + $0x10] ss:$8 sps:$4 sm:$0xff]   ;;  %v1671_v6 = vshll.u32 %v1634_v3, 16  ;;  %v1826_v33 = vmul.f32 %v4096_v42, %v3946_v26 }
  0xd9   : > { %v1492_v46 = vpop.permute.xlu1 %1491  ;;  %v4124_v54 = vpop.permute.xlu0 %1804  ;;  %1258 = vperm.xlu0 %3607, %v3814_v9   ;;  %v1669_v8 = vrot.slane %v1668_v32, 4 }
  0xda   : > { %v1509_v48 = vmul.f32 %v1492_v46, %v4039_v28  ;;  %3338 = vmatprep.subr.bf16.mxu0 %v1516_v45  ;;  %v1659_v46 = vrot.slane %v1657_v60, 5 }
  0xdb   : > { %3339 = vmatpush3.bf16.msra.mxu0 %v1516_v45  ;;  %v1655_v45 = vrot.slane %v1654_v25, 4 }
  0xdc   : > { %v1517_v20 = vpack.c.bf16 %v1509_v48, %v1508_v2  ;;  %3587 = vset.pattern.permute.xlu1 %v3697_v22  ;;  %v1673_v48 = vrot.slane %v1671_v6, 5 }
  0xdd   : > { %2010 = vperm.xlu1 %3587, %v3843_v14   ;;  %v4134_v21 = vpop.permute.xlu0 %1816  ;;  %1262 = vperm.xlu0 %3607, %v3831_v12  }
  0xde   : > { %v1765_v23 = vpop.permute.xlu1 %1764  ;;  %3340 = vmatprep.subr.bf16.mxu0 %v1517_v20  ;;  %v1674_v25 = vsel %vm4150_vm2, %v1669_v8, %v1673_v48 }
  0xdf   : > { %v1824_v36 = vmul.f32 %v1765_v23, %v3951_v27  ;;  %3341 = vmatpush3.bf16.msra.mxu0 %v1517_v20  ;;  %v3619_v23 = vld [vmem:[%s3896_s21 + $0x30] ss:$8 sps:$4 sm:$0xff]  }
  0xe1   : > { %v1839_v40 = vpack.c.bf16 %v1824_v36, %v1823_v10  ;;  %2014 = vperm.xlu1 %3587, %v3838_v13   ;;  %1274 = vperm.xlu0 %3607, %v3838_v13  }
  0xe2   : > { %v1769_v12 = vpop.permute.xlu1 %1768  ;;  %v690_v2 = vpop.permute.xlu0 %689  ;;  %3343 = vmatmul.mubr.bf16.vlgmr.msra.gmra.mrb[0].mxu0 %v3615_v17  ;;  %v1660_v17 = vsel %vm4150_vm2, %v1655_v45, %v1659_v46 }
  0xe3   : > { %v1825_v61 = vmul.f32 %v1769_v12, %v3957_v29  ;;  %v752_v42 = vmul.f32 %v690_v2, %v3940_v24  ;;  %3350 = vmatprep.subr.bf16.mxu0 %v1839_v40  ;;  %3346 = vmatprep.mubr.bf16.mxu0 %v3618_v37  ;;  %v3032_v37 = vcombine.low %v1660_v17, %v1674_v25 }
  0xe4   : > { %3351 = vmatpush3.bf16.msra.mxu0 %v1839_v40  ;;  %v756_v12 = vmul.f32 %v4064_v47, %v3971_v35  ;;  %v758_v47 = vmul.f32 %v4068_v49, %v3986_v44 }
  0xe5   : > { %v1840_v3 = vpack.c.bf16 %v1826_v33, %v1825_v61  ;;  %v768_v20 = vpack.c.bf16 %v753_v57, %v752_v42  ;;  %3588 = vset.pattern.permute.xlu1 %v3698_v52  ;;  %1278 = vperm.xlu0 %3607, %v3855_v16   ;;  %v1830_v16 = vmul.f32 %v4108_v63, %v3981_v43  ;;  %v3701_v33 = vmov 8  }
  0xe6   : > { %1065 = vperm.xlu1 %3588, %v3826_v11   ;;  %v1777_v39 = vpop.permute.xlu1 %1776  ;;  %v702_v10 = vpop.permute.xlu0 %701  ;;  %v1832_v63 = vmul.f32 %v4117_v31, %v3996_v50  ;;  %v1834_v31 = vmul.f32 %v4124_v54, %v4011_v58 }
  0xe7   : > { %v1827_v60 = vmul.f32 %v1777_v39, %v3971_v35  ;;  %v755_v32 = vmul.f32 %v702_v10, %v3946_v26  ;;  %3254 = vmatprep.subr.bf16.mxu1 %v768_v20  ;;  %3352 = vmatprep.subr.bf16.mxu0 %v1840_v3  ;;  %v1637_v10 = vld [vmem:[%s3922_s11 + $0x18] sm:$0xf] }
  0xe8   : > { %3255 = vmatpush3.bf16.msra.mxu1 %v768_v20  ;;  %3353 = vmatpush3.bf16.msra.mxu0 %v1840_v3  ;;  %v1635_v20 = vld [vmem:[%s3922_s11 + $0x10] sm:$0xf] }
  0xe9   : > { %v1841_v6 = vpack.c.bf16 %v1828_v53, %v1827_v60  ;;  %v769_v36 = vpack.c.bf16 %v755_v32, %v754_v55  ;;  %3612 = vset.pattern.permute.xlu0 %v3701_v33  ;;  %v1676_v25 = vshrl.u32 %v1635_v20, 16  ;;  %v1679_v55 = vshll.u32 %v1635_v20, 16  ;;  %v4219_v20 = vld [vmem:[%s4616_s4 + $0x18] sm:$0xff] }
  0xea   : > { %3590 = vset.pattern.permute.xlu1 %v3697_v22  ;;  %v1785_v41 = vpop.permute.xlu1 %1784  ;;  %v710_v40 = vpop.permute.xlu0 %709  ;;  %3347 = vmatmul.mubr.bf16.gmra.mrb[4].mxu0 %v3619_v23  ;;  %v1639_v23 = vld [vmem:[%s3922_s11 + $0x20] sm:$0xf]  ;;  %v1690_v32 = vshrl.u32 %v1637_v10, 16 }
  0xeb   : > { %v1829_v2 = vmul.f32 %v1785_v41, %v3986_v44  ;;  %v757_v45 = vmul.f32 %v710_v40, %v3966_v34  ;;  %2022 = vperm.xlu1 %3590, %v3850_v15   ;;  %3256 = vmatprep.subr.bf16.mxu1 %v769_v36  ;;  %v1681_v40 = vrot.slane %v1679_v55, 5 }
  0xec   : > { %3354 = vmatprep.subr.bf16.mxu0 %v1841_v6  ;;  %3257 = vmatpush3.bf16.msra.mxu1 %v769_v36  ;;  %v1707_v36 = vshll.u32 %v1639_v23, 16 }
  0xed   : > { %v1842_v46 = vpack.c.bf16 %v1830_v16, %v1829_v2  ;;  %v770_v22 = vpack.c.bf16 %v757_v45, %v756_v12  ;;  %3355 = vmatpush3.bf16.msra.mxu0 %v1841_v6  ;;  %3366 = vmatprep.mubr.bf16.mxu0 %v3032_v37  ;;  %v1704_v6 = vshrl.u32 %v1639_v23, 16  ;;  %v1636_v12 = vld [vmem:[%s3922_s11 + $0x14] sm:$0x1]  ;;  %v1638_v2 = vld [vmem:[%s3922_s11 + $0x1c] sm:$0x1]  ;;  %v1692_v45 = vrot.slane %v1690_v32, 4 }
  0xee   : > { %v1793_v8 = vpop.permute.xlu1 %1792  ;;  %v718_v48 = vpop.permute.xlu0 %717  ;;  %2509 = vperm.xlu0 %3612, %v3766_v0  }
  0xef   : > { %v1831_v57 = vmul.f32 %v1793_v8, %v4001_v51  ;;  %v759_v61 = vmul.f32 %v718_v48, %v3981_v43  ;;  %3591 = vset.pattern.permute.xlu1 %v3698_v52  ;;  %3258 = vmatprep.subr.bf16.mxu1 %v770_v22  ;;  %v1709_v8 = vrot.slane %v1707_v36, 5  ;;  %v1643_v48 = vld [vmem:[%s3922_s11 + $0x30] sm:$0xf] }
  0xf0   : > { %3356 = vmatprep.subr.bf16.mxu0 %v1842_v46  ;;  %1069 = vperm.xlu1 %3591, %v3843_v14  }
  0xf1   : > { %v1843_v42 = vpack.c.bf16 %v1832_v63, %v1831_v57  ;;  %v771_v53 = vpack.c.bf16 %v759_v61, %v758_v47  ;;  %3259 = vmatpush3.bf16.msra.mxu1 %v770_v22  ;;  %3357 = vmatpush3.bf16.msra.mxu0 %v1842_v46  ;;  %v1706_v22 = vrot.slane %v1704_v6, 4  ;;  %v1645_v61 = vld [vmem:[%s3922_s11 + $0x38] sm:$0xf] }
  0xf2   : > { %v1801_v0 = vpop.permute.xlu1 %1800  ;;  %2521 = vperm.xlu0 %3612, %v3790_v5   ;;  %v726_v3 = vpop.permute.xlu0 %725  ;;  %v1749_v23 = vshll.u32 %v1645_v61, 16 }
  0xf3   : > { %v1833_v49 = vmul.f32 %v1801_v0, %v4016_v59  ;;  %3260 = vmatprep.subr.bf16.mxu1 %v771_v53  ;;  %3358 = vmatprep.subr.bf16.mxu0 %v1843_v42  ;;  %v761_v54 = vmul.f32 %v726_v3, %v3996_v50  ;;  %v1640_v0 = vld [vmem:[%s3922_s11 + $0x24] sm:$0x1] }
  0xf4   : > { %3592 = vset.pattern.permute.xlu1 %v3699_v56  ;;  %v1713_v55 = vshll.u32 %v1640_v0, 16 }
  0xf5   : > { %v1844_v14 = vpack.c.bf16 %v1834_v31, %v1833_v49  ;;  %3261 = vmatpush3.bf16.msra.mxu1 %v771_v53  ;;  %3359 = vmatpush3.bf16.msra.mxu0 %v1843_v42  ;;  %v1685_v42 = vshll.u32 %v1636_v12, 16  ;;  %v1699_v53 = vshll.u32 %v1638_v2, 16  ;;  %v1642_v49 = vld [vmem:[%s3922_s11 + $0x2c] sm:$0x1]  ;;  %v1644_v12 = vld [vmem:[%s3922_s11 + $0x34] sm:$0x1] }
  0xf6   : > { %2172 = vperm.xlu1 %3592, %v3771_v1   ;;  %2529 = vperm.xlu0 %3612, %v3802_v7   ;;  %v1641_v1 = vld [vmem:[%s3922_s11 + $0x28] sm:$0xf]  ;;  %v730_v60 = vpop.permute.xlu0 %729  ;;  %v1693_v7 = vshll.u32 %v1637_v10, 16  ;;  %v1746_v10 = vshrl.u32 %v1645_v61, 16  ;;  %v1727_v32 = vshll.u32 %v1642_v49, 16 }
  0xf7   : > { %v722_v5 = vpop.permute.xlu1 %721  ;;  %3360 = vmatprep.subr.bf16.mxu0 %v1844_v14  ;;  %v1718_v37 = vshrl.u32 %v1641_v1, 16  ;;  %v1721_v41 = vshll.u32 %v1641_v1, 16  ;;  %v1687_v6 = vrot.slane %v1685_v42, 5 }
  0xf8   : > { %v760_v39 = vmul.f32 %v722_v5, %v4001_v51  ;;  %v1695_v63 = vrot.slane %v1693_v7, 5  ;;  %v1735_v5 = vshll.u32 %v1643_v48, 16  ;;  %v1748_v2 = vrot.slane %v1746_v10, 4 }
  0xf9   : > { %3361 = vmatpush3.bf16.msra.mxu0 %v1844_v14  ;;  %v1720_v57 = vrot.slane %v1718_v37, 4 }
  0xfa   : > { %v772_v17 = vpack.c.bf16 %v761_v54, %v760_v39  ;;  %2176 = vperm.xlu1 %3592, %v3783_v4   ;;  %2537 = vperm.xlu0 %3612, %v3814_v9   ;;  %v1678_v4 = vrot.slane %v1676_v25, 4  ;;  %v4204_v9 = vpop.permute.xlu0 %741  ;;  %v1696_v14 = vor.u32 %v1695_v63, %v1692_v45  ;;  %v1732_v54 = vshrl.u32 %v1643_v48, 16 }
  0xfb   : > { %v762_v39 = vmul.f32 %v730_v60, %v4016_v59  ;;  %v1710_v25 = vor.u32 %v1709_v8, %v1706_v22  ;;  %v1701_v60 = vrot.slane %v1699_v53, 5  ;;  %v1751_v45 = vrot.slane %v1749_v23, 5  ;;  %v1646_v8 = vld [vmem:[%s3922_s11 + $0x3c] sm:$0x1] }
  0xfc   : > { %v1809_v16 = vpop.permute.xlu1 %1808  ;;  %3262 = vmatprep.subr.bf16.mxu1 %v772_v17  ;;  %v1682_v31 = vor.u32 %v1681_v40, %v1678_v4  ;;  %v1697_v36 = vrot.slane %v1696_v14, 4  ;;  %v1734_v37 = vrot.slane %v1732_v54, 4  ;;  %v1837_v4 = vmul.f32 %v4134_v21, %v4044_v30 }
  0xfd   : > { %3263 = vmatpush3.bf16.msra.mxu1 %v772_v17  ;;  %v1715_v63 = vrot.slane %v1713_v55, 5  ;;  %v1729_v22 = vrot.slane %v1727_v32, 5  ;;  %v1755_v42 = vshll.u32 %v1646_v8, 16  ;;  %v765_v14 = vmul.f32 %v4204_v9, %v4025_v18 }
  0xfe   : > { %3593 = vset.pattern.permute.xlu1 %v3698_v52  ;;  %2545 = vperm.xlu0 %3612, %v3826_v11   ;;  %v1835_v52 = vmul.f32 %v1809_v16, %v4030_v19  ;;  %v1723_v11 = vrot.slane %v1721_v41, 5  ;;  %v4223_v17 = vpop.permute.xlu0 %745  ;;  %v1683_v16 = vrot.slane %v1682_v31, 4  ;;  %v1737_v41 = vrot.slane %v1735_v5, 5 }
  0xff   : > { %1081 = vperm.xlu1 %3593, %v3850_v15   ;;  %v1702_v61 = vsel %vm4150_vm2, %v1697_v36, %v1701_v60  ;;  %v1752_v31 = vor.u32 %v1751_v45, %v1748_v2  ;;  %v1757_v55 = vrot.slane %v1755_v42, 5  ;;  %v766_v8 = vmul.f32 %v4223_v17, %v4044_v30 }
 0x100   : > { %v1813_v46 = vpop.permute.xlu1 %1812  ;;  %v1724_v1 = vor.u32 %v1723_v11, %v1720_v57  ;;  %v1741_v57 = vshll.u32 %v1644_v12, 16  ;;  %v1688_v11 = vsel %vm4150_vm2, %v1683_v16, %v1687_v6  ;;  %v889_v16 = vld [vmem:[%s3905_s28] sm:$0xf]  ;;  %v891_v6 = vld [vmem:[%s3905_s28 + $0x8] sm:$0xf] }
 0x101   : > { %v1836_v47 = vmul.f32 %v1813_v46, %v4025_v18  ;;  %v3033_v5 = vcombine.low %v1688_v11, %v1702_v61  ;;  %v3641_v18 = vld [vmem:[%s4616_s4 + $0x28] sm:$0xff]  ;;  %v923_v12 = vshrl.u32 %v891_v6, 16  ;;  %v926_v2 = vshll.u32 %v891_v6, 16  ;;  %v890_v61 = vld [vmem:[%s3905_s28 + $0x4] sm:$0x1] }
 0x102   : > { %2553 = vperm.xlu0 %3612, %v3838_v13   ;;  %v1725_v46 = vrot.slane %v1724_v1, 4  ;;  %v1743_v10 = vrot.slane %v1741_v57, 5  ;;  %v3644_v6 = vld [vmem:[%s4616_s4 + $0x48] sm:$0xff] }
 0x103   : > { %v1845_v3 = vpack.c.bf16 %v1836_v47, %v1835_v52  ;;  %3595 = vset.pattern.permute.xlu1 %v3699_v56  ;;  %v4239_v52 = vpop.permute.xlu0 %1970  ;;  %v1738_v47 = vor.u32 %v1737_v41, %v1734_v37  ;;  %v909_v37 = vshrl.u32 %v889_v16, 16  ;;  %v912_v41 = vshll.u32 %v889_v16, 16 }
 0x104   : > { %2184 = vperm.xlu1 %3595, %v4219_v20   ;;  %v1730_v49 = vsel %vm4150_vm2, %v1725_v46, %v1729_v22 }
 0x105   : > { %v734_v13 = vpop.permute.xlu1 %733  ;;  %3362 = vmatprep.subr.bf16.mxu0 %v1845_v3  ;;  %v911_v46 = vrot.slane %v909_v37, 4  ;;  %v914_v22 = vrot.slane %v912_v41, 5 }
 0x106   : > { %v763_v7 = vmul.f32 %v734_v13, %v4011_v58  ;;  %3363 = vmatpush3.bf16.msra.mxu0 %v1845_v3  ;;  %2561 = vperm.xlu0 %3612, %v3850_v15   ;;  %v4234_v58 = vld [vmem:[%s4616_s4] sm:$0xff]  ;;  %v1711_v15 = vrot.slane %v1710_v25, 4  ;;  %v1753_v25 = vrot.slane %v1752_v31, 4  ;;  %v892_v31 = vld [vmem:[%s3905_s28 + $0xc] sm:$0x1] }
 0x107   : > { %v4253_v3 = vld [vmem:[%s4616_s4 + $0x20] sm:$0xff]  ;;  %v4259_v1 = vpop.permute.xlu0 %1986  ;;  %v915_v30 = vor.u32 %v914_v22, %v911_v46 }
 0x108   : > { %v773_v40 = vpack.c.bf16 %v763_v7, %v762_v39  ;;  %3596 = vset.pattern.permute.xlu1 %v3700_v38  ;;  %v1716_v0 = vsel %vm4150_vm2, %v1711_v15, %v1715_v63  ;;  %v1739_v39 = vrot.slane %v1738_v47, 4  ;;  %v1758_v7 = vsel %vm4150_vm2, %v1753_v25, %v1757_v55 }
 0x109   : > { %1222 = vperm.xlu1 %3596, %v4234_v58   ;;  %v3034_v13 = vcombine.low %v1716_v0, %v1730_v49  ;;  %v928_v47 = vrot.slane %v926_v2, 5  ;;  %v932_v49 = vshll.u32 %v892_v31, 16  ;;  %v3645_v2 = vld [vmem:[%s4616_s4 + $0x58] sm:$0xff]  ;;  %v2031_v46 = vmul.f32 %v4259_v1, %v3986_v44  ;;  %v4341_v44 = vld [vmem:[%s4617_s5 + $0x28] sm:$0xff] }
 0x10a   : > { %v1821_v48 = vpop.permute.xlu1 %1820  ;;  %3264 = vmatprep.subr.bf16.mxu1 %v773_v40  ;;  %v3650_v31 = vld [vmem:[%s4616_s4 + $0x68] sm:$0xff] }
 0x10b   : > { %v1838_v21 = vmul.f32 %v1821_v48, %v4039_v28  ;;  %3265 = vmatpush3.bf16.msra.mxu1 %v773_v40  ;;  %v4272_v36 = vpop.permute.xlu0 %2002  ;;  %v3624_v40 = vld [vmem:[%s3905_s28 + $0x8] ss:$8 sps:$4 sm:$0xff]   ;;  %v3642_v48 = vld [vmem:[%s4616_s4 + $0x38] sm:$0xff]  ;;  %v934_v55 = vrot.slane %v932_v49, 5 }
 0x10d   : > { %v1846_v53 = vpack.c.bf16 %v1838_v21, %v1837_v4  ;;  %3597 = vset.pattern.permute.xlu1 %v3699_v56  ;;  %v925_v21 = vrot.slane %v923_v12, 4 }
 0x10e   : > { %2188 = vperm.xlu1 %3597, %v4253_v3  }
 0x10f   : > { %v738_v54 = vpop.permute.xlu1 %737  ;;  %3364 = vmatprep.subr.bf16.mxu0 %v1846_v53  ;;  %v929_v0 = vor.u32 %v928_v47, %v925_v21  ;;  %v4335_v21 = vld [vmem:[%s4616_s4 + $0x60] sm:$0xff] }
 0x110   : > { %v764_v23 = vmul.f32 %v738_v54, %v4030_v19  ;;  %3365 = vmatpush3.bf16.msra.mxu0 %v1846_v53  ;;  %v1744_v19 = vsel %vm4150_vm2, %v1739_v39, %v1743_v10  ;;  %v4283_v11 = vpop.permute.xlu0 %2018  ;;  %v918_v53 = vshll.u32 %v890_v61, 16  ;;  %v3626_v10 = vld [vmem:[%s3913_s8 + $0x20] ss:$8 sps:$4 sm:$0xff]  }
 0x111   : > { %v3035_v60 = vcombine.low %v1744_v19, %v1758_v7  ;;  %v930_v25 = vrot.slane %v929_v0, 4  ;;  %v4347_v47 = vld [vmem:[%s4617_s5 + $0x20] sm:$0xff] }
 0x112   : > { %v774_v32 = vpack.c.bf16 %v765_v14, %v764_v23  ;;  %2192 = vperm.xlu1 %3597, %v3641_v18   ;;  %v2027_v14 = vmul.f32 %v4239_v52, %v3957_v29  ;;  %v916_v23 = vrot.slane %v915_v30, 4  ;;  %v4299_v52 = vld [vmem:[%s4616_s4 + $0x40] sm:$0xff] }
 0x113   : > { %3367 = vmatmul.mubr.bf16.vlgmr.msra.gmra.mrb[0].mxu0 %v3033_v5  ;;  %v3623_v5 = vld [vmem:[%s3913_s8 + $0x10] ss:$8 sps:$4 sm:$0xff]   ;;  %v935_v7 = vsel %vm4150_vm2, %v930_v25, %v934_v55 }
 0x114   : > { %v1963_v9 = vpop.permute.xlu1 %1962  ;;  %3266 = vmatprep.subr.bf16.mxu1 %v774_v32  ;;  %3370 = vmatprep.mubr.bf16.mxu0 %v3034_v13  ;;  %v920_v13 = vrot.slane %v918_v53, 5 }
 0x115   : > { %3267 = vmatpush3.bf16.msra.mxu1 %v774_v32  ;;  %v2025_v45 = vmul.f32 %v1963_v9, %v3940_v24 }
 0x116   : > { %3598 = vset.pattern.permute.xlu1 %v3700_v38  ;;  %v921_v19 = vsel %vm4150_vm2, %v916_v23, %v920_v13  ;;  %v4379_v23 = vld [vmem:[%s4617_s5 + $0x58] sm:$0xff] }
 0x117   : > { %1234 = vperm.xlu1 %3598, %v4219_v20  }
 0x118   : > { %v1967_v4 = vpop.permute.xlu1 %1966 }
 0x119   : > { %v2026_v15 = vmul.f32 %v1967_v4, %v3951_v27 }
 0x11b   : > { %v2041_v63 = vpack.c.bf16 %v2026_v15, %v2025_v45  ;;  %3599 = vset.pattern.permute.xlu1 %v3699_v56  ;;  %3371 = vmatmul.mubr.bf16.gmra.mrb[4].mxu0 %v3035_v60  ;;  %v3020_v60 = vcombine.low %v921_v19, %v935_v7 }
 0x11c   : > { %2200 = vperm.xlu1 %3599, %v3642_v48   ;;  %3390 = vmatprep.mubr.bf16.mxu0 %v3624_v40 }
 0x11d   : > { %v750_v57 = vpop.permute.xlu1 %749  ;;  %3374 = vmatprep.subr.bf16.mxu0 %v2041_v63 }
 0x11e   : > { %v767_v42 = vmul.f32 %v750_v57, %v4039_v28  ;;  %3375 = vmatpush3.bf16.msra.mxu0 %v2041_v63  ;;  %v1026_v28 = vpop.permute.xlu0 %1025  ;;  %v4323_v63 = vld [vmem:[%s4617_s5 + $0x18] sm:$0xff] }
 0x120   : > { %v775_v17 = vpack.c.bf16 %v767_v42, %v766_v8  ;;  %3600 = vset.pattern.permute.xlu1 %v3700_v38 }
 0x121   : > { %1238 = vperm.xlu1 %3600, %v4253_v3  }
 0x122   : > { %v1975_v54 = vpop.permute.xlu1 %1974  ;;  %3268 = vmatprep.subr.bf16.mxu1 %v775_v17  ;;  %v1030_v40 = vpop.permute.xlu0 %1029 }
 0x123   : > { %v2028_v39 = vmul.f32 %v1975_v54, %v3946_v26  ;;  %3269 = vmatpush3.bf16.msra.mxu1 %v775_v17  ;;  %v1085_v26 = vmul.f32 %v1026_v28, %v3951_v27  ;;  %v3627_v27 = vld [vmem:[%s3913_s8 + $0x30] ss:$8 sps:$4 sm:$0xff]   ;;  %v1086_v45 = vmul.f32 %v1030_v40, %v3957_v29  ;;  %v2035_v28 = vmul.f32 %v4272_v36, %v4016_v59  ;;  %v4387_v59 = vld [vmem:[%s4617_s5 + $0x48] sm:$0xff] }
 0x124   : > { %v4363_v54 = vld [vmem:[%s4617_s5 + $0x30] sm:$0xff] }
 0x125   : > { %v2042_v32 = vpack.c.bf16 %v2028_v39, %v2027_v14  ;;  %3601 = vset.pattern.permute.xlu1 %v3699_v56  ;;  %v3651_v14 = vld [vmem:[%s4616_s4 + $0x78] sm:$0xff] }
 0x126   : > { %2204 = vperm.xlu1 %3601, %v4299_v52   ;;  %3271 = vmatmul.mubr.bf16.vlgmr.msra.gmra.mrb[0].mxu1 %v3623_v5  ;;  %v1042_v8 = vpop.permute.xlu0 %1041 }
 0x127   : > { %v1022_v18 = vpop.permute.xlu1 %1021  ;;  %3376 = vmatprep.subr.bf16.mxu0 %v2042_v32  ;;  %3274 = vmatprep.mubr.bf16.mxu1 %v3626_v10  ;;  %v1089_v1 = vmul.f32 %v4341_v44, %v1042_v8 }
 0x128   : > { %v1084_v9 = vmul.f32 %v1022_v18, %v3940_v24  ;;  %3377 = vmatpush3.bf16.msra.mxu0 %v2042_v32 }
 0x12a   : > { %v1100_v16 = vpack.c.bf16 %v1085_v26, %v1084_v9  ;;  %2208 = vperm.xlu1 %3601, %v3644_v6   ;;  %v1046_v0 = vpop.permute.xlu0 %1045  ;;  %v4393_v26 = vld [vmem:[%s4617_s5 + $0x40] sm:$0xff] }
 0x12b   : > { %v1090_v5 = vmul.f32 %v4363_v54, %v1046_v0 }
 0x12c   : > { %v1979_v37 = vpop.permute.xlu1 %1978  ;;  %3278 = vmatprep.subr.bf16.mxu1 %v1100_v16 }
 0x12d   : > { %3279 = vmatpush3.bf16.msra.mxu1 %v1100_v16  ;;  %v2029_v41 = vmul.f32 %v1979_v37, %v3971_v35  ;;  %v4409_v37 = vld [vmem:[%s4617_s5 + $0x68] sm:$0xff] }
 0x12e   : > { %3602 = vset.pattern.permute.xlu1 %v3700_v38  ;;  %3275 = vmatmul.mubr.bf16.gmra.mrb[4].mxu1 %v3627_v27  ;;  %v1058_v25 = vpop.permute.xlu0 %1057  ;;  %v4403_v27 = vld [vmem:[%s4617_s5 + $0x60] sm:$0xff] }
 0x12f   : > { %1250 = vperm.xlu1 %3602, %v3642_v48   ;;  %3294 = vmatprep.mubr.bf16.mxu1 %v3020_v60  ;;  %v1093_v36 = vmul.f32 %v4387_v59, %v1058_v25  ;;  %v3664_v25 = vld [vmem:[%s4616_s4 + $0x50] sm:$0xff] }
 0x130   : > { %v1983_v24 = vpop.permute.xlu1 %1982 }
 0x131   : > { %v2030_v4 = vmul.f32 %v1983_v24, %v3966_v34 }
 0x132   : > { %v1062_v7 = vpop.permute.xlu0 %1061 }
 0x133   : > { %v2043_v12 = vpack.c.bf16 %v2030_v4, %v2029_v41  ;;  %3603 = vset.pattern.permute.xlu1 %v3699_v56 }
 0x134   : > { %2216 = vperm.xlu1 %3603, %v3645_v2  }
 0x135   : > { %v1034_v15 = vpop.permute.xlu1 %1033  ;;  %3378 = vmatprep.subr.bf16.mxu0 %v2043_v12 }
 0x136   : > { %v1087_v34 = vmul.f32 %v4323_v63, %v1034_v15  ;;  %3379 = vmatpush3.bf16.msra.mxu0 %v2043_v12  ;;  %v1074_v6 = vpop.permute.xlu0 %1073 }
 0x137   : > { %v1097_v8 = vmul.f32 %v4409_v37, %v1074_v6 }
 0x138   : > { %v1101_v35 = vpack.c.bf16 %v1087_v34, %v1086_v45  ;;  %3604 = vset.pattern.permute.xlu1 %v3700_v38  ;;  %v4434_v34 = vld [vmem:[%s4617_s5 + $0x78] sm:$0xff] }
 0x139   : > { %1254 = vperm.xlu1 %3604, %v4299_v52  }
 0x13a   : > { %v1991_v22 = vpop.permute.xlu1 %1990  ;;  %3280 = vmatprep.subr.bf16.mxu1 %v1101_v35 }
 0x13b   : > { %v2032_v29 = vmul.f32 %v1991_v22, %v3981_v43  ;;  %3281 = vmatpush3.bf16.msra.mxu1 %v1101_v35  ;;  %v893_v35 = vld [vmem:[%s3905_s28 + $0x10] sm:$0xf] }
 0x13d   : > { %v2044_v48 = vpack.c.bf16 %v2032_v29, %v2031_v46  ;;  %3605 = vset.pattern.permute.xlu1 %v3699_v56  ;;  %v3663_v46 = vld [vmem:[%s4616_s4 + $0x30] sm:$0xff] }
 0x13e   : > { %2220 = vperm.xlu1 %3605, %v4335_v21  }
 0x13f   : > { %v1038_v43 = vpop.permute.xlu1 %1037  ;;  %3380 = vmatprep.subr.bf16.mxu0 %v2044_v48 }
 0x140   : > { %v1088_v57 = vmul.f32 %v4347_v47, %v1038_v43  ;;  %3381 = vmatpush3.bf16.msra.mxu0 %v2044_v48  ;;  %v937_v48 = vshrl.u32 %v893_v35, 16  ;;  %v897_v43 = vld [vmem:[%s3905_s28 + $0x20] sm:$0xf] }
 0x141   : > { %v965_v0 = vshrl.u32 %v897_v43, 16 }
 0x142   : > { %v1102_v61 = vpack.c.bf16 %v1089_v1, %v1088_v57  ;;  %2224 = vperm.xlu1 %3605, %v3650_v31   ;;  %v940_v1 = vshll.u32 %v893_v35, 16  ;;  %v899_v57 = vld [vmem:[%s3905_s28 + $0x28] sm:$0xf]  ;;  %v3625_v31 = vld [vmem:[%s3905_s28 + $0x18] ss:$8 sps:$4 sm:$0xff]  }
 0x144   : > { %v1995_v42 = vpop.permute.xlu1 %1994  ;;  %3282 = vmatprep.subr.bf16.mxu1 %v1102_v61 }
 0x145   : > { %3283 = vmatpush3.bf16.msra.mxu1 %v1102_v61  ;;  %v2033_v17 = vmul.f32 %v1995_v42, %v4001_v51 }
 0x146   : > { %3606 = vset.pattern.permute.xlu1 %v3700_v38 }
 0x147   : > { %1266 = vperm.xlu1 %3606, %v3645_v2   ;;  %v4421_v2 = vpop.permute.xlu0 %1077 }
 0x148   : > { %v1999_v30 = vpop.permute.xlu1 %1998 }
 0x149   : > { %v2034_v53 = vmul.f32 %v1999_v30, %v3996_v50  ;;  %v4369_v50 = vld [vmem:[%s4617_s5 + $0x38] sm:$0xff] }
 0x14b   : > { %v2045_v49 = vpack.c.bf16 %v2034_v53, %v2033_v17  ;;  %3608 = vset.pattern.permute.xlu1 %v3699_v56  ;;  %v4441_v22 = vpop.permute.xlu0 %2180  ;;  %v3628_v53 = vld [vmem:[%s3905_s28 + $0x28] ss:$8 sps:$4 sm:$0xff]  }
 0x14c   : > { %2232 = vperm.xlu1 %3608, %v3651_v14  }
 0x14d   : > { %v1050_v39 = vpop.permute.xlu1 %1049  ;;  %3382 = vmatprep.subr.bf16.mxu0 %v2045_v49 }
 0x14e   : > { %v1091_v51 = vmul.f32 %v4369_v50, %v1050_v39  ;;  %3383 = vmatpush3.bf16.msra.mxu0 %v2045_v49  ;;  %v968_v49 = vshll.u32 %v897_v43, 16 }
 0x150   : > { %v1103_v56 = vpack.c.bf16 %v1091_v51, %v1090_v5  ;;  %3609 = vset.pattern.permute.xlu1 %v3700_v38  ;;  %v982_v5 = vshll.u32 %v899_v57, 16  ;;  %v4451_v51 = vpop.permute.xlu0 %2196 }
 0x151   : > { %1270 = vperm.xlu1 %3609, %v4335_v21  }
 0x152   : > { %v2007_v10 = vpop.permute.xlu1 %2006  ;;  %3284 = vmatprep.subr.bf16.mxu1 %v1103_v56 }
 0x153   : > { %v2036_v13 = vmul.f32 %v4379_v23, %v2007_v10  ;;  %3285 = vmatpush3.bf16.msra.mxu1 %v1103_v56  ;;  %v939_v56 = vrot.slane %v937_v48, 4  ;;  %v894_v10 = vld [vmem:[%s3905_s28 + $0x14] sm:$0x1] }
 0x154   : > { %v946_v6 = vshll.u32 %v894_v10, 16 }
 0x155   : > { %v2046_v55 = vpack.c.bf16 %v2036_v13, %v2035_v28  ;;  %3610 = vset.pattern.permute.xlu1 %v3701_v33  ;;  %v942_v28 = vrot.slane %v940_v1, 5  ;;  %v4470_v1 = vld [vmem:[%s4617_s5] sm:$0xff] }
 0x156   : > { %2501 = vperm.xlu1 %3610, %v4234_v58   ;;  %v3657_v58 = vld [vmem:[%s4616_s4 + $0x8] sm:$0xff] }
 0x157   : > { %v1054_v32 = vpop.permute.xlu1 %1053  ;;  %3384 = vmatprep.subr.bf16.mxu0 %v2046_v55 }
 0x158   : > { %v1092_v18 = vmul.f32 %v4393_v26, %v1054_v32  ;;  %3385 = vmatpush3.bf16.msra.mxu0 %v2046_v55  ;;  %v896_v55 = vld [vmem:[%s3905_s28 + $0x1c] sm:$0x1] }
 0x15a   : > { %v1104_v9 = vpack.c.bf16 %v1093_v36, %v1092_v18  ;;  %2505 = vperm.xlu1 %3610, %v3657_v58   ;;  %v901_v36 = vld [vmem:[%s3905_s28 + $0x30] sm:$0xf]  ;;  %v967_v18 = vrot.slane %v965_v0, 4 }
 0x15c   : > { %v2011_v19 = vpop.permute.xlu1 %2010  ;;  %3286 = vmatprep.subr.bf16.mxu1 %v1104_v9 }
 0x15d   : > { %3287 = vmatpush3.bf16.msra.mxu1 %v1104_v9  ;;  %v2037_v60 = vmul.f32 %v4403_v27, %v2011_v19  ;;  %v970_v9 = vrot.slane %v968_v49, 5  ;;  %v984_v19 = vrot.slane %v982_v5, 5  ;;  %v902_v5 = vld [vmem:[%s3905_s28 + $0x34] sm:$0x1] }
 0x15e   : > { %3611 = vset.pattern.permute.xlu1 %v3700_v38  ;;  %v4417_v38 = vld [vmem:[%s4617_s5 + $0x50] sm:$0xff] }
 0x15f   : > { %1282 = vperm.xlu1 %3611, %v3651_v14   ;;  %v1094_v4 = vmul.f32 %v4417_v38, %v1062_v7  ;;  %v979_v14 = vshrl.u32 %v899_v57, 16  ;;  %v903_v7 = vld [vmem:[%s3905_s28 + $0x38] sm:$0xf] }
 0x160   : > { %v2015_v16 = vpop.permute.xlu1 %2014  ;;  %v1010_v35 = vshll.u32 %v903_v7, 16 }
 0x161   : > { %v2038_v24 = vmul.f32 %v4409_v37, %v2015_v16  ;;  %v981_v58 = vrot.slane %v979_v14, 4  ;;  %v943_v16 = vor.u32 %v942_v28, %v939_v56  ;;  %v3667_v14 = vld [vmem:[%s4616_s4 + $0x70] sm:$0xff] }
 0x162   : > { %v1012_v56 = vrot.slane %v1010_v35, 5 }
 0x163   : > { %v2047_v41 = vpack.c.bf16 %v2038_v24, %v2037_v60  ;;  %3613 = vset.pattern.permute.xlu1 %v3701_v33  ;;  %v4427_v33 = vld [vmem:[%s4617_s5 + $0x70] sm:$0xff]  ;;  %v898_v60 = vld [vmem:[%s3905_s28 + $0x24] sm:$0x1]  ;;  %v900_v24 = vld [vmem:[%s3905_s28 + $0x2c] sm:$0x1] }
 0x164   : > { %2513 = vperm.xlu1 %3613, %v4219_v20   ;;  %v2039_v20 = vmul.f32 %v4427_v33, %v4283_v11  ;;  %v895_v11 = vld [vmem:[%s3905_s28 + $0x18] sm:$0xf]  ;;  %v988_v48 = vshll.u32 %v900_v24, 16  ;;  %v1098_v0 = vmul.f32 %v4427_v33, %v4421_v2  ;;  %v4500_v24 = vld [vmem:[%s4617_s5 + $0x10] sm:$0xff] }
 0x165   : > { %v1066_v40 = vpop.permute.xlu1 %1065  ;;  %3386 = vmatprep.subr.bf16.mxu0 %v2047_v41  ;;  %v951_v42 = vshrl.u32 %v895_v11, 16  ;;  %v954_v30 = vshll.u32 %v895_v11, 16  ;;  %v971_v11 = vor.u32 %v970_v9, %v967_v18  ;;  %v1002_v18 = vshll.u32 %v902_v5, 16 }
 0x166   : > { %v1095_v12 = vmul.f32 %v4379_v23, %v1066_v40  ;;  %3387 = vmatpush3.bf16.msra.mxu0 %v2047_v41  ;;  %v3629_v40 = vld [vmem:[%s3905_s28 + $0x38] ss:$8 sps:$4 sm:$0xff]  }
 0x167   : > { %v953_v13 = vrot.slane %v951_v42, 4  ;;  %v972_v28 = vrot.slane %v971_v11, 4 }
 0x168   : > { %v1105_v45 = vpack.c.bf16 %v1095_v12, %v1094_v4  ;;  %2517 = vperm.xlu1 %3613, %v4253_v3   ;;  %v960_v4 = vshll.u32 %v896_v55, 16  ;;  %v993_v12 = vshrl.u32 %v901_v36, 16 }
 0x16a   : > { %v2023_v15 = vpop.permute.xlu1 %2022  ;;  %3288 = vmatprep.subr.bf16.mxu1 %v1105_v45 }
 0x16b   : > { %v2040_v3 = vmul.f32 %v4434_v34, %v2023_v15  ;;  %3289 = vmatpush3.bf16.msra.mxu1 %v1105_v45  ;;  %v996_v45 = vshll.u32 %v901_v36, 16  ;;  %v3630_v15 = vld [vmem:[%s3913_s8 + $0x8] ss:$8 sps:$4 sm:$0xff]  }
 0x16c   : > { %2525 = vperm.xlu1 %3613, %v3663_v46  }
 0x16d   : > { %v2048_v29 = vpack.c.bf16 %v2040_v3, %v2039_v20  ;;  %v4464_v20 = vpop.permute.xlu0 %2212  ;;  %v1007_v3 = vshrl.u32 %v903_v7, 16 }
 0x16f   : > { %v1070_v61 = vpop.permute.xlu1 %1069  ;;  %3388 = vmatprep.subr.bf16.mxu0 %v2048_v29 }
 0x170   : > { %2533 = vperm.xlu1 %3613, %v4299_v52   ;;  %v1096_v17 = vmul.f32 %v4403_v27, %v1070_v61  ;;  %3389 = vmatpush3.bf16.msra.mxu0 %v2048_v29  ;;  %v956_v52 = vrot.slane %v954_v30, 5  ;;  %v974_v29 = vshll.u32 %v898_v60, 16  ;;  %v944_v61 = vrot.slane %v943_v16, 4 }
 0x171   : > { %v962_v30 = vrot.slane %v960_v4, 5  ;;  %v4486_v36 = vpop.permute.xlu0 %2228 }
 0x172   : > { %v1106_v39 = vpack.c.bf16 %v1097_v8, %v1096_v17  ;;  %v957_v41 = vor.u32 %v956_v52, %v953_v13  ;;  %v985_v8 = vor.u32 %v984_v19, %v981_v58  ;;  %v995_v17 = vrot.slane %v993_v12, 4 }
 0x173   : > { %3391 = vmatmul.mubr.bf16.vlgmr.msra.gmra.mrb[0].mxu0 %v3625_v31  ;;  %v948_v31 = vrot.slane %v946_v6, 5  ;;  %v976_v10 = vrot.slane %v974_v29, 5  ;;  %v990_v52 = vrot.slane %v988_v48, 5 }
 0x174   : > { %2541 = vperm.xlu1 %3613, %v3664_v25   ;;  %3290 = vmatprep.subr.bf16.mxu1 %v1106_v39  ;;  %v958_v42 = vrot.slane %v957_v41, 4  ;;  %v986_v13 = vrot.slane %v985_v8, 4  ;;  %v904_v25 = vld [vmem:[%s3905_s28 + $0x3c] sm:$0x1]  ;;  %v2237_v41 = vmul.f32 %v4500_v24, %v4441_v22 }
 0x175   : > { %v2173_v32 = vpop.permute.xlu1 %2172  ;;  %3291 = vmatpush3.bf16.msra.mxu1 %v1106_v39  ;;  %3394 = vmatprep.mubr.bf16.mxu0 %v3628_v53  ;;  %v998_v53 = vrot.slane %v996_v45, 5  ;;  %v1009_v39 = vrot.slane %v1007_v3, 4  ;;  %v949_v9 = vsel %vm4150_vm2, %v944_v61, %v948_v31  ;;  %v1016_v7 = vshll.u32 %v904_v25, 16  ;;  %v1227_v3 = vpop.permute.xlu0 %1226 }
 0x176   : > { %v2235_v43 = vmul.f32 %v4470_v1, %v2173_v32  ;;  %v963_v58 = vsel %vm4150_vm2, %v958_v42, %v962_v30  ;;  %v977_v6 = vsel %vm4150_vm2, %v972_v28, %v976_v10  ;;  %v991_v60 = vsel %vm4150_vm2, %v986_v13, %v990_v52  ;;  %v3634_v42 = vld [vmem:[%s3922_s11] ss:$8 sps:$4 sm:$0xff]  }
 0x177   : > { %v999_v32 = vor.u32 %v998_v53, %v995_v17  ;;  %v1013_v19 = vor.u32 %v1012_v56, %v1009_v39  ;;  %v1004_v45 = vrot.slane %v1002_v18, 5  ;;  %v3022_v35 = vcombine.low %v977_v6, %v991_v60 }
 0x178   : > { %2549 = vperm.xlu1 %3613, %v4335_v21   ;;  %v4476_v21 = vld [vmem:[%s4617_s5 + $0x8] sm:$0xff]  ;;  %v1018_v11 = vrot.slane %v1016_v7, 5  ;;  %v2241_v10 = vmul.f32 %v4363_v54, %v4451_v51 }
 0x179   : > { %v2177_v46 = vpop.permute.xlu1 %2176  ;;  %v1000_v12 = vrot.slane %v999_v32, 4  ;;  %v1286_v8 = vmul.f32 %v4476_v21, %v1227_v3 }
 0x17a   : > { %v2236_v57 = vmul.f32 %v4476_v21, %v2177_v46  ;;  %v1014_v46 = vrot.slane %v1013_v19, 4 }
 0x17b   : > { %3395 = vmatmul.mubr.bf16.gmra.mrb[4].mxu0 %v3629_v40  ;;  %v3021_v40 = vcombine.low %v949_v9, %v963_v58  ;;  %v1005_v22 = vsel %vm4150_vm2, %v1000_v12, %v1004_v45  ;;  %v2245_v45 = vmul.f32 %v4417_v38, %v4464_v20 }
 0x17c   : > { %v2251_v49 = vpack.c.bf16 %v2236_v57, %v2235_v43  ;;  %2557 = vperm.xlu1 %3613, %v3667_v14   ;;  %3414 = vmatprep.mubr.bf16.mxu0 %v3630_v15  ;;  %v1019_v43 = vsel %vm4150_vm2, %v1014_v46, %v1018_v11 }
 0x17d   : > { %v3023_v31 = vcombine.low %v1005_v22, %v1019_v43 }
 0x17e   : > { %v1082_v55 = vpop.permute.xlu1 %1081  ;;  %3398 = vmatprep.subr.bf16.mxu0 %v2251_v49 }
 0x17f   : > { %v1099_v2 = vmul.f32 %v4434_v34, %v1082_v55  ;;  %3399 = vmatpush3.bf16.msra.mxu0 %v2251_v49  ;;  %v1231_v49 = vpop.permute.xlu0 %1230 }
 0x180   : > { %v1287_v5 = vmul.f32 %v4500_v24, %v1231_v49 }
 0x181   : > { %v1107_v16 = vpack.c.bf16 %v1099_v2, %v1098_v0 }
 0x183   : > { %v2185_v4 = vpop.permute.xlu1 %2184  ;;  %3292 = vmatprep.subr.bf16.mxu1 %v1107_v16  ;;  %v1243_v25 = vpop.permute.xlu0 %1242 }
 0x184   : > { %v2238_v15 = vmul.f32 %v4323_v63, %v2185_v4  ;;  %3293 = vmatpush3.bf16.msra.mxu1 %v1107_v16  ;;  %v1290_v2 = vmul.f32 %v4341_v44, %v1243_v25 }
 0x186   : > { %v2252_v29 = vpack.c.bf16 %v2238_v15, %v2237_v41 }
 0x187   : > { %3295 = vmatmul.mubr.bf16.vlgmr.msra.gmra.mrb[0].mxu1 %v3021_v40  ;;  %v1247_v16 = vpop.permute.xlu0 %1246 }
 0x188   : > { %v1223_v48 = vpop.permute.xlu1 %1222  ;;  %3400 = vmatprep.subr.bf16.mxu0 %v2252_v29  ;;  %3298 = vmatprep.mubr.bf16.mxu1 %v3022_v35  ;;  %v1291_v60 = vmul.f32 %v4363_v54, %v1247_v16 }
 0x189   : > { %v1285_v57 = vmul.f32 %v4470_v1, %v1223_v48  ;;  %3401 = vmatpush3.bf16.msra.mxu0 %v2252_v29 }
 0x18b   : > { %v1301_v61 = vpack.c.bf16 %v1286_v8, %v1285_v57  ;;  %v1259_v35 = vpop.permute.xlu0 %1258  ;;  %v3060_v57 = vld [vmem:[%s3905_s28 + $0x8] sm:$0xf] }
 0x18c   : > { %v1294_v46 = vmul.f32 %v4387_v59, %v1259_v35 }
 0x18d   : > { %v2189_v30 = vpop.permute.xlu1 %2188  ;;  %3302 = vmatprep.subr.bf16.mxu1 %v1301_v61 }
 0x18e   : > { %3303 = vmatpush3.bf16.msra.mxu1 %v1301_v61  ;;  %v2239_v53 = vmul.f32 %v4347_v47, %v2189_v30  ;;  %v3062_v61 = vld [vmem:[%s3905_s28 + $0x10] sm:$0xf]  ;;  %v2389_v30 = vshrl.u32 %v3060_v57, 16 }
 0x18f   : > { %3299 = vmatmul.mubr.bf16.gmra.mrb[4].mxu1 %v3023_v31  ;;  %v1263_v31 = vpop.permute.xlu0 %1262  ;;  %v2406_v49 = vshll.u32 %v3062_v61, 16 }
 0x190   : > { %3318 = vmatprep.mubr.bf16.mxu1 %v3634_v42 }
 0x191   : > { %v2193_v17 = vpop.permute.xlu1 %2192 }
 0x192   : > { %v2240_v0 = vmul.f32 %v4341_v44, %v2193_v17  ;;  %v2392_v17 = vshll.u32 %v3060_v57, 16 }
 0x194   : > { %v2253_v14 = vpack.c.bf16 %v2240_v0, %v2239_v53  ;;  %v2403_v0 = vshrl.u32 %v3062_v61, 16 }
 0x196   : > { %v1235_v39 = vpop.permute.xlu1 %1234  ;;  %3402 = vmatprep.subr.bf16.mxu0 %v2253_v14 }
 0x197   : > { %v1288_v56 = vmul.f32 %v4323_v63, %v1235_v39  ;;  %3403 = vmatpush3.bf16.msra.mxu0 %v2253_v14  ;;  %v1295_v14 = vmul.f32 %v4417_v38, %v1263_v31 }
 0x199   : > { %v1302_v28 = vpack.c.bf16 %v1288_v56, %v1287_v5  ;;  %v2391_v56 = vrot.slane %v2389_v30, 4 }
 0x19b   : > { %v2201_v13 = vpop.permute.xlu1 %2200  ;;  %3304 = vmatprep.subr.bf16.mxu1 %v1302_v28 }
 0x19c   : > { %v2242_v52 = vmul.f32 %v4369_v50, %v2201_v13  ;;  %3305 = vmatpush3.bf16.msra.mxu1 %v1302_v28  ;;  %v2394_v28 = vrot.slane %v2392_v17, 5  ;;  %v2405_v13 = vrot.slane %v2403_v0, 4 }
 0x19e   : > { %v2254_v55 = vpack.c.bf16 %v2242_v52, %v2241_v10  ;;  %v1275_v10 = vpop.permute.xlu0 %1274  ;;  %v2408_v52 = vrot.slane %v2406_v49, 5 }
 0x1a0   : > { %v1239_v32 = vpop.permute.xlu1 %1238  ;;  %3404 = vmatprep.subr.bf16.mxu0 %v2254_v55 }
 0x1a1   : > { %v1289_v18 = vmul.f32 %v4347_v47, %v1239_v32  ;;  %3405 = vmatpush3.bf16.msra.mxu0 %v2254_v55  ;;  %v3061_v55 = vld [vmem:[%s3905_s28 + $0xc] sm:$0x1]  ;;  %v2249_v32 = vmul.f32 %v4427_v33, %v4486_v36  ;;  %v3632_v36 = vld [vmem:[%s3913_s8 + $0x28] ss:$8 sps:$4 sm:$0xff]  }
 0x1a2   : > { %v1279_v16 = vpop.permute.xlu0 %1278 }
 0x1a3   : > { %v1303_v9 = vpack.c.bf16 %v1290_v2, %v1289_v18  ;;  %v3063_v2 = vld [vmem:[%s3905_s28 + $0x14] sm:$0x1]  ;;  %v1299_v49 = vmul.f32 %v4427_v33, %v1279_v16  ;;  %v3636_v16 = vld [vmem:[%s3922_s11 + $0x20] ss:$8 sps:$4 sm:$0xff]  }
 0x1a5   : > { %v2205_v58 = vpop.permute.xlu1 %2204  ;;  %3306 = vmatprep.subr.bf16.mxu1 %v1303_v9 }
 0x1a6   : > { %3307 = vmatpush3.bf16.msra.mxu1 %v1303_v9  ;;  %v2243_v51 = vmul.f32 %v4393_v26, %v2205_v58  ;;  %v2395_v9 = vor.u32 %v2394_v28, %v2391_v56  ;;  %v2510_v35 = vpop.permute.xlu0 %2509 }
 0x1a9   : > { %v2209_v19 = vpop.permute.xlu1 %2208 }
 0x1aa   : > { %v2244_v7 = vmul.f32 %v4387_v59, %v2209_v19  ;;  %v2398_v19 = vshll.u32 %v3061_v55, 16  ;;  %v2522_v57 = vpop.permute.xlu0 %2521 }
 0x1ac   : > { %v2255_v6 = vpack.c.bf16 %v2244_v7, %v2243_v51  ;;  %v2409_v51 = vor.u32 %v2408_v52, %v2405_v13  ;;  %v2412_v7 = vshll.u32 %v3063_v2, 16  ;;  %v3071_v13 = vld [vmem:[%s3905_s28 + $0x34] sm:$0x1]  ;;  %v3635_v2 = vld [vmem:[%s3922_s11 + $0x10] ss:$8 sps:$4 sm:$0xff]  }
 0x1ae   : > { %v1251_v41 = vpop.permute.xlu1 %1250  ;;  %3406 = vmatprep.subr.bf16.mxu0 %v2255_v6  ;;  %v2530_v28 = vpop.permute.xlu0 %2529 }
 0x1af   : > { %v1292_v4 = vmul.f32 %v4369_v50, %v1251_v41  ;;  %3407 = vmatpush3.bf16.msra.mxu0 %v2255_v6  ;;  %v1298_v41 = vmul.f32 %v4409_v37, %v1275_v10  ;;  %v3069_v10 = vld [vmem:[%s3905_s28 + $0x2c] sm:$0x1] }
 0x1b1   : > { %v1304_v40 = vpack.c.bf16 %v1292_v4, %v1291_v60  ;;  %v3631_v60 = vld [vmem:[%s3913_s8 + $0x18] ss:$8 sps:$4 sm:$0xff]  }
 0x1b3   : > { %v2217_v12 = vpop.permute.xlu1 %2216  ;;  %3308 = vmatprep.subr.bf16.mxu1 %v1304_v40 }
 0x1b4   : > { %v2246_v15 = vmul.f32 %v4379_v23, %v2217_v12  ;;  %3309 = vmatpush3.bf16.msra.mxu1 %v1304_v40  ;;  %v2396_v40 = vrot.slane %v2395_v9, 4  ;;  %v2400_v12 = vrot.slane %v2398_v19, 5 }
 0x1b6   : > { %v2256_v3 = vpack.c.bf16 %v2246_v15, %v2245_v45  ;;  %v2410_v45 = vrot.slane %v2409_v51, 4  ;;  %v2414_v15 = vrot.slane %v2412_v7, 5  ;;  %v2538_v51 = vpop.permute.xlu0 %2537 }
 0x1b8   : > { %v1255_v11 = vpop.permute.xlu1 %1254  ;;  %3408 = vmatprep.subr.bf16.mxu0 %v2256_v3 }
 0x1b9   : > { %v1293_v29 = vmul.f32 %v4393_v26, %v1255_v11  ;;  %3409 = vmatpush3.bf16.msra.mxu0 %v2256_v3  ;;  %v2401_v11 = vsel %vm4150_vm2, %v2396_v40, %v2400_v12  ;;  %v3064_v12 = vld [vmem:[%s3905_s28 + $0x18] sm:$0xf] }
 0x1bb   : > { %v1305_v8 = vpack.c.bf16 %v1294_v46, %v1293_v29  ;;  %v2415_v29 = vsel %vm4150_vm2, %v2410_v45, %v2414_v15  ;;  %v3066_v45 = vld [vmem:[%s3905_s28 + $0x20] sm:$0xf] }
 0x1bd   : > { %v2221_v48 = vpop.permute.xlu1 %2220  ;;  %3310 = vmatprep.subr.bf16.mxu1 %v1305_v8 }
 0x1be   : > { %3311 = vmatpush3.bf16.msra.mxu1 %v1305_v8  ;;  %v2247_v20 = vmul.f32 %v4403_v27, %v2221_v48  ;;  %v3068_v8 = vld [vmem:[%s3905_s28 + $0x28] sm:$0xf]  ;;  %v3633_v48 = vld [vmem:[%s3913_s8 + $0x38] ss:$8 sps:$4 sm:$0xff]  }
 0x1bf   : > { %v2448_v30 = vshll.u32 %v3068_v8, 16 }
 0x1c1   : > { %v2225_v22 = vpop.permute.xlu1 %2224 }
 0x1c2   : > { %v2248_v43 = vmul.f32 %v4409_v37, %v2225_v22  ;;  %v3070_v22 = vld [vmem:[%s3905_s28 + $0x30] sm:$0xf] }
 0x1c3   : > { %v2459_v17 = vshrl.u32 %v3070_v22, 16 }
 0x1c4   : > { %v2257_v42 = vpack.c.bf16 %v2248_v43, %v2247_v20  ;;  %v3076_v43 = vcombine.low %v2401_v11, %v2415_v29  ;;  %v3072_v29 = vld [vmem:[%s3905_s28 + $0x38] sm:$0xf] }
 0x1c6   : > { %v1267_v53 = vpop.permute.xlu1 %1266  ;;  %3410 = vmatprep.subr.bf16.mxu0 %v2257_v42 }
 0x1c7   : > { %v1296_v5 = vmul.f32 %v4379_v23, %v1267_v53  ;;  %3411 = vmatpush3.bf16.msra.mxu0 %v2257_v42  ;;  %v2445_v42 = vshrl.u32 %v3068_v8, 16  ;;  %v2462_v53 = vshll.u32 %v3070_v22, 16  ;;  %v2417_v8 = vshrl.u32 %v3064_v12, 16 }
 0x1c8   : > { %v2431_v22 = vshrl.u32 %v3066_v45, 16 }
 0x1c9   : > { %v1306_v39 = vpack.c.bf16 %v1296_v5, %v1295_v14  ;;  %v2447_v5 = vrot.slane %v2445_v42, 4  ;;  %v2464_v56 = vrot.slane %v2462_v53, 5 }
 0x1cb   : > { %v2233_v25 = vpop.permute.xlu1 %2232  ;;  %3312 = vmatprep.subr.bf16.mxu1 %v1306_v39 }
 0x1cc   : > { %v2250_v18 = vmul.f32 %v4434_v34, %v2233_v25  ;;  %3313 = vmatpush3.bf16.msra.mxu1 %v1306_v39  ;;  %v2566_v25 = vmul.f32 %v4500_v24, %v2510_v35 }
 0x1ce   : > { %v2258_v58 = vpack.c.bf16 %v2250_v18, %v2249_v32  ;;  %v2454_v18 = vshll.u32 %v3069_v10, 16 }
 0x1d0   : > { %v1271_v6 = vpop.permute.xlu1 %1270  ;;  %3412 = vmatprep.subr.bf16.mxu0 %v2258_v58 }
 0x1d1   : > { %v1297_v4 = vmul.f32 %v4403_v27, %v1271_v6  ;;  %3413 = vmatpush3.bf16.msra.mxu0 %v2258_v58  ;;  %v2468_v58 = vshll.u32 %v3071_v13, 16  ;;  %v3073_v13 = vld [vmem:[%s3905_s28 + $0x3c] sm:$0x1] }
 0x1d3   : > { %v1307_v3 = vpack.c.bf16 %v1298_v41, %v1297_v4  ;;  %v2470_v4 = vrot.slane %v2468_v58, 5  ;;  %v3075_v58 = vld [vmem:[%s3905_s28 + $0x44] sm:$0x1] }
 0x1d4   : > { %3415 = vmatmul.mubr.bf16.vlgmr.msra.gmra.mrb[0].mxu0 %v3631_v60  ;;  %v2456_v60 = vrot.slane %v2454_v18, 5 }
 0x1d5   : > { %v2502_v46 = vpop.permute.xlu1 %2501  ;;  %3314 = vmatprep.subr.bf16.mxu1 %v1307_v3  ;;  %3418 = vmatprep.mubr.bf16.mxu0 %v3632_v36  ;;  %v2569_v36 = vmul.f32 %v4341_v44, %v2522_v57 }
 0x1d6   : > { %3315 = vmatpush3.bf16.msra.mxu1 %v1307_v3  ;;  %v2564_v61 = vmul.f32 %v4470_v1, %v2502_v46  ;;  %v2450_v1 = vrot.slane %v2448_v30, 5  ;;  %v3637_v3 = vld [vmem:[%s3922_s11 + $0x30] ss:$8 sps:$4 sm:$0xff]   ;;  %v2546_v46 = vpop.permute.xlu0 %2545  ;;  %v2476_v30 = vshll.u32 %v3072_v29, 16 }
 0x1d8   : > { %v2451_v32 = vor.u32 %v2450_v1, %v2447_v5  ;;  %v3065_v1 = vld [vmem:[%s3905_s28 + $0x1c] sm:$0x1] }
 0x1d9   : > { %v2506_v20 = vpop.permute.xlu1 %2505 }
 0x1da   : > { %v2565_v31 = vmul.f32 %v4476_v21, %v2506_v20  ;;  %v2461_v21 = vrot.slane %v2459_v17, 4  ;;  %v2452_v24 = vrot.slane %v2451_v32, 4  ;;  %v2434_v20 = vshll.u32 %v3066_v45, 16 }
 0x1db   : > { %v2426_v32 = vshll.u32 %v3065_v1, 16 }
 0x1dc   : > { %v2580_v0 = vpack.c.bf16 %v2565_v31, %v2564_v61  ;;  %3419 = vmatmul.mubr.bf16.gmra.mrb[4].mxu0 %v3633_v48  ;;  %v2465_v9 = vor.u32 %v2464_v56, %v2461_v21  ;;  %v2457_v35 = vsel %vm4150_vm2, %v2452_v24, %v2456_v60  ;;  %v2420_v48 = vshll.u32 %v3064_v12, 16  ;;  %v3067_v21 = vld [vmem:[%s3905_s28 + $0x24] sm:$0x1] }
 0x1dd   : > { %3438 = vmatprep.mubr.bf16.mxu0 %v3076_v43  ;;  %v3074_v43 = vld [vmem:[%s3905_s28 + $0x40] sm:$0xf]  ;;  %v2573_v31 = vmul.f32 %v4387_v59, %v2538_v51  ;;  %v2436_v5 = vrot.slane %v2434_v20, 5  ;;  %v2554_v59 = vpop.permute.xlu0 %2553  ;;  %v2575_v56 = vmul.f32 %v4379_v23, %v2546_v46  ;;  %v2496_v60 = vshll.u32 %v3075_v58, 16  ;;  %s3090_s28 = sshll.u32 %s4627_s24, 5 }
 0x1de   : > { %v1283_v14 = vpop.permute.xlu1 %1282  ;;  %3422 = vmatprep.subr.bf16.mxu0 %v2580_v0  ;;  %v2466_v41 = vrot.slane %v2465_v9, 4  ;;  %v2487_v17 = vshrl.u32 %v3074_v43, 16  ;;  %v2490_v53 = vshll.u32 %v3074_v43, 16  ;;  %v2440_v9 = vshll.u32 %v3067_v21, 16  ;;  %s429_s12 = scalar_lea.vmem %s4618_s6, %s3090_s28 }
 0x1df   : > { %v1300_v39 = vmul.f32 %v4434_v34, %v1283_v14  ;;  %3423 = vmatpush3.bf16.msra.mxu0 %v2580_v0  ;;  %v2433_v14 = vrot.slane %v2431_v22, 4  ;;  %v2577_v23 = vmul.f32 %v4409_v37, %v2554_v59 }
 0x1e0   : > { %v2471_v44 = vsel %vm4150_vm2, %v2466_v41, %v2470_v4  ;;  %v2428_v4 = vrot.slane %v2426_v32, 5 }
 0x1e1   : > { %v1308_v52 = vpack.c.bf16 %v1300_v39, %v1299_v49  ;;  %v3078_v61 = vcombine.low %v2457_v35, %v2471_v44  ;;  %v2422_v49 = vrot.slane %v2420_v48, 5  ;;  %v2437_v18 = vor.u32 %v2436_v5, %v2433_v14 }
 0x1e2   : > { %v2498_v35 = vrot.slane %v2496_v60, 5 }
 0x1e3   : > { %v2514_v55 = vpop.permute.xlu1 %2513  ;;  %3316 = vmatprep.subr.bf16.mxu1 %v1308_v52 }
 0x1e4   : > { %v2567_v19 = vmul.f32 %v4323_v63, %v2514_v55  ;;  %3317 = vmatpush3.bf16.msra.mxu1 %v1308_v52  ;;  %v2478_v52 = vrot.slane %v2476_v30, 5  ;;  %v2492_v55 = vrot.slane %v2490_v53, 5 }
 0x1e5   : > { %3446 = vmatprep.subr.bf16.mxu1 %v2580_v0 }
 0x1e6   : > { %v2581_v7 = vpack.c.bf16 %v2567_v19, %v2566_v25  ;;  %v2489_v25 = vrot.slane %v2487_v17, 4 }
 0x1e7   : > { %v2518_v6 = vpop.permute.xlu1 %2517  ;;  %3319 = vmatmul.mubr.bf16.vlgmr.msra.gmra.mrb[0].mxu1 %v3635_v2 }
 0x1e8   : > { %v2568_v40 = vmul.f32 %v4347_v47, %v2518_v6  ;;  %3454 = vmatpush3.bf16.msra.mxu1 %v2580_v0  ;;  %3424 = vmatprep.subr.bf16.mxu0 %v2581_v7  ;;  %v2571_v47 = vmul.f32 %v4369_v50, %v2530_v28  ;;  %v2473_v50 = vshrl.u32 %v3072_v29, 16  ;;  %v2419_v0 = vrot.slane %v2417_v8, 4 }
 0x1e9   : > { %3447 = vmatprep.subr.bf16.mxu1 %v2581_v7  ;;  %3425 = vmatpush3.bf16.msra.mxu0 %v2581_v7  ;;  %v2493_v24 = vor.u32 %v2492_v55, %v2489_v25 }
 0x1ea   : > { %v2582_v63 = vpack.c.bf16 %v2569_v36, %v2568_v40  ;;  %3322 = vmatprep.mubr.bf16.mxu1 %v3636_v16  ;;  %v2475_v28 = vrot.slane %v2473_v50, 4  ;;  %v2423_v2 = vor.u32 %v2422_v49, %v2419_v0  ;;  %v2562_v16 = vpop.permute.xlu0 %2561  ;;  %v2438_v36 = vrot.slane %v2437_v18, 4 }
 0x1eb   : > { %v2526_v15 = vpop.permute.xlu1 %2525  ;;  %v2442_v40 = vrot.slane %v2440_v9, 5  ;;  %v2579_v12 = vmul.f32 %v4434_v34, %v2562_v16 }
 0x1ec   : > { %v2570_v11 = vmul.f32 %v4363_v54, %v2526_v15  ;;  %3455 = vmatpush3.bf16.msra.mxu1 %v2581_v7  ;;  %3426 = vmatprep.subr.bf16.mxu0 %v2582_v63  ;;  %v2482_v7 = vshll.u32 %v3073_v13, 16  ;;  %v2479_v6 = vor.u32 %v2478_v52, %v2475_v28  ;;  %v2424_v41 = vrot.slane %v2423_v2, 4 }
 0x1ed   : > { %3448 = vmatprep.subr.bf16.mxu1 %v2582_v63  ;;  %3427 = vmatpush3.bf16.msra.mxu0 %v2582_v63 }
 0x1ee   : > { %v2583_v57 = vpack.c.bf16 %v2571_v47, %v2570_v11  ;;  %v2484_v45 = vrot.slane %v2482_v7, 5  ;;  %v2429_v44 = vsel %vm4150_vm2, %v2424_v41, %v2428_v4  ;;  %v2443_v47 = vsel %vm4150_vm2, %v2438_v36, %v2442_v40 }
 0x1ef   : > { %v2534_v42 = vpop.permute.xlu1 %2533  ;;  %3323 = vmatmul.mubr.bf16.gmra.mrb[4].mxu1 %v3637_v3  ;;  %v2494_v3 = vrot.slane %v2493_v24, 4  ;;  %v3077_v34 = vcombine.low %v2429_v44, %v2443_v47 }
 0x1f0   : > { %v2572_v54 = vmul.f32 %v4393_v26, %v2534_v42  ;;  %3456 = vmatpush3.bf16.msra.mxu1 %v2582_v63  ;;  %3428 = vmatprep.subr.bf16.mxu0 %v2583_v57 }
 0x1f1   : > { %3449 = vmatprep.subr.bf16.mxu1 %v2583_v57  ;;  %3429 = vmatpush3.bf16.msra.mxu0 %v2583_v57  ;;  %v2499_v11 = vsel %vm4150_vm2, %v2494_v3, %v2498_v35 }
 0x1f2   : > { %v2584_v39 = vpack.c.bf16 %v2573_v31, %v2572_v54  ;;  %3442 = vmatprep.mubr.bf16.mxu1 %v3078_v61 }
 0x1f3   : > { %v2542_v26 = vpop.permute.xlu1 %2541 }
 0x1f4   : > { %v2574_v10 = vmul.f32 %v4417_v38, %v2542_v26  ;;  %3457 = vmatpush3.bf16.msra.mxu1 %v2583_v57  ;;  %3430 = vmatprep.subr.bf16.mxu0 %v2584_v39 }
 0x1f5   : > { %3450 = vmatprep.subr.bf16.mxu1 %v2584_v39  ;;  %3431 = vmatpush3.bf16.msra.mxu0 %v2584_v39 }
 0x1f6   : > { %v2585_v19 = vpack.c.bf16 %v2575_v56, %v2574_v10 }
 0x1f7   : > { %v2550_v51 = vpop.permute.xlu1 %2549 }
 0x1f8   : > { %v2576_v38 = vmul.f32 %v4403_v27, %v2550_v51  ;;  %3458 = vmatpush3.bf16.msra.mxu1 %v2584_v39  ;;  %3432 = vmatprep.subr.bf16.mxu0 %v2585_v19  ;;  %v2480_v27 = vrot.slane %v2479_v6, 4 }
 0x1f9   : > { %3451 = vmatprep.subr.bf16.mxu1 %v2585_v19  ;;  %3433 = vmatpush3.bf16.msra.mxu0 %v2585_v19 }
 0x1fa   : > { %v2586_v63 = vpack.c.bf16 %v2577_v23, %v2576_v38 }
 0x1fb   : > { %v2558_v37 = vpop.permute.xlu1 %2557 }
 0x1fc   : > { %v2578_v15 = vmul.f32 %v4427_v33, %v2558_v37  ;;  %3459 = vmatpush3.bf16.msra.mxu1 %v2585_v19  ;;  %3434 = vmatprep.subr.bf16.mxu0 %v2586_v63  ;;  %v2485_v33 = vsel %vm4150_vm2, %v2480_v27, %v2484_v45 }
 0x1fd   : > { %3452 = vmatprep.subr.bf16.mxu1 %v2586_v63  ;;  %3435 = vmatpush3.bf16.msra.mxu0 %v2586_v63  ;;  %v3079_v29 = vcombine.low %v2485_v33, %v2499_v11 }
 0x1fe   : > { %v2587_v46 = vpack.c.bf16 %v2579_v12, %v2578_v15 }
 0x200   : > { %3460 = vmatpush3.bf16.msra.mxu1 %v2586_v63  ;;  %3436 = vmatprep.subr.bf16.mxu0 %v2587_v46 }
 0x201   : > { %3453 = vmatprep.subr.bf16.mxu1 %v2587_v46  ;;  %3437 = vmatpush3.bf16.msra.mxu0 %v2587_v46 }
 0x204   : > { %3461 = vmatpush3.bf16.msra.mxu1 %v2587_v46  ;;  %3439 = vmatmul.mubr.bf16.vlgmr.msra.gmra.mrb[0].mxu0 %v3077_v34 }
 0x207   : > { %3443 = vmatmul.mubr.bf16.vlgmr.msra.gmra.mrb[8].mxu1 %v3079_v29  ;;  %v3702_v29 = vmov 1966171168  }
 0x2af   : > { %v3420_v8 = vpop.f32.mrb[4].mxu0 }
 0x2b0   : > { %v2333_v48 = vpop.f32.mrb[5].mxu0 }
 0x2b1   : > { %v3421_v22 = vpop.f32.mrb[6].mxu0 }
 0x2b2   : > { %v2336_v20 = vpop.f32.mrb[7].mxu0 }
 0x2ba   : > { %v3320_v43 = vpop.f32.mrb[0].mxu1 }
 0x2bb   : > { %v1367_v57 = vpop.f32.mrb[1].mxu1 }
 0x2bc   : > { %v3321_v61 = vpop.f32.mrb[2].mxu1 }
 0x2bd   : > { %v1370_v31 = vpop.f32.mrb[3].mxu1 }
 0x2c2   : > { %v3324_v42 = vpop.f32.mrb[4].mxu1 }
 0x2c3   : > { %v3466_v50 = vadd.f32 %v3420_v8, %v3324_v42  ;;  %v1383_v54 = vpop.f32.mrb[5].mxu1  ;;  %v2779_v8 = vunpack.c.l.s4 %v3702_v29 }
 0x2c4   : > { %v3468_v62 = vadd.f32 %v2333_v48, %v1383_v54  ;;  %v3325_v30 = vpop.f32.mrb[6].mxu1  ;;  %v2781_v48 = vlaneseq }
 0x2c5   : > { %v3470_v17 = vadd.f32 %v3421_v22, %v3325_v30  ;;  %v1386_v53 = vpop.f32.mrb[7].mxu1 }
 0x2c6   : > { %v3472_v0 = vadd.f32 %v2336_v20, %v1386_v53  ;;  %vm2795_vm3 = vcmp.lt.s32.totalorder %v2781_v48, 256 }
 0x2d7   : > { %v3440_v49 = vpop.f32.mrb[0].mxu0 }
 0x2d8   : > { %v3462_v14 = vadd.f32 %v3440_v49, %v3320_v43  ;;  %v2638_v5 = vpop.f32.mrb[1].mxu0 }
 0x2d9   : > { %v3463_v59 = vadd.f32 %v2638_v5, %v1367_v57  ;;  %v3441_v39 = vpop.f32.mrb[2].mxu0 }
 0x2da   : > { %v3464_v1 = vadd.f32 %v3441_v39, %v3321_v61  ;;  %v2641_v21 = vpop.f32.mrb[3].mxu0  ;;  %v3444_v56 = vpop.f32.mrb[8].mxu1  ;;  %v2756_v23 = vmul.f32 %v3462_v14, %v3462_v14  ;;  %v2780_v61 = vunpack.c.0.s8 %v2779_v8 }
 0x2db   : > { %v3465_v26 = vadd.f32 %v2641_v21, %v1370_v31  ;;  %v3467_v28 = vadd.f32 %v3466_v50, %v3444_v56  ;;  %v2654_v10 = vpop.f32.mrb[9].mxu1  ;;  %v2754_v55 = vmul.f32 %v3463_v59, %v3463_v59  ;;  %v2782_v31 = vshrl.u32 %v2781_v48, 7 }
 0x2dc   : > { %v3107_v13 = vpack.c.bf16 %v3464_v1, %v3462_v14  ;;  %v3469_v52 = vadd.f32 %v3468_v62, %v2654_v10  ;;  %v3445_v25 = vpop.f32.mrb[10].mxu1  ;;  %v2757_v6 = vmul.f32 %v3464_v1, %v3464_v1 }
 0x2dd   : > { %v3102_v2 = vpack.c.bf16 %v3465_v26, %v3463_v59  ;;  %v2741_v32 = vadd.f32 %v3465_v26, %v3463_v59  ;;  %v2755_v18 = vmul.f32 %v3465_v26, %v3465_v26  ;;  %v2657_v9 = vpop.f32.mrb[11].mxu1  ;;  %v3471_v58 = vadd.f32 %v3470_v17, %v3445_v25 }
 0x2de   : > { %3119 = vst [vmem:[%s429_s12 + $0x8] sm:$0xff] %v3107_v13   ;;  %v3473_v19 = vadd.f32 %v3472_v0, %v2657_v9  ;;  %v2758_v4 = vmul.f32 %v3469_v52, %v3469_v52  ;;  %v2760_v37 = vmul.f32 %v3467_v28, %v3467_v28  ;;  %v2783_v62 = vsub.s32 %v2780_v61, %v2782_v31 }
 0x2df   : > { %3103 = vst [vmem:[%s429_s12] sm:$0xff] %v3102_v2   ;;  %v2742_v51 = vadd.f32 %v3462_v14, %v2741_v32  ;;  %v2762_v7 = vadd.f32 %v2755_v18, %v2754_v55  ;;  %v3117_v16 = vpack.c.bf16 %v3471_v58, %v3467_v28  ;;  %v2761_v27 = vmul.f32 %v3471_v58, %v3471_v58 }
 0x2e0   : > { %v3112_v38 = vpack.c.bf16 %v3473_v19, %v3469_v52  ;;  %v2759_v12 = vmul.f32 %v3473_v19, %v3473_v19 }
 0x2e1   : > { %v2763_v24 = vadd.f32 %v2762_v7, %v2756_v23  ;;  %v2743_v60 = vadd.f32 %v3464_v1, %v2742_v51  ;;  %3121 = vst [vmem:[%s429_s12 + $0x18] sm:$0xff] %v3117_v16  }
 0x2e2   : > { %3120 = vst [vmem:[%s429_s12 + $0x10] sm:$0xff] %v3112_v38  }
 0x2e3   : > { %v2744_v41 = vadd.f32 %v3469_v52, %v2743_v60  ;;  %v2764_v36 = vadd.f32 %v2763_v24, %v2757_v6 }
 0x2e5   : > { %v2765_v40 = vadd.f32 %v2764_v36, %v2758_v4  ;;  %v2745_v63 = vadd.f32 %v3473_v19, %v2744_v41 }
 0x2e7   : > { %v2746_v45 = vadd.f32 %v3467_v28, %v2745_v63  ;;  %v2766_v15 = vadd.f32 %v2765_v40, %v2759_v12 }
 0x2e9   : > { %v2747_v3 = vadd.f32 %v3471_v58, %v2746_v45  ;;  %v2767_v35 = vadd.f32 %v2766_v15, %v2760_v37 }
 0x2eb   : > { %v2748_v44 = vrot.slane %v2747_v3, 4  ;;  %v2768_v47 = vadd.f32 %v2767_v35, %v2761_v27 }
 0x2ed   : > { %v2749_v46 = vadd.f32 %v2748_v44, %v2747_v3  ;;  %v2769_v34 = vrot.slane %v2768_v47, 4 }
 0x2ef   : > { %v2750_v33 = vrot.slane %v2749_v46, 2  ;;  %v2770_v11 = vadd.f32 %v2769_v34, %v2768_v47 }
 0x2f1   : > { %v2751_v22 = vadd.f32 %v2750_v33, %v2749_v46  ;;  %v2771_v20 = vrot.slane %v2770_v11, 2 }
 0x2f3   : > { %v2752_v43 = vrot.slane %v2751_v22, 1  ;;  %v2772_v57 = vadd.f32 %v2771_v20, %v2770_v11 }
 0x2f5   : > { %v2773_v42 = vrot.slane %v2772_v57, 1  ;;  %v2753_v50 = vadd.f32 %v2752_v43, %v2751_v22 }
 0x2f7   : > { %v2774_v54 = vadd.f32 %v2773_v42, %v2772_v57 }
 0x2f9   : > { %v2777_v30 = vcombine.low %v2753_v50, %v2774_v54 }
 0x2fb   : > { %v2784_v17 = vrot.slane %v2777_v30, %v2783_v62 }
 0x2fd   : > { %v2791_v53 = vrot.slane %v2784_v17, %v2783_v62 }
 0x2ff   : > { %2797 = vst.msk [vmem:[%s437_s15] sm:$0x3] %vm2795_vm3, %v2791_v53 }
 0x300 PF: > { %s18_s26 = sadd.s32 1, %s3691_s26   ;;  %s4622_s24 = smov %s3687_s25 }
 0x301   : > { %p15_p5 = scmp.ge.s32.totalorder %s18_s26, 4   ;;  %s4623_s25 = smov %s4625_s27 }
 0x303   :  { %17 = sbr.rel (!%p15_p5) target bundleno = 2 (0x2), region = 97 }

// kernel: sepconv_forward.6
= control target key start
LH: loop header
LB: loop body
LE: loop exit
PB: predicated region body
PF: predicated region fallthrough
CT: control target
= control target key end

     0   :  { %s3687_s15 = smov 0   ;;  %s3689_s16 = smov 0   ;;  %s4665_s0 = inlined_call_operand.vmem [shape: bf16[2,1,10,10,128], index: 0, kind: input, shape index: {}]   ;;  %s4666_s1 = inlined_call_operand.vmem [shape: f32[128,9], index: 1, kind: input, shape index: {}]   ;;  %s4667_s2 = inlined_call_operand.vmem [shape: f32[128,128], index: 2, kind: input, shape index: {}]   ;;  %s4668_s3 = inlined_call_operand.vmem [shape: bf16[2,1,64,128], index: 3, kind: output, shape index: {0}]   ;;  %s4669_s4 = inlined_call_operand.vmem [shape: f32[2,1,1,256], index: 4, kind: output, shape index: {1}]  }
   0x1   :  { %s3691_s17 = smov 0  }
   0x2 LB: > { %s27_s18 = sadd.s32 1, %s3646_s16  ;;  %p2905_p0 = scmp.ge.s32.totalorder %s3650_s17, 1  ;;  %s3650_s17 = sphi %s3691_s17, %s15_s17   ;;  %s3646_s16 = sphi %s3689_s16, %s4701_s16   ;;  %s3642_s15 = sphi %s3687_s15, %s4700_s15  }
   0x3   : > { %p29_p1 = scmp.ge.s32.totalorder %s27_s18, 2  ;;  %p187_p2 = scmp.lt.s32.totalorder %s3650_s17, 3 }
   0x5   : > { %s4703_s18 = smov (%p29_p1, %s27_s18), 0  ;;  %p188_p3 = pnand %p2905_p0, %p187_p2 }
   0x7   : > { %191 = sbr.rel (%p188_p3) target bundleno = 776 (0x308), region = 32 }
   0xe   : > { %v3710_v0 = vld [vmem:[%s4666_s1 + $0x10] sm:$0xff]  ;;  %v3715_v1 = vld [vmem:[%s4666_s1] sm:$0xff]  ;;  %v3652_v2 = vmov 0   ;;  %v3722_v3 = vld [vmem:[%s4666_s1 + $0x18] sm:$0xff]  ;;  %v3653_v17 = vmov 1   ;;  %v3654_v18 = vmov 4  }
   0xf   : > { %3532 = vset.pattern.permute.xlu1 %v3652_v2  ;;  %3531 = vset.pattern.permute.xlu0 %v3652_v2  ;;  %v3727_v4 = vld [vmem:[%s4666_s1 + $0x8] sm:$0xff]  ;;  %v3739_v6 = vld [vmem:[%s4666_s1 + $0x20] sm:$0xff]  ;;  %v3746_v7 = vld [vmem:[%s4666_s1 + $0x38] sm:$0xff]  ;;  %v3655_v19 = vmov 5   ;;  %p229_p4 = scmp.lt.s32.totalorder %s3642_s15, 1  ;;  %v4676_v45 = vmov 6  }
  0x10   : > { %308 = vperm.xlu1 %3532, %v3710_v0   ;;  %298 = vperm.xlu0 %3531, %v3715_v1   ;;  %v3734_v5 = vld [vmem:[%s4666_s1 + $0x28] sm:$0xff]  ;;  %v3751_v8 = vld [vmem:[%s4666_s1 + $0x30] sm:$0xff]  ;;  %v3763_v10 = vld [vmem:[%s4666_s1 + $0x40] sm:$0xff]  ;;  %vm513_vm0 = vsmask.f32 3328  ;;  %vm853_vm3 = vcmask 1042432  }
  0x11   : > { %v3758_v9 = vld [vmem:[%s4666_s1 + $0x48] sm:$0xff]  ;;  %v3770_v11 = vld [vmem:[%s4666_s1 + $0x58] sm:$0xff]  ;;  %v3775_v12 = vld [vmem:[%s4666_s1 + $0x50] sm:$0xff]  ;;  %s4705_s15 = smov (!%p229_p4, %s3642_s15), 1  ;;  %vm514_vm1 = vsmask.f32 7440 }
  0x12   : > { %v3782_v13 = vld [vmem:[%s4666_s1 + $0x68] sm:$0xff]  ;;  %v3787_v14 = vld [vmem:[%s4666_s1 + $0x60] sm:$0xff]  ;;  %v3794_v15 = vld [vmem:[%s4666_s1 + $0x78] sm:$0xff]  ;;  %s3496_s29 = smul.u32 80, %s4705_s15  ;;  %vm854_vm4 = vcmask 1046532   ;;  %s2909_s26 = sshll.u32 %s4705_s15, 1 }
  0x13   : > { %v3799_v16 = vld [vmem:[%s4666_s1 + $0x70] sm:$0xff]  ;;  %vm3848_vm2 = vmor %vm513_vm0, %vm514_vm1  ;;  %v3883_v47 = vld [vmem:[%s4667_s2] sm:$0xff] }
  0x14   : > { %313 = vperm.xlu1 %3532, %v3722_v3   ;;  %303 = vperm.xlu0 %3531, %v3727_v4   ;;  %s3837_s6 = scalar_lea.vmem %s4665_s0, %s3496_s29  ;;  %v3889_v49 = vld [vmem:[%s4667_s2 + $0x18] sm:$0xff]  ;;  %v3894_v50 = vld [vmem:[%s4667_s2 + $0x8] sm:$0xff]  ;;  %v3901_v52 = vld [vmem:[%s4667_s2 + $0x10] sm:$0xff]  ;;  %s254_s29 = scalar_lea.vmem %s4669_s4, %s2909_s26 }
  0x15   : > { %v2942_v20 = vld [vmem:[%s3837_s6 + $0x8] sm:$0xf]  ;;  %v2944_v21 = vld [vmem:[%s3837_s6 + $0x10] sm:$0xf]  ;;  %v2943_v30 = vld [vmem:[%s3837_s6 + $0xc] sm:$0x1] }
  0x16   : > { %v1308_v22 = vshrl.u32 %v2942_v20, 16  ;;  %v1311_v23 = vshll.u32 %v2942_v20, 16  ;;  %v1322_v24 = vshrl.u32 %v2944_v21, 16  ;;  %v1325_v25 = vshll.u32 %v2944_v21, 16  ;;  %v2945_v31 = vld [vmem:[%s3837_s6 + $0x14] sm:$0x1]  ;;  %vm4132_vm5 = vmor %vm853_vm3, %vm854_vm4 }
  0x17   : > { %v1317_v33 = vshll.u32 %v2943_v30, 16  ;;  %v1331_v35 = vshll.u32 %v2945_v31, 16  ;;  %v3584_v44 = vld [vmem:[%s3837_s6] ss:$8 sps:$4 sm:$0xff]   ;;  %v3930_v20 = vld [vmem:[%s4667_s2 + $0x30] sm:$0xff] }
  0x18   : > { %323 = vperm.xlu1 %3532, %v3734_v5   ;;  %318 = vperm.xlu0 %3531, %v3739_v6   ;;  %v1310_v26 = vrot.slane %v1308_v22, 4  ;;  %v1313_v27 = vrot.slane %v1311_v23, 5  ;;  %v1324_v28 = vrot.slane %v1322_v24, 4  ;;  %v1327_v29 = vrot.slane %v1325_v25, 5  ;;  %v3910_v57 = vld [vmem:[%s4667_s2 + $0x28] sm:$0xff]  ;;  %v3915_v58 = vld [vmem:[%s4667_s2 + $0x20] sm:$0xff] }
  0x19   : > { %v1319_v37 = vrot.slane %v1317_v33, 5  ;;  %v1333_v40 = vrot.slane %v1331_v35, 5  ;;  %3216 = vmatprep.mubr.bf16.mxu1 %v3584_v44  ;;  %v3960_v35 = vld [vmem:[%s4667_s2 + $0x50] sm:$0xff] }
  0x1a   : > { %v1314_v32 = vor.u32 %v1313_v27, %v1310_v26  ;;  %v1328_v34 = vor.u32 %v1327_v29, %v1324_v28  ;;  %v3940_v26 = vld [vmem:[%s4667_s2 + $0x48] sm:$0xff]  ;;  %v3945_v27 = vld [vmem:[%s4667_s2 + $0x40] sm:$0xff]  ;;  %v4674_v28 = vmov 2   ;;  %4688 = vst [vmem:[#allocation5_spill] sm:$0xff] %v3960_v35 }
  0x1b   : > { %4686 = vst [vmem:[#allocation3_spill] sm:$0xff] %v3945_v27 }
  0x1c   : > { %333 = vperm.xlu1 %3532, %v3746_v7   ;;  %328 = vperm.xlu0 %3531, %v3751_v8   ;;  %v1315_v36 = vrot.slane %v1314_v32, 4  ;;  %v1329_v39 = vrot.slane %v1328_v34, 4  ;;  %v3955_v34 = vld [vmem:[%s4667_s2 + $0x58] sm:$0xff] }
  0x1d   : > { %4687 = vst [vmem:[#allocation4_spill] sm:$0xff] %v3955_v34 }
  0x1e   : > { %v1320_v41 = vsel %vm3848_vm2, %v1315_v36, %v1319_v37  ;;  %v1334_v42 = vsel %vm3848_vm2, %v1329_v39, %v1333_v40 }
  0x1f   : > { %v2958_v43 = vcombine.low %v1320_v41, %v1334_v42  ;;  %v3969_v42 = vld [vmem:[%s4667_s2 + $0x68] sm:$0xff] }
  0x20   : > { %343 = vperm.xlu1 %3532, %v3758_v9   ;;  %338 = vperm.xlu0 %3531, %v3763_v10  }
  0x21   : > { %3312 = vmatprep.mubr.bf16.mxu0 %v2958_v43  ;;  %v3974_v43 = vld [vmem:[%s4667_s2 + $0x60] sm:$0xff] }
  0x24   : > { %353 = vperm.xlu1 %3532, %v3770_v11   ;;  %348 = vperm.xlu0 %3531, %v3775_v12  }
  0x28   : > { %363 = vperm.xlu1 %3532, %v3782_v13   ;;  %358 = vperm.xlu0 %3531, %v3787_v14  }
  0x2c   : > { %373 = vperm.xlu1 %3532, %v3794_v15   ;;  %368 = vperm.xlu0 %3531, %v3799_v16  }
  0x30   : > { %3533 = vset.pattern.permute.xlu1 %v3653_v17  ;;  %3535 = vset.pattern.permute.xlu0 %v3654_v18 }
  0x31   : > { %633 = vperm.xlu1 %3533, %v3727_v4   ;;  %1424 = vperm.xlu0 %3535, %v3727_v4  }
  0x35   : > { %637 = vperm.xlu1 %3533, %v3710_v0   ;;  %1436 = vperm.xlu0 %3535, %v3739_v6  }
  0x39   : > { %645 = vperm.xlu1 %3533, %v3739_v6   ;;  %1444 = vperm.xlu0 %3535, %v3751_v8  }
  0x3d   : > { %653 = vperm.xlu1 %3533, %v3751_v8   ;;  %1452 = vperm.xlu0 %3535, %v3763_v10  }
  0x41   : > { %3534 = vset.pattern.permute.xlu1 %v3654_v18  ;;  %1460 = vperm.xlu0 %3535, %v3775_v12  }
  0x42   : > { %1420 = vperm.xlu1 %3534, %v3715_v1  }
  0x45   : > { %1468 = vperm.xlu0 %3535, %v3787_v14  }
  0x46   : > { %1428 = vperm.xlu1 %3534, %v3710_v0  }
  0x49   : > { %1476 = vperm.xlu0 %3535, %v3799_v16  }
  0x4a   : > { %1432 = vperm.xlu1 %3534, %v3722_v3  }
  0x4d   : > { %3536 = vset.pattern.permute.xlu0 %v3655_v19 }
  0x4e   : > { %1440 = vperm.xlu1 %3534, %v3734_v5   ;;  %1677 = vperm.xlu0 %3536, %v3715_v1  }
  0x52   : > { %1448 = vperm.xlu1 %3534, %v3746_v7   ;;  %1689 = vperm.xlu0 %3536, %v3722_v3  }
  0x56   : > { %1456 = vperm.xlu1 %3534, %v3758_v9   ;;  %1697 = vperm.xlu0 %3536, %v3734_v5  }
  0x5a   : > { %1464 = vperm.xlu1 %3534, %v3770_v11   ;;  %1705 = vperm.xlu0 %3536, %v3746_v7  }
  0x5e   : > { %1472 = vperm.xlu1 %3534, %v3782_v13   ;;  %1713 = vperm.xlu0 %3536, %v3758_v9  }
  0x62   : > { %1480 = vperm.xlu1 %3534, %v3794_v15   ;;  %1721 = vperm.xlu0 %3536, %v3770_v11  }
  0x66   : > { %3537 = vset.pattern.permute.xlu1 %v3655_v19  ;;  %1733 = vperm.xlu0 %3536, %v3799_v16  }
  0x67   : > { %1681 = vperm.xlu1 %3537, %v3727_v4  }
  0x6a   : > { %3541 = vset.pattern.permute.xlu0 %v3653_v17 }
  0x6b   : > { %1685 = vperm.xlu1 %3537, %v3710_v0   ;;  %629 = vperm.xlu0 %3541, %v3715_v1  }
  0x6f   : > { %1693 = vperm.xlu1 %3537, %v3739_v6   ;;  %641 = vperm.xlu0 %3541, %v3722_v3  }
  0x73   : > { %1701 = vperm.xlu1 %3537, %v3751_v8   ;;  %649 = vperm.xlu0 %3541, %v3734_v5  }
  0x77   : > { %1709 = vperm.xlu1 %3537, %v3763_v10   ;;  %657 = vperm.xlu0 %3541, %v3746_v7  }
  0x7b   : > { %1717 = vperm.xlu1 %3537, %v3775_v12   ;;  %665 = vperm.xlu0 %3541, %v3758_v9  }
  0x7f   : > { %3538 = vset.pattern.permute.xlu1 %v3653_v17  ;;  %669 = vperm.xlu0 %3541, %v3775_v12  }
  0x80   : > { %661 = vperm.xlu1 %3538, %v3763_v10  }
  0x83   : > { %681 = vperm.xlu0 %3541, %v3782_v13  }
  0x84   : > { %3539 = vset.pattern.permute.xlu1 %v3655_v19 }
  0x85   : > { %1725 = vperm.xlu1 %3539, %v3787_v14  }
  0x87   : > { %685 = vperm.xlu0 %3541, %v3799_v16  }
  0x89   : > { %1729 = vperm.xlu1 %3539, %v3782_v13  }
  0x8b   : > { %3546 = vset.pattern.permute.xlu0 %v4676_v45 }
  0x8c   : > { %1887 = vperm.xlu0 %3546, %v3710_v0  }
  0x8d   : > { %3540 = vset.pattern.permute.xlu1 %v3653_v17 }
  0x8e   : > { %673 = vperm.xlu1 %3540, %v3770_v11  }
  0x8f   : > { %v309_v46 = vpop.permute.xlu1 %308  ;;  %v299_v48 = vpop.permute.xlu0 %298 }
  0x90   : > { %1903 = vperm.xlu0 %3546, %v3751_v8   ;;  %v376_v51 = vmul.f32 %v299_v48, %v3883_v47  ;;  %v378_v59 = vmul.f32 %v309_v46, %v3901_v52 }
  0x92   : > { %3542 = vset.pattern.permute.xlu1 %v3655_v19  ;;  %v3925_v19 = vld [vmem:[%s4667_s2 + $0x38] sm:$0xff] }
  0x93   : > { %v314_v53 = vpop.permute.xlu1 %313  ;;  %1737 = vperm.xlu1 %3542, %v3794_v15   ;;  %v304_v54 = vpop.permute.xlu0 %303 }
  0x94   : > { %v379_v55 = vmul.f32 %v314_v53, %v3889_v49  ;;  %v377_v56 = vmul.f32 %v304_v54, %v3894_v50  ;;  %1919 = vperm.xlu0 %3546, %v3775_v12   ;;  %v3983_v53 = vld [vmem:[%s4667_s2 + $0x78] sm:$0xff]  ;;  %v3988_v54 = vld [vmem:[%s4667_s2 + $0x70] sm:$0xff] }
  0x96   : > { %v392_v60 = vpack.c.bf16 %v377_v56, %v376_v51  ;;  %v393_v63 = vpack.c.bf16 %v379_v55, %v378_v59  ;;  %v497_v55 = vld [vmem:[%s3837_s6] sm:$0xf]  ;;  %v499_v56 = vld [vmem:[%s3837_s6 + $0x8] sm:$0xf] }
  0x97   : > { %v324_v61 = vpop.permute.xlu1 %323  ;;  %3543 = vset.pattern.permute.xlu1 %v3653_v17  ;;  %v319_v62 = vpop.permute.xlu0 %318  ;;  %v517_v59 = vshrl.u32 %v497_v55, 16 }
  0x98   : > { %v381_v2 = vmul.f32 %v324_v61, %v3910_v57  ;;  %v380_v18 = vmul.f32 %v319_v62, %v3915_v58  ;;  %677 = vperm.xlu1 %3543, %v3787_v14   ;;  %3200 = vmatprep.subr.bf16.mxu1 %v392_v60  ;;  %v531_v61 = vshrl.u32 %v499_v56, 16 }
  0x99   : > { %3201 = vmatpush3.bf16.msra.mxu1 %v392_v60  ;;  %1935 = vperm.xlu0 %3546, %v3799_v16   ;;  %v520_v60 = vshll.u32 %v497_v55, 16 }
  0x9a   : > { %3202 = vmatprep.subr.bf16.mxu1 %v393_v63  ;;  %v394_v23 = vpack.c.bf16 %v381_v2, %v380_v18  ;;  %v534_v2 = vshll.u32 %v499_v56, 16 }
  0x9b   : > { %v334_v21 = vpop.permute.xlu1 %333  ;;  %v329_v22 = vpop.permute.xlu0 %328 }
  0x9c   : > { %v383_v24 = vmul.f32 %v334_v21, %v3925_v19  ;;  %v382_v25 = vmul.f32 %v329_v22, %v3930_v20  ;;  %3544 = vset.pattern.permute.xlu1 %v4676_v45 }
  0x9d   : > { %1879 = vperm.xlu1 %3544, %v3715_v1   ;;  %3203 = vmatpush3.bf16.msra.mxu1 %v393_v63 }
  0x9e   : > { %3204 = vmatprep.subr.bf16.mxu1 %v394_v23  ;;  %3559 = vset.pattern.permute.xlu0 %v4674_v28  ;;  %v395_v31 = vpack.c.bf16 %v383_v24, %v382_v25  ;;  %v522_v24 = vrot.slane %v520_v60, 5  ;;  %v533_v25 = vrot.slane %v531_v61, 4 }
  0x9f   : > { %v344_v29 = vpop.permute.xlu1 %343  ;;  %v339_v30 = vpop.permute.xlu0 %338  ;;  %893 = vperm.xlu0 %3559, %v3727_v4  }
  0xa0   : > { %v385_v32 = vmul.f32 %v344_v29, %v3940_v26  ;;  %v384_v33 = vmul.f32 %v339_v30, %v3945_v27  ;;  %v536_v29 = vrot.slane %v534_v2, 5  ;;  %v498_v30 = vld [vmem:[%s3837_s6 + $0x4] sm:$0x1] }
  0xa1   : > { %1883 = vperm.xlu1 %3544, %v3727_v4   ;;  %3205 = vmatpush3.bf16.msra.mxu1 %v394_v23  ;;  %v519_v23 = vrot.slane %v517_v59, 4 }
  0xa2   : > { %3206 = vmatprep.subr.bf16.mxu1 %v395_v31  ;;  %v396_v39 = vpack.c.bf16 %v385_v32, %v384_v33 }
  0xa3   : > { %v354_v36 = vpop.permute.xlu1 %353  ;;  %v349_v37 = vpop.permute.xlu0 %348  ;;  %897 = vperm.xlu0 %3559, %v3710_v0  }
  0xa4   : > { %v387_v40 = vmul.f32 %v354_v36, %v3955_v34  ;;  %v386_v41 = vmul.f32 %v349_v37, %v3960_v35  ;;  %v523_v37 = vor.u32 %v522_v24, %v519_v23 }
  0xa5   : > { %3545 = vset.pattern.permute.xlu1 %v3653_v17  ;;  %3207 = vmatpush3.bf16.msra.mxu1 %v395_v31  ;;  %v500_v31 = vld [vmem:[%s3837_s6 + $0xc] sm:$0x1] }
  0xa6   : > { %689 = vperm.xlu1 %3545, %v3794_v15   ;;  %3208 = vmatprep.subr.bf16.mxu1 %v396_v39  ;;  %v397_v17 = vpack.c.bf16 %v387_v40, %v386_v41  ;;  %v537_v40 = vor.u32 %v536_v29, %v533_v25  ;;  %v540_v41 = vshll.u32 %v500_v31, 16 }
  0xa7   : > { %v364_v44 = vpop.permute.xlu1 %363  ;;  %v359_v46 = vpop.permute.xlu0 %358  ;;  %909 = vperm.xlu0 %3559, %v3734_v5  }
  0xa8   : > { %v389_v48 = vmul.f32 %v364_v44, %v3969_v42  ;;  %v388_v51 = vmul.f32 %v359_v46, %v3974_v43  ;;  %v538_v55 = vrot.slane %v537_v40, 4  ;;  %v542_v56 = vrot.slane %v540_v41, 5 }
  0xa9   : > { %3209 = vmatpush3.bf16.msra.mxu1 %v396_v39  ;;  %v526_v39 = vshll.u32 %v498_v30, 16 }
  0xaa   : > { %3547 = vset.pattern.permute.xlu1 %v4676_v45  ;;  %3210 = vmatprep.subr.bf16.mxu1 %v397_v17  ;;  %v398_v18 = vpack.c.bf16 %v389_v48, %v388_v51  ;;  %v3586_v48 = vld [vmem:[%s3837_s6 + $0x20] ss:$8 sps:$4 sm:$0xff]  }
  0xab   : > { %v374_v62 = vpop.permute.xlu1 %373  ;;  %1891 = vperm.xlu1 %3547, %v3722_v3   ;;  %v369_v63 = vpop.permute.xlu0 %368  ;;  %913 = vperm.xlu0 %3559, %v3751_v8   ;;  %v528_v51 = vrot.slane %v526_v39, 5 }
  0xac   : > { %v391_v21 = vmul.f32 %v374_v62, %v3983_v53  ;;  %v390_v22 = vmul.f32 %v369_v63, %v3988_v54  ;;  %v543_v62 = vsel %vm3848_vm2, %v538_v55, %v542_v56  ;;  %v2948_v55 = vld [vmem:[%s3837_s6 + $0x20] sm:$0xf]  ;;  %v4670_v56 = vmov 3  }
  0xad   : > { %3211 = vmatpush3.bf16.msra.mxu1 %v397_v17  ;;  %v3585_v17 = vld [vmem:[%s3837_s6 + $0x10] ss:$8 sps:$4 sm:$0xff]  }
  0xae   : > { %3212 = vmatprep.subr.bf16.mxu1 %v398_v18  ;;  %v399_v32 = vpack.c.bf16 %v391_v21, %v390_v22  ;;  %v4672_v22 = vmov 7  }
  0xaf   : > { %3548 = vset.pattern.permute.xlu1 %v4674_v28  ;;  %925 = vperm.xlu0 %3559, %v3758_v9  }
  0xb0   : > { %v4001_v33 = vpop.permute.xlu1 %633  ;;  %889 = vperm.xlu1 %3548, %v3715_v1   ;;  %v1425_v36 = vpop.permute.xlu0 %1424  ;;  %v524_v1 = vrot.slane %v523_v37, 4 }
  0xb1   : > { %3213 = vmatpush3.bf16.msra.mxu1 %v398_v18  ;;  %v3587_v18 = vld [vmem:[%s3837_s6 + $0x30] ss:$8 sps:$4 sm:$0xff]   ;;  %v1484_v23 = vmul.f32 %v1425_v36, %v3894_v50 }
  0xb2   : > { %3214 = vmatprep.subr.bf16.mxu1 %v399_v32  ;;  %v529_v61 = vsel %vm3848_vm2, %v524_v1, %v528_v51  ;;  %v2946_v1 = vld [vmem:[%s3837_s6 + $0x18] sm:$0xf] }
  0xb3   : > { %929 = vperm.xlu0 %3559, %v3775_v12   ;;  %v2914_v21 = vcombine.low %v529_v61, %v543_v62  ;;  %v2950_v61 = vld [vmem:[%s3837_s6 + $0x28] sm:$0xf] }
  0xb4   : > { %v4005_v44 = vpop.permute.xlu1 %637  ;;  %3549 = vset.pattern.permute.xlu1 %v4676_v45  ;;  %v1437_v46 = vpop.permute.xlu0 %1436 }
  0xb5   : > { %1895 = vperm.xlu1 %3549, %v3739_v6   ;;  %3215 = vmatpush3.bf16.msra.mxu1 %v399_v32  ;;  %v1487_v40 = vmul.f32 %v1437_v46, %v3915_v58 }
  0xb7   : > { %941 = vperm.xlu0 %3559, %v3782_v13  }
  0xb8   : > { %v4012_v59 = vpop.permute.xlu1 %645  ;;  %v1445_v60 = vpop.permute.xlu0 %1444  ;;  %3217 = vmatmul.mubr.bf16.vlgmr.msra.gmra.mrb[0].mxu1 %v3585_v17 }
  0xb9   : > { %1899 = vperm.xlu1 %3549, %v3734_v5   ;;  %3220 = vmatprep.mubr.bf16.mxu1 %v3586_v48  ;;  %v1489_v51 = vmul.f32 %v1445_v60, %v3930_v20  ;;  %v1350_v60 = vshrl.u32 %v2948_v55, 16 }
  0xbb   : > { %945 = vperm.xlu0 %3559, %v3799_v16  }
  0xbc   : > { %v4020_v63 = vpop.permute.xlu1 %653  ;;  %v1453_v2 = vpop.permute.xlu0 %1452 }
  0xbd   : > { %4689 = vst [vmem:[#allocation6_spill] sm:$0xff] %v4020_v63  ;;  %3550 = vset.pattern.permute.xlu1 %v4674_v28 }
  0xbe   : > { %901 = vperm.xlu1 %3550, %v3722_v3  }
  0xbf   : > { %3564 = vset.pattern.permute.xlu0 %v4672_v22 }
  0xc0   : > { %v4027_v24 = vpop.permute.xlu0 %1460  ;;  %2216 = vperm.xlu0 %3564, %v3710_v0   ;;  %3221 = vmatmul.mubr.bf16.gmra.mrb[4].mxu1 %v3587_v18 }
  0xc1   : > { %v1421_v25 = vpop.permute.xlu1 %1420  ;;  %3240 = vmatprep.mubr.bf16.mxu1 %v2914_v21  ;;  %v1336_v21 = vshrl.u32 %v2946_v1, 16 }
  0xc2   : > { %v1483_v29 = vmul.f32 %v1421_v25, %v3883_v47  ;;  %3551 = vset.pattern.permute.xlu1 %v4676_v45  ;;  %v2952_v25 = vld [vmem:[%s3837_s6 + $0x30] sm:$0xf] }
  0xc3   : > { %1907 = vperm.xlu1 %3551, %v3746_v7  }
  0xc4   : > { %v1499_v30 = vpack.c.bf16 %v1484_v23, %v1483_v29  ;;  %v4033_v3 = vpop.permute.xlu0 %1468  ;;  %2232 = vperm.xlu0 %3564, %v3751_v8   ;;  %v1339_v23 = vshll.u32 %v2946_v1, 16 }
  0xc5   : > { %v1429_v31 = vpop.permute.xlu1 %1428 }
  0xc6   : > { %3296 = vmatprep.subr.bf16.mxu0 %v1499_v30  ;;  %v1485_v37 = vmul.f32 %v1429_v31, %v3901_v52  ;;  %v1364_v31 = vshrl.u32 %v2950_v61, 16  ;;  %v1341_v1 = vrot.slane %v1339_v23, 5 }
  0xc7   : > { %3552 = vset.pattern.permute.xlu1 %v4674_v28  ;;  %3297 = vmatpush3.bf16.msra.mxu0 %v1499_v30  ;;  %v1353_v30 = vshll.u32 %v2948_v55, 16  ;;  %v1352_v55 = vrot.slane %v1350_v60, 4 }
  0xc8   : > { %905 = vperm.xlu1 %3552, %v3739_v6   ;;  %v4038_v32 = vpop.permute.xlu0 %1476  ;;  %2248 = vperm.xlu0 %3564, %v3775_v12  }
  0xc9   : > { %v1433_v36 = vpop.permute.xlu1 %1432 }
  0xca   : > { %v1486_v39 = vmul.f32 %v1433_v36, %v3889_v49  ;;  %v1367_v36 = vshll.u32 %v2950_v61, 16  ;;  %v1355_v61 = vrot.slane %v1353_v30, 5  ;;  %v4690_v30 = vmov 6  }
  0xcc   : > { %v1500_v41 = vpack.c.bf16 %v1486_v39, %v1485_v37  ;;  %3553 = vset.pattern.permute.xlu1 %v4676_v45  ;;  %2264 = vperm.xlu0 %3564, %v3799_v16   ;;  %v1491_v37 = vmul.f32 %v1453_v2, %v3945_v27  ;;  %v2947_v2 = vld [vmem:[%s3837_s6 + $0x1c] sm:$0x1]  ;;  %v2953_v27 = vld [vmem:[%s3837_s6 + $0x34] sm:$0x1] }
  0xcd   : > { %1911 = vperm.xlu1 %3553, %v3763_v10   ;;  %v1441_v6 = vpop.permute.xlu1 %1440  ;;  %v4047_v17 = vpop.permute.xlu0 %1677 }
  0xce   : > { %v1488_v48 = vmul.f32 %v1441_v6, %v3910_v57  ;;  %3298 = vmatprep.subr.bf16.mxu0 %v1500_v41 }
  0xcf   : > { %3299 = vmatpush3.bf16.msra.mxu0 %v1500_v41  ;;  %v1381_v41 = vshll.u32 %v2952_v25, 16 }
  0xd0   : > { %v1501_v46 = vpack.c.bf16 %v1488_v48, %v1487_v40  ;;  %3577 = vset.pattern.permute.xlu0 %v4670_v56  ;;  %v1378_v40 = vshrl.u32 %v2952_v25, 16  ;;  %v1338_v48 = vrot.slane %v1336_v21, 4  ;;  %v1369_v25 = vrot.slane %v1367_v36, 5  ;;  %v2949_v56 = vld [vmem:[%s3837_s6 + $0x24] sm:$0x1] }
  0xd1   : > { %1915 = vperm.xlu1 %3553, %v3758_v9   ;;  %v1449_v62 = vpop.permute.xlu1 %1448  ;;  %v4056_v18 = vpop.permute.xlu0 %1689  ;;  %1095 = vperm.xlu0 %3577, %v3727_v4   ;;  %v1493_v21 = vmul.f32 %v4027_v24, %v3960_v35  ;;  %v1345_v24 = vshll.u32 %v2947_v2, 16 }
  0xd2   : > { %v1490_v29 = vmul.f32 %v1449_v62, %v3925_v19  ;;  %3300 = vmatprep.subr.bf16.mxu0 %v1501_v46  ;;  %v1366_v62 = vrot.slane %v1364_v31, 4  ;;  %v1380_v22 = vrot.slane %v1378_v40, 4  ;;  %v1342_v45 = vor.u32 %v1341_v1, %v1338_v48 }
  0xd3   : > { %3301 = vmatpush3.bf16.msra.mxu0 %v1501_v46  ;;  %v1359_v40 = vshll.u32 %v2949_v56, 16  ;;  %v1495_v1 = vmul.f32 %v4033_v3, %v3974_v43  ;;  %v4691_v3 = vmov 2  }
  0xd4   : > { %v1502_v39 = vpack.c.bf16 %v1490_v29, %v1489_v51  ;;  %v2954_v51 = vld [vmem:[%s3837_s6 + $0x38] sm:$0xf]  ;;  %v2956_v29 = vld [vmem:[%s3837_s6 + $0x40] sm:$0xf]  ;;  %v1343_v2 = vrot.slane %v1342_v45, 4 }
  0xd5   : > { %3554 = vset.pattern.permute.xlu1 %v4674_v28  ;;  %v1457_v4 = vpop.permute.xlu1 %1456  ;;  %v4063_v6 = vpop.permute.xlu0 %1697  ;;  %1099 = vperm.xlu0 %3577, %v3710_v0   ;;  %v2951_v0 = vld [vmem:[%s3837_s6 + $0x2c] sm:$0x1]  ;;  %v1392_v63 = vshrl.u32 %v2954_v51, 16  ;;  %v1406_v31 = vshrl.u32 %v2956_v29, 16  ;;  %v1409_v36 = vshll.u32 %v2956_v29, 16 }
  0xd6   : > { %v1492_v46 = vmul.f32 %v1457_v4, %v3940_v26  ;;  %917 = vperm.xlu1 %3554, %v3746_v7   ;;  %3302 = vmatprep.subr.bf16.mxu0 %v1502_v39  ;;  %v1383_v4 = vrot.slane %v1381_v41, 5  ;;  %v1370_v41 = vor.u32 %v1369_v25, %v1366_v62  ;;  %v1373_v48 = vshll.u32 %v2951_v0, 16  ;;  %v2957_v45 = vld [vmem:[%s3837_s6 + $0x44] sm:$0x1] }
  0xd7   : > { %3303 = vmatpush3.bf16.msra.mxu0 %v1502_v39  ;;  %v1395_v39 = vshll.u32 %v2954_v51, 16  ;;  %v1394_v29 = vrot.slane %v1392_v63, 4  ;;  %v1408_v62 = vrot.slane %v1406_v31, 4  ;;  %v1411_v25 = vrot.slane %v1409_v36, 5 }
  0xd8   : > { %v1503_v23 = vpack.c.bf16 %v1492_v46, %v1491_v37  ;;  %v1356_v37 = vor.u32 %v1355_v61, %v1352_v55  ;;  %v1384_v46 = vor.u32 %v1383_v4, %v1380_v22  ;;  %v1347_v55 = vrot.slane %v1345_v24, 5  ;;  %v2955_v61 = vld [vmem:[%s3837_s6 + $0x3c] sm:$0x1] }
  0xd9   : > { %v1465_v28 = vpop.permute.xlu1 %1464  ;;  %v4075_v7 = vpop.permute.xlu0 %1705  ;;  %1111 = vperm.xlu0 %3577, %v3734_v5   ;;  %v1361_v22 = vrot.slane %v1359_v40, 5  ;;  %v1497_v63 = vmul.f32 %v4038_v32, %v3988_v54  ;;  %v1401_v31 = vshll.u32 %v2955_v61, 16  ;;  %v1415_v40 = vshll.u32 %v2957_v45, 16  ;;  %v2963_v61 = vld [vmem:[%s3837_s6 + $0xc] sm:$0x1] }
  0xda   : > { %v1494_v60 = vmul.f32 %v1465_v28, %v3955_v34  ;;  %3555 = vset.pattern.permute.xlu1 %v4690_v30  ;;  %3304 = vmatprep.subr.bf16.mxu0 %v1503_v23  ;;  %v1387_v28 = vshll.u32 %v2953_v27, 16  ;;  %v1397_v34 = vrot.slane %v1395_v39, 5  ;;  %v1357_v27 = vrot.slane %v1356_v37, 4 }
  0xdb   : > { %1923 = vperm.xlu1 %3555, %v3770_v11   ;;  %3305 = vmatpush3.bf16.msra.mxu0 %v1503_v23  ;;  %v1375_v23 = vrot.slane %v1373_v48, 5  ;;  %v1412_v37 = vor.u32 %v1411_v25, %v1408_v62  ;;  %v1348_v32 = vsel %vm3848_vm2, %v1343_v2, %v1347_v55  ;;  %v1740_v48 = vmul.f32 %v4047_v17, %v3883_v47  ;;  %v2964_v62 = vld [vmem:[%s3837_s6 + $0x10] sm:$0xe]  ;;  %v2965_v25 = vld [vmem:[%s3837_s6 + $0x14] sm:$0x1] }
  0xdc   : > { %v1504_v5 = vpack.c.bf16 %v1494_v60, %v1493_v21  ;;  %v1371_v21 = vrot.slane %v1370_v41, 4  ;;  %v1389_v4 = vrot.slane %v1387_v28, 5  ;;  %v1398_v24 = vor.u32 %v1397_v34, %v1394_v29 }
  0xdd   : > { %v1473_v51 = vpop.permute.xlu1 %1472  ;;  %v4084_v35 = vpop.permute.xlu0 %1713  ;;  %1115 = vperm.xlu0 %3577, %v3751_v8   ;;  %v1385_v8 = vrot.slane %v1384_v46, 4  ;;  %v1403_v46 = vrot.slane %v1401_v31, 5  ;;  %v1413_v2 = vrot.slane %v1412_v37, 4  ;;  %v1417_v29 = vrot.slane %v1415_v40, 5 }
  0xde   : > { %v1496_v56 = vmul.f32 %v1473_v51, %v3969_v42  ;;  %3306 = vmatprep.subr.bf16.mxu0 %v1504_v5  ;;  %v1376_v34 = vsel %vm3848_vm2, %v1371_v21, %v1375_v23  ;;  %v1745_v31 = vmul.f32 %v4063_v6, %v3910_v57  ;;  %v694_v6 = vmul.f32 %v4005_v44, %v3901_v52 }
  0xdf   : > { %3556 = vset.pattern.permute.xlu1 %v4691_v3  ;;  %3307 = vmatpush3.bf16.msra.mxu0 %v1504_v5  ;;  %v1399_v5 = vrot.slane %v1398_v24, 4 }
  0xe0   : > { %v1505_v0 = vpack.c.bf16 %v1496_v56, %v1495_v1  ;;  %921 = vperm.xlu1 %3556, %v3763_v10   ;;  %v1362_v10 = vsel %vm3848_vm2, %v1357_v27, %v1361_v22  ;;  %v2962_v56 = vld [vmem:[%s3837_s6 + $0x8] sm:$0xe]  ;;  %v1743_v27 = vmul.f32 %v4056_v18, %v3889_v49  ;;  %v693_v18 = vmul.f32 %v4001_v33, %v3894_v50 }
  0xe1   : > { %v1481_v39 = vpop.permute.xlu1 %1480  ;;  %v4094_v60 = vpop.permute.xlu0 %1721  ;;  %1127 = vperm.xlu0 %3577, %v3758_v9   ;;  %v1390_v9 = vsel %vm3848_vm2, %v1385_v8, %v1389_v4  ;;  %v2959_v51 = vcombine.low %v1348_v32, %v1362_v10  ;;  %v2978_v21 = vrot.slane %v2962_v56, 9  ;;  %v2979_v8 = vrot.slane %v2964_v62, 9 }
  0xe2   : > { %v1498_v36 = vmul.f32 %v1481_v39, %v3983_v53  ;;  %3308 = vmatprep.subr.bf16.mxu0 %v1505_v0  ;;  %v2960_v17 = vcombine.low %v1376_v34, %v1390_v9  ;;  %v1650_v4 = vrot.slane %v2965_v25, 5 }
  0xe3   : > { %3309 = vmatpush3.bf16.msra.mxu0 %v1505_v0  ;;  %v1646_v0 = vrot.slane %v2963_v61, 5 }
  0xe4   : > { %v1506_v41 = vpack.c.bf16 %v1498_v36, %v1497_v63  ;;  %3557 = vset.pattern.permute.xlu1 %v4690_v30  ;;  %v1418_v63 = vsel %vm3848_vm2, %v1413_v2, %v1417_v29  ;;  %v1651_v32 = vsel %vm4132_vm5, %v2979_v8, %v1650_v4 }
  0xe5   : > { %1927 = vperm.xlu1 %3557, %v3787_v14   ;;  %v4110_v1 = vpop.permute.xlu0 %1733  ;;  %1131 = vperm.xlu0 %3577, %v3775_v12   ;;  %v1404_v12 = vsel %vm3848_vm2, %v1399_v5, %v1403_v46  ;;  %v1647_v40 = vsel %vm4132_vm5, %v2978_v21, %v1646_v0  ;;  %v4189_v21 = vld [vmem:[%s4666_s1 + $0x38] sm:$0xff]  ;;  %v4196_v0 = vld [vmem:[%s4666_s1 + $0x8] sm:$0xff] }
  0xe6   : > { %v1682_v28 = vpop.permute.xlu1 %1681  ;;  %3310 = vmatprep.subr.bf16.mxu0 %v1506_v41  ;;  %v2961_v33 = vcombine.low %v1404_v12, %v1418_v63  ;;  %v2986_v9 = vcombine.low %v1647_v40, %v1651_v32  ;;  %v4227_v40 = vld [vmem:[%s4666_s1 + $0x68] sm:$0xff] }
  0xe7   : > { %v1741_v55 = vmul.f32 %v1682_v28, %v3894_v50  ;;  %3311 = vmatpush3.bf16.msra.mxu0 %v1506_v41 }
  0xe9   : > { %v1756_v22 = vpack.c.bf16 %v1741_v55, %v1740_v48  ;;  %1931 = vperm.xlu1 %3557, %v3782_v13   ;;  %1143 = vperm.xlu0 %3577, %v3782_v13   ;;  %v3660_v48 = vmov 8  }
  0xea   : > { %v1686_v23 = vpop.permute.xlu1 %1685  ;;  %v630_v45 = vpop.permute.xlu0 %629  ;;  %3313 = vmatmul.mubr.bf16.vlgmr.msra.gmra.mrb[0].mxu0 %v2959_v51 }
  0xeb   : > { %v1742_v39 = vmul.f32 %v1686_v23, %v3901_v52  ;;  %v692_v24 = vmul.f32 %v630_v45, %v3883_v47  ;;  %3320 = vmatprep.subr.bf16.mxu0 %v1756_v22  ;;  %3316 = vmatprep.mubr.bf16.mxu0 %v2960_v17 }
  0xec   : > { %3321 = vmatpush3.bf16.msra.mxu0 %v1756_v22  ;;  %v4182_v22 = vld [vmem:[%s4666_s1] sm:$0xff] }
  0xed   : > { %v1757_v36 = vpack.c.bf16 %v1743_v27, %v1742_v39  ;;  %v708_v37 = vpack.c.bf16 %v693_v18, %v692_v24  ;;  %3558 = vset.pattern.permute.xlu1 %v4691_v3  ;;  %1147 = vperm.xlu0 %3577, %v3799_v16   ;;  %v4698_v27 = vmov 7   ;;  %v4209_v18 = vld [vmem:[%s4666_s1 + $0x58] sm:$0xff] }
  0xee   : > { %933 = vperm.xlu1 %3558, %v3770_v11   ;;  %v1694_v47 = vpop.permute.xlu1 %1693  ;;  %v642_v50 = vpop.permute.xlu0 %641  ;;  %v1747_v11 = vmul.f32 %v4075_v7, %v3925_v19  ;;  %v1749_v7 = vmul.f32 %v4084_v35, %v3940_v26  ;;  %v4696_v35 = vld [vmem:[#allocation4_spill] sm:$0xff]  ;;  %v4215_v39 = vld [vmem:[%s4666_s1 + $0x78] sm:$0xff] }
  0xef   : > { %v1744_v10 = vmul.f32 %v1694_v47, %v3915_v58  ;;  %v695_v41 = vmul.f32 %v642_v50, %v3889_v49  ;;  %3224 = vmatprep.subr.bf16.mxu1 %v708_v37  ;;  %3322 = vmatprep.subr.bf16.mxu0 %v1757_v36  ;;  %v696_v49 = vmul.f32 %v4012_v59, %v3915_v58  ;;  %v3596_v58 = vld [vmem:[%s4666_s1 + $0x10] sm:$0xff]  ;;  %v4695_v59 = vld [vmem:[#allocation3_spill] sm:$0xff]  ;;  %v2967_v47 = vld [vmem:[%s3837_s6 + $0x1c] sm:$0x1] }
  0xf0   : > { %3225 = vmatpush3.bf16.msra.mxu1 %v708_v37  ;;  %3323 = vmatpush3.bf16.msra.mxu0 %v1757_v36  ;;  %v1751_v55 = vmul.f32 %v4094_v60, %v4696_v35  ;;  %v2966_v36 = vld [vmem:[%s3837_s6 + $0x18] sm:$0xe]  ;;  %v2968_v50 = vld [vmem:[%s3837_s6 + $0x20] sm:$0xe] }
  0xf1   : > { %v1758_v16 = vpack.c.bf16 %v1745_v31, %v1744_v10  ;;  %v709_v34 = vpack.c.bf16 %v695_v41, %v694_v6  ;;  %3582 = vset.pattern.permute.xlu0 %v3660_v48  ;;  %v2980_v6 = vrot.slane %v2966_v36, 9  ;;  %v4234_v10 = vld [vmem:[%s4666_s1 + $0x18] sm:$0xff]  ;;  %v4273_v36 = vld [vmem:[%s4666_s1 + $0x20] sm:$0xff] }
  0xf2   : > { %3560 = vset.pattern.permute.xlu1 %v4690_v30  ;;  %v1702_v52 = vpop.permute.xlu1 %1701  ;;  %v650_v44 = vpop.permute.xlu0 %649  ;;  %3317 = vmatmul.mubr.bf16.gmra.mrb[4].mxu0 %v2961_v33  ;;  %v2969_v33 = vld [vmem:[%s3837_s6 + $0x24] sm:$0x1] }
  0xf3   : > { %v1746_v5 = vmul.f32 %v1702_v52, %v3930_v20  ;;  %v697_v46 = vmul.f32 %v650_v44, %v3910_v57  ;;  %1939 = vperm.xlu1 %3560, %v3794_v15   ;;  %3226 = vmatprep.subr.bf16.mxu1 %v709_v34  ;;  %v4694_v57 = vld [vmem:[#allocation6_spill] sm:$0xff] }
  0xf4   : > { %3324 = vmatprep.subr.bf16.mxu0 %v1758_v16  ;;  %3227 = vmatpush3.bf16.msra.mxu1 %v709_v34  ;;  %v698_v15 = vmul.f32 %v4694_v57, %v3930_v20  ;;  %v4174_v20 = vld [vmem:[%s4666_s1 + $0x28] sm:$0xff]  ;;  %v1658_v34 = vrot.slane %v2969_v33, 5 }
  0xf5   : > { %v1759_v28 = vpack.c.bf16 %v1747_v11, %v1746_v5  ;;  %v710_v30 = vpack.c.bf16 %v697_v46, %v696_v49  ;;  %3325 = vmatpush3.bf16.msra.mxu0 %v1758_v16  ;;  %3336 = vmatprep.mubr.bf16.mxu0 %v2986_v9  ;;  %v1654_v11 = vrot.slane %v2967_v47, 5  ;;  %v2981_v16 = vrot.slane %v2968_v50, 9  ;;  %v2970_v9 = vld [vmem:[%s3837_s6 + $0x28] sm:$0xe]  ;;  %v2971_v49 = vld [vmem:[%s3837_s6 + $0x2c] sm:$0x1] }
  0xf6   : > { %v1710_v51 = vpop.permute.xlu1 %1709  ;;  %v658_v2 = vpop.permute.xlu0 %657  ;;  %2473 = vperm.xlu0 %3582, %v3596_v58   ;;  %v2972_v5 = vld [vmem:[%s3837_s6 + $0x30] sm:$0xe]  ;;  %v2973_v46 = vld [vmem:[%s3837_s6 + $0x34] sm:$0x1] }
  0xf7   : > { %v1748_v29 = vmul.f32 %v1710_v51, %v4695_v59  ;;  %v699_v56 = vmul.f32 %v658_v2, %v3925_v19  ;;  %3561 = vset.pattern.permute.xlu1 %v4691_v3  ;;  %3228 = vmatprep.subr.bf16.mxu1 %v710_v30  ;;  %v4697_v19 = vld [vmem:[#allocation5_spill] sm:$0xff]  ;;  %v4699_v51 = vmov 3   ;;  %v1662_v2 = vrot.slane %v2971_v49, 5 }
  0xf8   : > { %3326 = vmatprep.subr.bf16.mxu0 %v1759_v28  ;;  %937 = vperm.xlu1 %3561, %v3787_v14   ;;  %v2983_v58 = vrot.slane %v2972_v5, 9  ;;  %v1666_v57 = vrot.slane %v2973_v46, 5  ;;  %v502_v46 = vld [vmem:[%s3837_s6 + $0x14] sm:$0x1] }
  0xf9   : > { %v1760_v17 = vpack.c.bf16 %v1749_v7, %v1748_v29  ;;  %v711_v61 = vpack.c.bf16 %v699_v56, %v698_v15  ;;  %3229 = vmatpush3.bf16.msra.mxu1 %v710_v30  ;;  %3327 = vmatpush3.bf16.msra.mxu0 %v1759_v28  ;;  %v2982_v28 = vrot.slane %v2970_v9, 9  ;;  %v1754_v15 = vmul.f32 %v4110_v1, %v3988_v54 }
  0xfa   : > { %v1718_v62 = vpop.permute.xlu1 %1717  ;;  %2485 = vperm.xlu0 %3582, %v4174_v20   ;;  %v666_v14 = vpop.permute.xlu0 %665  ;;  %v1659_v29 = vsel %vm4132_vm5, %v2981_v16, %v1658_v34 }
  0xfb   : > { %v1750_v25 = vmul.f32 %v1718_v62, %v4697_v19  ;;  %3230 = vmatprep.subr.bf16.mxu1 %v711_v61  ;;  %3328 = vmatprep.subr.bf16.mxu0 %v1760_v17  ;;  %v701_v12 = vmul.f32 %v666_v14, %v3940_v26  ;;  %v4202_v26 = vld [vmem:[%s4666_s1 + $0x48] sm:$0xff]  ;;  %v2975_v62 = vld [vmem:[%s3837_s6 + $0x3c] sm:$0x1]  ;;  %v1667_v14 = vsel %vm4132_vm5, %v2983_v58, %v1666_v57  ;;  %v509_v58 = vld [vmem:[%s3837_s6 + $0x30] sm:$0xf] }
  0xfc   : > { %3562 = vset.pattern.permute.xlu1 %v4698_v27  ;;  %v1670_v50 = vrot.slane %v2975_v62, 5 }
  0xfd   : > { %v1761_v60 = vpack.c.bf16 %v1751_v55, %v1750_v25  ;;  %3231 = vmatpush3.bf16.msra.mxu1 %v711_v61  ;;  %3329 = vmatpush3.bf16.msra.mxu0 %v1760_v17  ;;  %v503_v55 = vld [vmem:[%s3837_s6 + $0x18] sm:$0xf]  ;;  %v1663_v25 = vsel %vm4132_vm5, %v2982_v28, %v1662_v2 }
  0xfe   : > { %2208 = vperm.xlu1 %3562, %v4182_v22   ;;  %2493 = vperm.xlu0 %3582, %v4189_v21   ;;  %v670_v8 = vpop.permute.xlu0 %669  ;;  %v2974_v61 = vld [vmem:[%s3837_s6 + $0x38] sm:$0xe] }
  0xff   : > { %v662_v23 = vpop.permute.xlu1 %661  ;;  %3330 = vmatprep.subr.bf16.mxu0 %v1761_v60  ;;  %v702_v41 = vmul.f32 %v670_v8, %v4697_v19  ;;  %v2984_v47 = vrot.slane %v2974_v61, 9  ;;  %v508_v61 = vld [vmem:[%s3837_s6 + $0x2c] sm:$0x1] }
 0x100   : > { %v700_v45 = vmul.f32 %v662_v23, %v4695_v59  ;;  %v1655_v59 = vsel %vm4132_vm5, %v2980_v6, %v1654_v11  ;;  %v505_v23 = vld [vmem:[%s3837_s6 + $0x20] sm:$0xf] }
 0x101   : > { %3331 = vmatpush3.bf16.msra.mxu0 %v1761_v60  ;;  %v2987_v19 = vcombine.low %v1655_v59, %v1659_v29  ;;  %v2976_v60 = vld [vmem:[%s3837_s6 + $0x40] sm:$0xe]  ;;  %v573_v11 = vshrl.u32 %v505_v23, 16  ;;  %v576_v34 = vshll.u32 %v505_v23, 16 }
 0x102   : > { %v712_v63 = vpack.c.bf16 %v701_v12, %v700_v45  ;;  %2212 = vperm.xlu1 %3562, %v4196_v0   ;;  %2501 = vperm.xlu0 %3582, %v4202_v26   ;;  %v682_v24 = vpop.permute.xlu0 %681  ;;  %v2977_v12 = vld [vmem:[%s3837_s6 + $0x44] sm:$0x1]  ;;  %v2985_v6 = vrot.slane %v2976_v60, 9 }
 0x104   : > { %v1726_v4 = vpop.permute.xlu1 %1725  ;;  %3232 = vmatprep.subr.bf16.mxu1 %v712_v63 }
 0x105   : > { %3233 = vmatpush3.bf16.msra.mxu1 %v712_v63  ;;  %v1752_v37 = vmul.f32 %v1726_v4, %v3974_v43  ;;  %v559_v4 = vshrl.u32 %v503_v55, 16 }
 0x106   : > { %3563 = vset.pattern.permute.xlu1 %v4691_v3  ;;  %2509 = vperm.xlu0 %3582, %v4209_v18   ;;  %v4239_v44 = vpop.permute.xlu0 %685 }
 0x107   : > { %949 = vperm.xlu1 %3563, %v4215_v39  }
 0x108   : > { %v1730_v31 = vpop.permute.xlu1 %1729 }
 0x109   : > { %v1753_v3 = vmul.f32 %v1730_v31, %v3969_v42  ;;  %v507_v31 = vld [vmem:[%s3837_s6 + $0x28] sm:$0xf] }
 0x10a   : > { %2517 = vperm.xlu0 %3582, %v4227_v40   ;;  %v587_v9 = vshrl.u32 %v507_v31, 16 }
 0x10b   : > { %v1762_v32 = vpack.c.bf16 %v1753_v3, %v1752_v37  ;;  %3565 = vset.pattern.permute.xlu1 %v4698_v27  ;;  %v4257_v1 = vpop.permute.xlu0 %1887  ;;  %v705_v37 = vmul.f32 %v682_v24, %v3969_v42  ;;  %v562_v3 = vshll.u32 %v503_v55, 16  ;;  %v554_v55 = vshll.u32 %v502_v46, 16 }
 0x10c   : > { %2220 = vperm.xlu1 %3565, %v4234_v10   ;;  %v589_v59 = vrot.slane %v587_v9, 4 }
 0x10d   : > { %v674_v52 = vpop.permute.xlu1 %673  ;;  %3332 = vmatprep.subr.bf16.mxu0 %v1762_v32  ;;  %v564_v28 = vrot.slane %v562_v3, 5  ;;  %v596_v3 = vshll.u32 %v508_v61, 16  ;;  %v4330_v61 = vld [vmem:[%s4667_s2 + $0x10] sm:$0xff] }
 0x10e   : > { %v703_v7 = vmul.f32 %v674_v52, %v4696_v35  ;;  %3333 = vmatpush3.bf16.msra.mxu0 %v1762_v32  ;;  %2525 = vperm.xlu0 %3582, %v4215_v39   ;;  %v501_v35 = vld [vmem:[%s3837_s6 + $0x10] sm:$0xf]  ;;  %v2988_v32 = vcombine.low %v1663_v25, %v1667_v14  ;;  %v590_v52 = vshll.u32 %v507_v31, 16  ;;  %v601_v25 = vshrl.u32 %v509_v58, 16 }
 0x10f   : > { %v545_v63 = vshrl.u32 %v501_v35, 16  ;;  %v548_v8 = vshll.u32 %v501_v35, 16  ;;  %v4278_v49 = vpop.permute.xlu0 %1903  ;;  %v604_v14 = vshll.u32 %v509_v58, 16 }
 0x110   : > { %v713_v30 = vpack.c.bf16 %v703_v7, %v702_v41  ;;  %3566 = vset.pattern.permute.xlu1 %v4699_v51  ;;  %v1674_v41 = vrot.slane %v2977_v12, 5  ;;  %v561_v7 = vrot.slane %v559_v4, 4  ;;  %v592_v29 = vrot.slane %v590_v52, 5 }
 0x111   : > { %1091 = vperm.xlu1 %3566, %v4182_v22   ;;  %v547_v42 = vrot.slane %v545_v63, 4  ;;  %v550_v24 = vrot.slane %v548_v8, 5  ;;  %v3588_v8 = vld [vmem:[%s3837_s6 + $0x10] ss:$8 sps:$4 sm:$0xff]   ;;  %v606_v9 = vrot.slane %v604_v14, 5  ;;  %v706_v52 = vmul.f32 %v4239_v44, %v3988_v54 }
 0x112   : > { %v1738_v56 = vpop.permute.xlu1 %1737  ;;  %3234 = vmatprep.subr.bf16.mxu1 %v713_v30  ;;  %v1675_v2 = vsel %vm4132_vm5, %v2985_v6, %v1674_v41  ;;  %v565_v62 = vor.u32 %v564_v28, %v561_v7  ;;  %v556_v41 = vrot.slane %v554_v55, 5  ;;  %v824_v14 = vld [vmem:[%s3837_s6 + $0xc] sm:$0x1] }
 0x113   : > { %v1755_v17 = vmul.f32 %v1738_v56, %v3983_v53  ;;  %3235 = vmatpush3.bf16.msra.mxu1 %v713_v30  ;;  %v504_v30 = vld [vmem:[%s3837_s6 + $0x1c] sm:$0x1]  ;;  %v511_v56 = vld [vmem:[%s3837_s6 + $0x38] sm:$0xf]  ;;  %v551_v35 = vor.u32 %v550_v24, %v547_v42  ;;  %v4293_v60 = vpop.permute.xlu0 %1919  ;;  %v510_v24 = vld [vmem:[%s3837_s6 + $0x34] sm:$0x1] }
 0x114   : > { %v615_v23 = vshrl.u32 %v511_v56, 16 }
 0x115   : > { %v1763_v45 = vpack.c.bf16 %v1755_v17, %v1754_v15  ;;  %3567 = vset.pattern.permute.xlu1 %v4698_v27  ;;  %v575_v15 = vrot.slane %v573_v11, 4  ;;  %v506_v17 = vld [vmem:[%s3837_s6 + $0x24] sm:$0x1]  ;;  %v552_v6 = vrot.slane %v551_v35, 4  ;;  %v566_v11 = vrot.slane %v565_v62, 4 }
 0x116   : > { %2224 = vperm.xlu1 %3567, %v4273_v36   ;;  %v582_v31 = vshll.u32 %v506_v17, 16  ;;  %v821_v17 = vld [vmem:[%s3837_s6] sm:$0xe]  ;;  %v1944_v62 = vmul.f32 %v4330_v61, %v4257_v1 }
 0x117   : > { %v678_v33 = vpop.permute.xlu1 %677  ;;  %3334 = vmatprep.subr.bf16.mxu0 %v1763_v45 }
 0x118   : > { %v704_v16 = vmul.f32 %v678_v33, %v3974_v43  ;;  %3335 = vmatpush3.bf16.msra.mxu0 %v1763_v45  ;;  %v1671_v43 = vsel %vm4132_vm5, %v2984_v47, %v1670_v50  ;;  %v618_v45 = vshll.u32 %v511_v56, 16  ;;  %v4299_v47 = vld [vmem:[%s4667_s2] sm:$0xff]  ;;  %v4305_v33 = vld [vmem:[%s4667_s2 + $0x8] sm:$0xff]  ;;  %v584_v28 = vrot.slane %v582_v31, 5 }
 0x119   : > { %v2989_v12 = vcombine.low %v1671_v43, %v1675_v2  ;;  %v598_v43 = vrot.slane %v596_v3, 5  ;;  %v512_v2 = vld [vmem:[%s3837_s6 + $0x3c] sm:$0x1] }
 0x11a   : > { %v714_v5 = vpack.c.bf16 %v705_v37, %v704_v16  ;;  %2228 = vperm.xlu1 %3567, %v4174_v20   ;;  %v578_v20 = vrot.slane %v576_v34, 5  ;;  %v593_v37 = vor.u32 %v592_v29, %v589_v59  ;;  %v603_v34 = vrot.slane %v601_v25, 4  ;;  %v823_v25 = vld [vmem:[%s3837_s6 + $0x8] sm:$0xe] }
 0x11b   : > { %3337 = vmatmul.mubr.bf16.vlgmr.msra.gmra.mrb[0].mxu0 %v2987_v19  ;;  %v568_v19 = vshll.u32 %v504_v30, 16  ;;  %v620_v46 = vrot.slane %v618_v45, 5  ;;  %v624_v56 = vshll.u32 %v512_v2, 16 }
 0x11c   : > { %v1880_v57 = vpop.permute.xlu1 %1879  ;;  %3236 = vmatprep.subr.bf16.mxu1 %v714_v5  ;;  %3340 = vmatprep.mubr.bf16.mxu0 %v2988_v32  ;;  %v579_v4 = vor.u32 %v578_v20, %v575_v15  ;;  %v594_v30 = vrot.slane %v593_v37, 4  ;;  %v607_v44 = vor.u32 %v606_v9, %v603_v34  ;;  %v610_v15 = vshll.u32 %v510_v24, 16 }
 0x11d   : > { %3237 = vmatpush3.bf16.msra.mxu1 %v714_v5  ;;  %v1942_v50 = vmul.f32 %v4299_v47, %v1880_v57  ;;  %v570_v16 = vrot.slane %v568_v19, 5  ;;  %v617_v5 = vrot.slane %v615_v23, 4  ;;  %v4314_v57 = vpop.permute.xlu0 %1935  ;;  %v557_v20 = vsel %vm3848_vm2, %v552_v6, %v556_v41  ;;  %v822_v19 = vld [vmem:[%s3837_s6 + $0x4] sm:$0x1] }
 0x11e   : > { %3568 = vset.pattern.permute.xlu1 %v4699_v51  ;;  %v580_v7 = vrot.slane %v579_v4, 4  ;;  %v599_v55 = vsel %vm3848_vm2, %v594_v30, %v598_v43  ;;  %v608_v45 = vrot.slane %v607_v44, 4  ;;  %v626_v3 = vrot.slane %v624_v56, 5 }
 0x11f   : > { %1103 = vperm.xlu1 %3568, %v4234_v10   ;;  %v571_v59 = vsel %vm3848_vm2, %v566_v11, %v570_v16  ;;  %v621_v29 = vor.u32 %v620_v46, %v617_v5  ;;  %v2919_v6 = vrot.slane %v823_v25, 9  ;;  %v862_v41 = vrot.slane %v824_v14, 5  ;;  %v4348_v16 = vld [vmem:[%s4666_s1 + $0x40] sm:$0xff] }
 0x120   : > { %v1884_v63 = vpop.permute.xlu1 %1883  ;;  %v2915_v23 = vcombine.low %v557_v20, %v571_v59 }
 0x121   : > { %v1943_v32 = vmul.f32 %v4305_v33, %v1884_v63  ;;  %v612_v63 = vrot.slane %v610_v15, 5  ;;  %v894_v31 = vpop.permute.xlu0 %893  ;;  %v622_v37 = vrot.slane %v621_v29, 4  ;;  %v863_v46 = vsel %vm4132_vm5, %v2919_v6, %v862_v41 }
 0x122   : > { %v953_v34 = vmul.f32 %v4305_v33, %v894_v31  ;;  %v4410_v31 = vld [vmem:[%s4667_s2 + $0x40] sm:$0xff] }
 0x123   : > { %v1958_v42 = vpack.c.bf16 %v1943_v32, %v1942_v50  ;;  %3569 = vset.pattern.permute.xlu1 %v4698_v27  ;;  %3341 = vmatmul.mubr.bf16.gmra.mrb[4].mxu0 %v2989_v12  ;;  %v2918_v50 = vrot.slane %v821_v17, 9  ;;  %v858_v32 = vrot.slane %v822_v19, 5  ;;  %v4392_v17 = vld [vmem:[%s4667_s2 + $0x38] sm:$0xff] }
 0x124   : > { %2236 = vperm.xlu1 %3569, %v4189_v21   ;;  %3360 = vmatprep.mubr.bf16.mxu0 %v3588_v8  ;;  %v4341_v8 = vld [vmem:[%s4667_s2 + $0x18] sm:$0xff] }
 0x125   : > { %v690_v58 = vpop.permute.xlu1 %689  ;;  %3344 = vmatprep.subr.bf16.mxu0 %v1958_v42  ;;  %v859_v5 = vsel %vm4132_vm5, %v2918_v50, %v858_v32  ;;  %v898_v15 = vpop.permute.xlu0 %897 }
 0x126   : > { %v707_v54 = vmul.f32 %v690_v58, %v3983_v53  ;;  %3345 = vmatpush3.bf16.msra.mxu0 %v1958_v42  ;;  %v585_v53 = vsel %vm3848_vm2, %v580_v7, %v584_v28  ;;  %v627_v42 = vsel %vm3848_vm2, %v622_v37, %v626_v3  ;;  %v2926_v30 = vcombine.low %v859_v5, %v863_v46  ;;  %v4367_v58 = vld [vmem:[%s4667_s2 + $0x20] sm:$0xff]  ;;  %v4416_v37 = vld [vmem:[%s4667_s2 + $0x48] sm:$0xff] }
 0x127   : > { %v2916_v1 = vcombine.low %v585_v53, %v599_v55 }
 0x128   : > { %v715_v35 = vpack.c.bf16 %v707_v54, %v706_v52  ;;  %3570 = vset.pattern.permute.xlu1 %v4699_v51  ;;  %v613_v52 = vsel %vm3848_vm2, %v608_v45, %v612_v63 }
 0x129   : > { %1107 = vperm.xlu1 %3570, %v4273_v36   ;;  %v2917_v28 = vcombine.low %v613_v52, %v627_v42  ;;  %v910_v19 = vpop.permute.xlu0 %909 }
 0x12a   : > { %v1892_v12 = vpop.permute.xlu1 %1891  ;;  %3238 = vmatprep.subr.bf16.mxu1 %v715_v35 }
 0x12b   : > { %v1945_v4 = vmul.f32 %v4341_v8, %v1892_v12  ;;  %3239 = vmatpush3.bf16.msra.mxu1 %v715_v35  ;;  %v4384_v35 = vld [vmem:[%s4667_s2 + $0x30] sm:$0xff] }
 0x12c   : > { %v1948_v53 = vmul.f32 %v4384_v35, %v4278_v49  ;;  %v4399_v49 = vld [vmem:[%s4666_s1 + $0x60] sm:$0xff] }
 0x12d   : > { %v1959_v11 = vpack.c.bf16 %v1945_v4, %v1944_v62  ;;  %3571 = vset.pattern.permute.xlu1 %v4698_v27  ;;  %v914_v3 = vpop.permute.xlu0 %913 }
 0x12e   : > { %2240 = vperm.xlu1 %3571, %v4348_v16   ;;  %3241 = vmatmul.mubr.bf16.vlgmr.msra.gmra.mrb[0].mxu1 %v2915_v23 }
 0x12f   : > { %v890_v9 = vpop.permute.xlu1 %889  ;;  %3346 = vmatprep.subr.bf16.mxu0 %v1959_v11  ;;  %3244 = vmatprep.mubr.bf16.mxu1 %v2916_v1 }
 0x130   : > { %v952_v24 = vmul.f32 %v4299_v47, %v890_v9  ;;  %3347 = vmatpush3.bf16.msra.mxu0 %v1959_v11  ;;  %v4427_v11 = vld [vmem:[%s4667_s2 + $0x50] sm:$0xff]  ;;  %v4435_v9 = vld [vmem:[%s4667_s2 + $0x58] sm:$0xff] }
 0x131   : > { %v926_v42 = vpop.permute.xlu0 %925 }
 0x132   : > { %v968_v7 = vpack.c.bf16 %v953_v34, %v952_v24  ;;  %2244 = vperm.xlu1 %3571, %v4202_v26   ;;  %v4373_v26 = vld [vmem:[%s4667_s2 + $0x28] sm:$0xff] }
 0x133   : > { %v957_v14 = vmul.f32 %v4373_v26, %v910_v19 }
 0x134   : > { %v1896_v43 = vpop.permute.xlu1 %1895  ;;  %3248 = vmatprep.subr.bf16.mxu1 %v968_v7 }
 0x135   : > { %3249 = vmatpush3.bf16.msra.mxu1 %v968_v7  ;;  %v1946_v54 = vmul.f32 %v4367_v58, %v1896_v43 }
 0x136   : > { %3572 = vset.pattern.permute.xlu1 %v4699_v51  ;;  %3245 = vmatmul.mubr.bf16.gmra.mrb[4].mxu1 %v2917_v28 }
 0x137   : > { %1119 = vperm.xlu1 %3572, %v4189_v21   ;;  %3264 = vmatprep.mubr.bf16.mxu1 %v2926_v30  ;;  %v954_v21 = vmul.f32 %v4330_v61, %v898_v15  ;;  %v930_v30 = vpop.permute.xlu0 %929  ;;  %v3002_v15 = vld [vmem:[%s3837_s6 + $0x10] sm:$0xf] }
 0x138   : > { %v1900_v2 = vpop.permute.xlu1 %1899 }
 0x139   : > { %v1947_v44 = vmul.f32 %v4373_v26, %v1900_v2  ;;  %v4448_v2 = vld [vmem:[%s4667_s2 + $0x60] sm:$0xff] }
 0x13b   : > { %v1960_v20 = vpack.c.bf16 %v1947_v44, %v1946_v54  ;;  %3573 = vset.pattern.permute.xlu1 %v4698_v27  ;;  %v942_v43 = vpop.permute.xlu0 %941 }
 0x13c   : > { %2252 = vperm.xlu1 %3573, %v4209_v18  }
 0x13d   : > { %v902_v59 = vpop.permute.xlu1 %901  ;;  %3348 = vmatprep.subr.bf16.mxu0 %v1960_v20 }
 0x13e   : > { %v955_v29 = vmul.f32 %v4341_v8, %v902_v59  ;;  %3349 = vmatpush3.bf16.msra.mxu0 %v1960_v20  ;;  %v2099_v59 = vshll.u32 %v3002_v15, 16 }
 0x140   : > { %v969_v56 = vpack.c.bf16 %v955_v29, %v954_v21  ;;  %3574 = vset.pattern.permute.xlu1 %v4699_v51  ;;  %v2096_v21 = vshrl.u32 %v3002_v15, 16  ;;  %v825_v15 = vld [vmem:[%s3837_s6 + $0x10] sm:$0xe] }
 0x141   : > { %1123 = vperm.xlu1 %3574, %v4348_v16  }
 0x142   : > { %v1908_v55 = vpop.permute.xlu1 %1907  ;;  %3250 = vmatprep.subr.bf16.mxu1 %v969_v56 }
 0x143   : > { %v1949_v62 = vmul.f32 %v4392_v17, %v1908_v55  ;;  %3251 = vmatpush3.bf16.msra.mxu1 %v969_v56 }
 0x145   : > { %v1961_v25 = vpack.c.bf16 %v1949_v62, %v1948_v53  ;;  %3575 = vset.pattern.permute.xlu1 %v4698_v27  ;;  %v4463_v62 = vpop.permute.xlu0 %945 }
 0x146   : > { %2256 = vperm.xlu1 %3575, %v4399_v49  }
 0x147   : > { %v906_v12 = vpop.permute.xlu1 %905  ;;  %3350 = vmatprep.subr.bf16.mxu0 %v1961_v25 }
 0x148   : > { %v956_v23 = vmul.f32 %v4367_v58, %v906_v12  ;;  %3351 = vmatpush3.bf16.msra.mxu0 %v1961_v25  ;;  %v4469_v25 = vld [vmem:[%s4667_s2 + $0x70] sm:$0xff] }
 0x14a   : > { %v970_v45 = vpack.c.bf16 %v957_v14, %v956_v23  ;;  %2260 = vperm.xlu1 %3575, %v4227_v40   ;;  %v1956_v14 = vmul.f32 %v4469_v25, %v4314_v57  ;;  %v3625_v57 = vld [vmem:[%s4666_s1 + $0x30] sm:$0xff] }
 0x14c   : > { %v1912_v63 = vpop.permute.xlu1 %1911  ;;  %3252 = vmatprep.subr.bf16.mxu1 %v970_v45 }
 0x14d   : > { %3253 = vmatpush3.bf16.msra.mxu1 %v970_v45  ;;  %v1950_v1 = vmul.f32 %v4410_v31, %v1912_v63  ;;  %v3003_v63 = vld [vmem:[%s3837_s6 + $0x14] sm:$0x1] }
 0x14e   : > { %3576 = vset.pattern.permute.xlu1 %v4699_v51 }
 0x14f   : > { %1135 = vperm.xlu1 %3576, %v4209_v18   ;;  %v958_v18 = vmul.f32 %v4384_v35, %v914_v3 }
 0x150   : > { %v1916_v4 = vpop.permute.xlu1 %1915 }
 0x151   : > { %v1951_v40 = vmul.f32 %v4416_v37, %v1916_v4  ;;  %v3005_v4 = vld [vmem:[%s3837_s6 + $0x1c] sm:$0x1] }
 0x153   : > { %v1962_v50 = vpack.c.bf16 %v1951_v40, %v1950_v1  ;;  %3578 = vset.pattern.permute.xlu1 %v4698_v27  ;;  %v1952_v27 = vmul.f32 %v4427_v11, %v4293_v60  ;;  %v961_v60 = vmul.f32 %v4416_v37, %v926_v42  ;;  %v4484_v40 = vpop.permute.xlu0 %2216  ;;  %v3590_v42 = vld [vmem:[%s3837_s6 + $0x30] ss:$8 sps:$4 sm:$0xff]  }
 0x154   : > { %2268 = vperm.xlu1 %3578, %v4215_v39  }
 0x155   : > { %v918_v32 = vpop.permute.xlu1 %917  ;;  %3352 = vmatprep.subr.bf16.mxu0 %v1962_v50 }
 0x156   : > { %v959_v6 = vmul.f32 %v4392_v17, %v918_v32  ;;  %3353 = vmatpush3.bf16.msra.mxu0 %v1962_v50 }
 0x158   : > { %v971_v41 = vpack.c.bf16 %v959_v6, %v958_v18  ;;  %3579 = vset.pattern.permute.xlu1 %v4699_v51  ;;  %v2105_v18 = vshll.u32 %v3003_v63, 16  ;;  %v2119_v6 = vshll.u32 %v3005_v4, 16 }
 0x159   : > { %1139 = vperm.xlu1 %3579, %v4399_v49  }
 0x15a   : > { %v1924_v34 = vpop.permute.xlu1 %1923  ;;  %3254 = vmatprep.subr.bf16.mxu1 %v971_v41 }
 0x15b   : > { %v1953_v52 = vmul.f32 %v4435_v9, %v1924_v34  ;;  %3255 = vmatpush3.bf16.msra.mxu1 %v971_v41  ;;  %v3589_v34 = vld [vmem:[%s3837_s6 + $0x20] ss:$8 sps:$4 sm:$0xff]  }
 0x15d   : > { %v1963_v24 = vpack.c.bf16 %v1953_v52, %v1952_v27  ;;  %3580 = vset.pattern.permute.xlu1 %v3660_v48 }
 0x15e   : > { %2465 = vperm.xlu1 %3580, %v4182_v22  }
 0x15f   : > { %v922_v5 = vpop.permute.xlu1 %921  ;;  %3354 = vmatprep.subr.bf16.mxu0 %v1963_v24 }
 0x160   : > { %v960_v46 = vmul.f32 %v4410_v31, %v922_v5  ;;  %3355 = vmatpush3.bf16.msra.mxu0 %v1963_v24 }
 0x162   : > { %v972_v7 = vpack.c.bf16 %v961_v60, %v960_v46  ;;  %2469 = vperm.xlu1 %3580, %v4196_v0   ;;  %v4454_v0 = vld [vmem:[%s4667_s2 + $0x68] sm:$0xff]  ;;  %v2107_v60 = vrot.slane %v2105_v18, 5  ;;  %v2121_v46 = vrot.slane %v2119_v6, 5 }
 0x163   : > { %v965_v41 = vmul.f32 %v4454_v0, %v942_v43 }
 0x164   : > { %v1928_v28 = vpop.permute.xlu1 %1927  ;;  %3256 = vmatprep.subr.bf16.mxu1 %v972_v7 }
 0x165   : > { %3257 = vmatpush3.bf16.msra.mxu1 %v972_v7  ;;  %v1954_v54 = vmul.f32 %v4448_v2, %v1928_v28  ;;  %v4491_v28 = vpop.permute.xlu0 %2232 }
 0x166   : > { %3581 = vset.pattern.permute.xlu1 %v4699_v51  ;;  %v3004_v51 = vld [vmem:[%s3837_s6 + $0x18] sm:$0xf] }
 0x167   : > { %1151 = vperm.xlu1 %3581, %v4215_v39   ;;  %v962_v39 = vmul.f32 %v4427_v11, %v930_v30  ;;  %v2110_v56 = vshrl.u32 %v3004_v51, 16  ;;  %v2113_v53 = vshll.u32 %v3004_v51, 16  ;;  %v826_v51 = vld [vmem:[%s3837_s6 + $0x14] sm:$0x1] }
 0x168   : > { %v1932_v22 = vpop.permute.xlu1 %1931 }
 0x169   : > { %v1955_v44 = vmul.f32 %v4454_v0, %v1932_v22  ;;  %v2112_v12 = vrot.slane %v2110_v56, 4  ;;  %v2115_v23 = vrot.slane %v2113_v53, 5 }
 0x16b   : > { %v1964_v20 = vpack.c.bf16 %v1955_v44, %v1954_v54  ;;  %3583 = vset.pattern.permute.xlu1 %v3660_v48  ;;  %v2098_v48 = vrot.slane %v2096_v21, 4  ;;  %v2116_v32 = vor.u32 %v2115_v23, %v2112_v12  ;;  %v3591_v54 = vld [vmem:[%s3837_s6 + $0x40] ss:$8 sps:$4 sm:$0xff]   ;;  %v4502_v44 = vpop.permute.xlu0 %2248  ;;  %v827_v21 = vld [vmem:[%s3837_s6 + $0x18] sm:$0xe]  ;;  %v3627_v23 = vld [vmem:[%s4666_s1 + $0x70] sm:$0xff] }
 0x16c   : > { %2477 = vperm.xlu1 %3583, %v4234_v10   ;;  %v2101_v10 = vrot.slane %v2099_v59, 5  ;;  %v828_v59 = vld [vmem:[%s3837_s6 + $0x1c] sm:$0x1] }
 0x16d   : > { %v934_v29 = vpop.permute.xlu1 %933  ;;  %3356 = vmatprep.subr.bf16.mxu0 %v1964_v20  ;;  %v2117_v5 = vrot.slane %v2116_v32, 4  ;;  %v870_v63 = vrot.slane %v828_v59, 5 }
 0x16e   : > { %v963_v55 = vmul.f32 %v4435_v9, %v934_v29  ;;  %3357 = vmatpush3.bf16.msra.mxu0 %v1964_v20  ;;  %v2102_v3 = vor.u32 %v2101_v10, %v2098_v48  ;;  %v829_v29 = vld [vmem:[%s3837_s6 + $0x20] sm:$0xe]  ;;  %v832_v48 = vld [vmem:[%s3837_s6 + $0x2c] sm:$0x1]  ;;  %v2920_v10 = vrot.slane %v825_v15, 9 }
 0x16f   : > { %v2122_v43 = vsel %vm3848_vm2, %v2117_v5, %v2121_v46  ;;  %v2922_v4 = vrot.slane %v829_v29, 9  ;;  %v2273_v5 = vmul.f32 %v4330_v61, %v4484_v40 }
 0x170   : > { %v973_v19 = vpack.c.bf16 %v963_v55, %v962_v39  ;;  %2481 = vperm.xlu1 %3583, %v4273_v36   ;;  %v4478_v36 = vld [vmem:[%s4667_s2 + $0x78] sm:$0xff]  ;;  %v2103_v24 = vrot.slane %v2102_v3, 4  ;;  %v830_v55 = vld [vmem:[%s3837_s6 + $0x24] sm:$0x1]  ;;  %v878_v3 = vrot.slane %v832_v48, 5 }
 0x172   : > { %v1940_v45 = vpop.permute.xlu1 %1939  ;;  %3258 = vmatprep.subr.bf16.mxu1 %v973_v19  ;;  %v2108_v22 = vsel %vm3848_vm2, %v2103_v24, %v2107_v60  ;;  %v835_v24 = vld [vmem:[%s3837_s6 + $0x38] sm:$0xe]  ;;  %v836_v60 = vld [vmem:[%s3837_s6 + $0x3c] sm:$0x1] }
 0x173   : > { %v1957_v1 = vmul.f32 %v4478_v36, %v1940_v45  ;;  %3259 = vmatpush3.bf16.msra.mxu1 %v973_v19  ;;  %v3018_v20 = vcombine.low %v2108_v22, %v2122_v43  ;;  %v831_v19 = vld [vmem:[%s3837_s6 + $0x28] sm:$0xe]  ;;  %v2921_v45 = vrot.slane %v827_v21, 9  ;;  %v2925_v15 = vrot.slane %v835_v24, 9 }
 0x174   : > { %2489 = vperm.xlu1 %3583, %v3625_v57   ;;  %v2923_v57 = vrot.slane %v831_v19, 9 }
 0x175   : > { %v1965_v50 = vpack.c.bf16 %v1957_v1, %v1956_v14  ;;  %v866_v14 = vrot.slane %v826_v51, 5  ;;  %v874_v1 = vrot.slane %v830_v55, 5  ;;  %v871_v6 = vsel %vm4132_vm5, %v2921_v45, %v870_v63  ;;  %v3592_v55 = vld [vmem:[%s3837_s6 + $0x8] ss:$8 sps:$4 sm:$0xff]  }
 0x176   : > { %v886_v51 = vrot.slane %v836_v60, 5 }
 0x177   : > { %v938_v27 = vpop.permute.xlu1 %937  ;;  %3358 = vmatprep.subr.bf16.mxu0 %v1965_v50  ;;  %v867_v32 = vsel %vm4132_vm5, %v2920_v10, %v866_v14 }
 0x178   : > { %2497 = vperm.xlu1 %3583, %v4348_v16   ;;  %v964_v52 = vmul.f32 %v4448_v2, %v938_v27  ;;  %3359 = vmatpush3.bf16.msra.mxu0 %v1965_v50  ;;  %v3626_v16 = vld [vmem:[%s4666_s1 + $0x50] sm:$0xff]  ;;  %v887_v59 = vsel %vm4132_vm5, %v2925_v15, %v886_v51  ;;  %v3006_v51 = vld [vmem:[%s3837_s6 + $0x20] sm:$0xf] }
 0x179   : > { %v834_v27 = vld [vmem:[%s3837_s6 + $0x34] sm:$0x1] }
 0x17a   : > { %v974_v7 = vpack.c.bf16 %v965_v41, %v964_v52  ;;  %v833_v41 = vld [vmem:[%s3837_s6 + $0x30] sm:$0xe]  ;;  %v875_v52 = vsel %vm4132_vm5, %v2922_v4, %v874_v1  ;;  %v2277_v1 = vmul.f32 %v4384_v35, %v4491_v28 }
 0x17b   : > { %3361 = vmatmul.mubr.bf16.vlgmr.msra.gmra.mrb[0].mxu0 %v3589_v34 }
 0x17c   : > { %2505 = vperm.xlu1 %3583, %v3626_v16   ;;  %3260 = vmatprep.subr.bf16.mxu1 %v974_v7  ;;  %v2924_v16 = vrot.slane %v833_v41, 9 }
 0x17d   : > { %v2209_v30 = vpop.permute.xlu1 %2208  ;;  %3261 = vmatpush3.bf16.msra.mxu1 %v974_v7  ;;  %3364 = vmatprep.mubr.bf16.mxu0 %v3590_v42  ;;  %v879_v42 = vsel %vm4132_vm5, %v2923_v57, %v878_v3  ;;  %v2927_v7 = vcombine.low %v867_v32, %v871_v6 }
 0x17e   : > { %v2271_v56 = vmul.f32 %v4299_v47, %v2209_v30  ;;  %v882_v30 = vrot.slane %v834_v27, 5 }
 0x180   : > { %2513 = vperm.xlu1 %3583, %v4399_v49   ;;  %v966_v49 = vmul.f32 %v4469_v25, %v4463_v62  ;;  %v4519_v62 = vpop.permute.xlu0 %2264  ;;  %v883_v40 = vsel %vm4132_vm5, %v2924_v16, %v882_v30 }
 0x181   : > { %v2213_v39 = vpop.permute.xlu1 %2212 }
 0x182   : > { %v2272_v53 = vmul.f32 %v4305_v33, %v2213_v39 }
 0x183   : > { %3365 = vmatmul.mubr.bf16.gmra.mrb[4].mxu0 %v3591_v54  ;;  %v2928_v54 = vcombine.low %v875_v52, %v879_v42 }
 0x184   : > { %v2287_v12 = vpack.c.bf16 %v2272_v53, %v2271_v56  ;;  %2521 = vperm.xlu1 %3583, %v3627_v23   ;;  %3384 = vmatprep.mubr.bf16.mxu0 %v3018_v20  ;;  %v1096_v43 = vpop.permute.xlu0 %1095  ;;  %v2929_v53 = vcombine.low %v883_v40, %v887_v59  ;;  %v2124_v59 = vshrl.u32 %v3006_v51, 16 }
 0x185   : > { %v1155_v39 = vmul.f32 %v4305_v33, %v1096_v43 }
 0x186   : > { %v950_v50 = vpop.permute.xlu1 %949  ;;  %3368 = vmatprep.subr.bf16.mxu0 %v2287_v12 }
 0x187   : > { %v967_v18 = vmul.f32 %v4478_v36, %v950_v50  ;;  %3369 = vmatpush3.bf16.msra.mxu0 %v2287_v12 }
 0x189   : > { %v975_v34 = vpack.c.bf16 %v967_v18, %v966_v49  ;;  %v1100_v49 = vpop.permute.xlu0 %1099 }
 0x18a   : > { %v1156_v23 = vmul.f32 %v4330_v61, %v1100_v49  ;;  %v2126_v49 = vrot.slane %v2124_v59, 4 }
 0x18b   : > { %v2221_v46 = vpop.permute.xlu1 %2220  ;;  %3262 = vmatprep.subr.bf16.mxu1 %v975_v34 }
 0x18c   : > { %v2274_v22 = vmul.f32 %v4341_v8, %v2221_v46  ;;  %3263 = vmatpush3.bf16.msra.mxu1 %v975_v34 }
 0x18d   : > { %v1112_v50 = vpop.permute.xlu0 %1111 }
 0x18e   : > { %v2288_v20 = vpack.c.bf16 %v2274_v22, %v2273_v5  ;;  %v1159_v32 = vmul.f32 %v4373_v26, %v1112_v50  ;;  %v2281_v22 = vmul.f32 %v4427_v11, %v4502_v44  ;;  %v3012_v44 = vld [vmem:[%s3837_s6 + $0x38] sm:$0xf]  ;;  %v3013_v50 = vld [vmem:[%s3837_s6 + $0x3c] sm:$0x1] }
 0x18f   : > { %3265 = vmatmul.mubr.bf16.vlgmr.msra.gmra.mrb[0].mxu1 %v2927_v7 }
 0x190   : > { %v1092_v21 = vpop.permute.xlu1 %1091  ;;  %3370 = vmatprep.subr.bf16.mxu0 %v2288_v20  ;;  %3268 = vmatprep.mubr.bf16.mxu1 %v2928_v54 }
 0x191   : > { %v1154_v29 = vmul.f32 %v4299_v47, %v1092_v21  ;;  %3371 = vmatpush3.bf16.msra.mxu0 %v2288_v20  ;;  %v1116_v24 = vpop.permute.xlu0 %1115  ;;  %v3008_v21 = vld [vmem:[%s3837_s6 + $0x28] sm:$0xf] }
 0x192   : > { %v1160_v5 = vmul.f32 %v4384_v35, %v1116_v24 }
 0x193   : > { %v1170_v56 = vpack.c.bf16 %v1155_v39, %v1154_v29  ;;  %v2127_v29 = vshll.u32 %v3006_v51, 16 }
 0x195   : > { %v2225_v19 = vpop.permute.xlu1 %2224  ;;  %3272 = vmatprep.subr.bf16.mxu1 %v1170_v56  ;;  %v1128_v15 = vpop.permute.xlu0 %1127 }
 0x196   : > { %3273 = vmatpush3.bf16.msra.mxu1 %v1170_v56  ;;  %v2275_v10 = vmul.f32 %v4367_v58, %v2225_v19  ;;  %v1163_v20 = vmul.f32 %v4416_v37, %v1128_v15  ;;  %v3010_v56 = vld [vmem:[%s3837_s6 + $0x30] sm:$0xf]  ;;  %v2141_v19 = vshll.u32 %v3008_v21, 16 }
 0x197   : > { %3269 = vmatmul.mubr.bf16.gmra.mrb[4].mxu1 %v2929_v53 }
 0x198   : > { %3288 = vmatprep.mubr.bf16.mxu1 %v3592_v55  ;;  %v2138_v55 = vshrl.u32 %v3008_v21, 16 }
 0x199   : > { %v2229_v48 = vpop.permute.xlu1 %2228  ;;  %v1132_v15 = vpop.permute.xlu0 %1131 }
 0x19a   : > { %v2276_v14 = vmul.f32 %v4373_v26, %v2229_v48  ;;  %v2152_v48 = vshrl.u32 %v3010_v56, 16 }
 0x19c   : > { %v2289_v12 = vpack.c.bf16 %v2276_v14, %v2275_v10  ;;  %v2155_v10 = vshll.u32 %v3010_v56, 16  ;;  %v1164_v56 = vmul.f32 %v4427_v11, %v1132_v15 }
 0x19e   : > { %v1104_v45 = vpop.permute.xlu1 %1103  ;;  %3372 = vmatprep.subr.bf16.mxu0 %v2289_v12 }
 0x19f   : > { %v1157_v63 = vmul.f32 %v4341_v8, %v1104_v45  ;;  %3373 = vmatpush3.bf16.msra.mxu0 %v2289_v12  ;;  %v2129_v12 = vrot.slane %v2127_v29, 5  ;;  %v2169_v45 = vshll.u32 %v3012_v44, 16 }
 0x1a1   : > { %v1171_v4 = vpack.c.bf16 %v1157_v63, %v1156_v23  ;;  %v2166_v23 = vshrl.u32 %v3012_v44, 16  ;;  %v3007_v63 = vld [vmem:[%s3837_s6 + $0x24] sm:$0x1] }
 0x1a2   : > { %v2133_v24 = vshll.u32 %v3007_v63, 16 }
 0x1a3   : > { %v2237_v57 = vpop.permute.xlu1 %2236  ;;  %3274 = vmatprep.subr.bf16.mxu1 %v1171_v4 }
 0x1a4   : > { %v2278_v3 = vmul.f32 %v4392_v17, %v2237_v57  ;;  %3275 = vmatpush3.bf16.msra.mxu1 %v1171_v4  ;;  %v3009_v4 = vld [vmem:[%s3837_s6 + $0x2c] sm:$0x1]  ;;  %v2143_v57 = vrot.slane %v2141_v19, 5  ;;  %v2135_v59 = vrot.slane %v2133_v24, 5  ;;  %v3023_v24 = vld [vmem:[%s3837_s6 + $0x14] sm:$0x1] }
 0x1a6   : > { %v2290_v18 = vpack.c.bf16 %v2278_v3, %v2277_v1  ;;  %v2140_v1 = vrot.slane %v2138_v55, 4  ;;  %v3011_v3 = vld [vmem:[%s3837_s6 + $0x34] sm:$0x1] }
 0x1a8   : > { %v1108_v6 = vpop.permute.xlu1 %1107  ;;  %3374 = vmatprep.subr.bf16.mxu0 %v2290_v18 }
 0x1a9   : > { %v1158_v41 = vmul.f32 %v4367_v58, %v1108_v6  ;;  %3375 = vmatpush3.bf16.msra.mxu0 %v2290_v18  ;;  %v2154_v18 = vrot.slane %v2152_v48, 4 }
 0x1ab   : > { %v1172_v27 = vpack.c.bf16 %v1159_v32, %v1158_v41  ;;  %v2157_v32 = vrot.slane %v2155_v10, 5  ;;  %v2130_v41 = vor.u32 %v2129_v12, %v2126_v49 }
 0x1ad   : > { %v2241_v34 = vpop.permute.xlu1 %2240  ;;  %3276 = vmatprep.subr.bf16.mxu1 %v1172_v27 }
 0x1ae   : > { %3277 = vmatpush3.bf16.msra.mxu1 %v1172_v27  ;;  %v2279_v28 = vmul.f32 %v4410_v31, %v2241_v34  ;;  %v2168_v27 = vrot.slane %v2166_v23, 4  ;;  %v2171_v34 = vrot.slane %v2169_v45, 5  ;;  %v3015_v23 = vld [vmem:[%s3837_s6 + $0x44] sm:$0x1] }
 0x1b0   : > { %v2172_v51 = vor.u32 %v2171_v34, %v2168_v27 }
 0x1b1   : > { %v2245_v52 = vpop.permute.xlu1 %2244 }
 0x1b2   : > { %v2280_v42 = vmul.f32 %v4416_v37, %v2245_v52  ;;  %v3014_v52 = vld [vmem:[%s3837_s6 + $0x40] sm:$0xf]  ;;  %v2173_v12 = vrot.slane %v2172_v51, 4 }
 0x1b4   : > { %v2291_v60 = vpack.c.bf16 %v2280_v42, %v2279_v28 }
 0x1b6   : > { %v1120_v46 = vpop.permute.xlu1 %1119  ;;  %3376 = vmatprep.subr.bf16.mxu0 %v2291_v60 }
 0x1b7   : > { %v1161_v7 = vmul.f32 %v4392_v17, %v1120_v46  ;;  %3377 = vmatpush3.bf16.msra.mxu0 %v2291_v60  ;;  %v2147_v60 = vshll.u32 %v3009_v4, 16  ;;  %v2144_v46 = vor.u32 %v2143_v57, %v2140_v1  ;;  %v3017_v4 = vld [vmem:[%s3837_s6 + $0x4c] sm:$0x1]  ;;  %v2285_v1 = vmul.f32 %v4469_v25, %v4519_v62  ;;  %v1144_v57 = vpop.permute.xlu0 %1143 }
 0x1b9   : > { %v1173_v16 = vpack.c.bf16 %v1161_v7, %v1160_v5  ;;  %v3016_v5 = vld [vmem:[%s3837_s6 + $0x48] sm:$0xf]  ;;  %v2161_v7 = vshll.u32 %v3011_v3, 16  ;;  %v2149_v29 = vrot.slane %v2147_v60, 5  ;;  %v3024_v60 = vld [vmem:[%s3837_s6 + $0x18] sm:$0xe] }
 0x1bb   : > { %v2253_v30 = vpop.permute.xlu1 %2252  ;;  %3278 = vmatprep.subr.bf16.mxu1 %v1173_v16  ;;  %v2163_v55 = vrot.slane %v2161_v7, 5 }
 0x1bc   : > { %v2282_v43 = vmul.f32 %v4435_v9, %v2253_v30  ;;  %3279 = vmatpush3.bf16.msra.mxu1 %v1173_v16  ;;  %v2175_v16 = vshll.u32 %v3013_v50, 16 }
 0x1be   : > { %v2292_v54 = vpack.c.bf16 %v2282_v43, %v2281_v22  ;;  %v2158_v22 = vor.u32 %v2157_v32, %v2154_v18  ;;  %v2180_v43 = vshrl.u32 %v3014_v52, 16  ;;  %v2177_v48 = vrot.slane %v2175_v16, 5 }
 0x1c0   : > { %v1124_v39 = vpop.permute.xlu1 %1123  ;;  %3378 = vmatprep.subr.bf16.mxu0 %v2292_v54  ;;  %v2159_v19 = vrot.slane %v2158_v22, 4  ;;  %v2182_v10 = vrot.slane %v2180_v43, 4  ;;  %v2178_v27 = vsel %vm3848_vm2, %v2173_v12, %v2177_v48  ;;  %v1167_v43 = vmul.f32 %v4454_v0, %v1144_v57 }
 0x1c1   : > { %v1162_v40 = vmul.f32 %v4410_v31, %v1124_v39  ;;  %3379 = vmatpush3.bf16.msra.mxu0 %v2292_v54  ;;  %v2183_v54 = vshll.u32 %v3014_v52, 16  ;;  %v2197_v39 = vshll.u32 %v3016_v5, 16  ;;  %v2203_v52 = vshll.u32 %v3017_v4, 16 }
 0x1c2   : > { %v2164_v62 = vsel %vm3848_vm2, %v2159_v19, %v2163_v55 }
 0x1c3   : > { %v1174_v53 = vpack.c.bf16 %v1163_v20, %v1162_v40  ;;  %v2194_v20 = vshrl.u32 %v3016_v5, 16  ;;  %v2131_v40 = vrot.slane %v2130_v41, 4  ;;  %v2199_v63 = vrot.slane %v2197_v39, 5  ;;  %v3025_v5 = vld [vmem:[%s3837_s6 + $0x1c] sm:$0x1] }
 0x1c4   : > { %v2189_v41 = vshll.u32 %v3015_v23, 16  ;;  %v3020_v16 = vcombine.low %v2164_v62, %v2178_v27  ;;  %v3033_v62 = vld [vmem:[%s3837_s6 + $0x3c] sm:$0x1] }
 0x1c5   : > { %v2257_v14 = vpop.permute.xlu1 %2256  ;;  %3280 = vmatprep.subr.bf16.mxu1 %v1174_v53  ;;  %v2196_v45 = vrot.slane %v2194_v20, 4  ;;  %v2136_v50 = vsel %vm3848_vm2, %v2131_v40, %v2135_v59  ;;  %v2205_v20 = vrot.slane %v2203_v52, 5  ;;  %v3039_v40 = vrot.slane %v3024_v60, 9 }
 0x1c6   : > { %3281 = vmatpush3.bf16.msra.mxu1 %v1174_v53  ;;  %v2283_v28 = vmul.f32 %v4448_v2, %v2257_v14  ;;  %v2145_v53 = vrot.slane %v2144_v46, 4  ;;  %v2185_v14 = vrot.slane %v2183_v54, 5  ;;  %v2191_v22 = vrot.slane %v2189_v41, 5  ;;  %v1148_v54 = vpop.permute.xlu0 %1147  ;;  %v3032_v41 = vld [vmem:[%s3837_s6 + $0x38] sm:$0xe] }
 0x1c7   : > { %v2200_v34 = vor.u32 %v2199_v63, %v2196_v45  ;;  %v2438_v59 = vrot.slane %v3025_v5, 5  ;;  %v1168_v4 = vmul.f32 %v4469_v25, %v1148_v54  ;;  %v2454_v60 = vrot.slane %v3033_v62, 5 }
 0x1c8   : > { %v2150_v32 = vsel %vm3848_vm2, %v2145_v53, %v2149_v29 }
 0x1c9   : > { %v2261_v6 = vpop.permute.xlu1 %2260  ;;  %v3019_v7 = vcombine.low %v2136_v50, %v2150_v32  ;;  %v2201_v51 = vrot.slane %v2200_v34, 4  ;;  %v2439_v48 = vsel %vm4132_vm5, %v3039_v40, %v2438_v59  ;;  %v3593_v50 = vld [vmem:[%s3837_s6 + $0x18] ss:$8 sps:$4 sm:$0xff]   ;;  %v3594_v34 = vld [vmem:[%s3837_s6 + $0x28] ss:$8 sps:$4 sm:$0xff]  }
 0x1ca   : > { %v2284_v42 = vmul.f32 %v4454_v0, %v2261_v6  ;;  %v2186_v6 = vor.u32 %v2185_v14, %v2182_v10 }
 0x1cb   : > { %v2206_v55 = vsel %vm3848_vm2, %v2201_v51, %v2205_v20 }
 0x1cc   : > { %v2293_v30 = vpack.c.bf16 %v2284_v42, %v2283_v28  ;;  %v3022_v42 = vld [vmem:[%s3837_s6 + $0x10] sm:$0xe] }
 0x1cd   : > { %v3038_v39 = vrot.slane %v3022_v42, 9 }
 0x1ce   : > { %v1136_v21 = vpop.permute.xlu1 %1135  ;;  %3380 = vmatprep.subr.bf16.mxu0 %v2293_v30 }
 0x1cf   : > { %v1165_v44 = vmul.f32 %v4435_v9, %v1136_v21  ;;  %3381 = vmatpush3.bf16.msra.mxu0 %v2293_v30  ;;  %v2187_v30 = vrot.slane %v2186_v6, 4  ;;  %v2434_v21 = vrot.slane %v3023_v24, 5  ;;  %v3031_v6 = vld [vmem:[%s3837_s6 + $0x34] sm:$0x1] }
 0x1d0   : > { %v2450_v24 = vrot.slane %v3031_v6, 5 }
 0x1d1   : > { %v1175_v49 = vpack.c.bf16 %v1165_v44, %v1164_v56  ;;  %v2474_v56 = vpop.permute.xlu0 %2473  ;;  %v2192_v53 = vsel %vm3848_vm2, %v2187_v30, %v2191_v22  ;;  %v2435_v19 = vsel %vm4132_vm5, %v3038_v39, %v2434_v21 }
 0x1d2   : > { %v3021_v10 = vcombine.low %v2192_v53, %v2206_v55 }
 0x1d3   : > { %v2269_v3 = vpop.permute.xlu1 %2268  ;;  %3282 = vmatprep.subr.bf16.mxu1 %v1175_v49 }
 0x1d4   : > { %v2286_v18 = vmul.f32 %v4478_v36, %v2269_v3  ;;  %3283 = vmatpush3.bf16.msra.mxu1 %v1175_v49  ;;  %v3046_v49 = vcombine.low %v2435_v19, %v2439_v48  ;;  %v3034_v48 = vld [vmem:[%s3837_s6 + $0x40] sm:$0xe] }
 0x1d5   : > { %v2486_v45 = vpop.permute.xlu0 %2485 }
 0x1d6   : > { %v2294_v28 = vpack.c.bf16 %v2286_v18, %v2285_v1  ;;  %v3030_v18 = vld [vmem:[%s3837_s6 + $0x30] sm:$0xe]  ;;  %v2533_v5 = vmul.f32 %v4373_v26, %v2486_v45  ;;  %v3037_v45 = vld [vmem:[%s3837_s6 + $0x4c] sm:$0x1] }
 0x1d7   : > { %v3042_v42 = vrot.slane %v3030_v18, 9 }
 0x1d8   : > { %v1140_v46 = vpop.permute.xlu1 %1139  ;;  %3382 = vmatprep.subr.bf16.mxu0 %v2294_v28 }
 0x1d9   : > { %v1166_v15 = vmul.f32 %v4448_v2, %v1140_v46  ;;  %3383 = vmatpush3.bf16.msra.mxu0 %v2294_v28  ;;  %v2451_v30 = vsel %vm4132_vm5, %v3042_v42, %v2450_v24 }
 0x1db   : > { %v1176_v29 = vpack.c.bf16 %v1167_v43, %v1166_v15 }
 0x1dc   : > { %3385 = vmatmul.mubr.bf16.vlgmr.msra.gmra.mrb[0].mxu0 %v3019_v7 }
 0x1dd   : > { %v2466_v44 = vpop.permute.xlu1 %2465  ;;  %3284 = vmatprep.subr.bf16.mxu1 %v1176_v29  ;;  %3388 = vmatprep.mubr.bf16.mxu0 %v3020_v16  ;;  %v3595_v16 = vld [vmem:[%s3837_s6 + $0x38] ss:$8 sps:$4 sm:$0xff]  }
 0x1de   : > { %3285 = vmatpush3.bf16.msra.mxu1 %v1176_v29  ;;  %v2528_v12 = vmul.f32 %v4299_v47, %v2466_v44  ;;  %v2494_v47 = vpop.permute.xlu0 %2493  ;;  %v3029_v44 = vld [vmem:[%s3837_s6 + $0x2c] sm:$0x1] }
 0x1df   : > { %v2535_v43 = vmul.f32 %v4392_v17, %v2494_v47 }
 0x1e1   : > { %v2470_v14 = vpop.permute.xlu1 %2469 }
 0x1e2   : > { %v2529_v23 = vmul.f32 %v4305_v33, %v2470_v14  ;;  %v2530_v33 = vmul.f32 %v4330_v61, %v2474_v56  ;;  %v2502_v52 = vpop.permute.xlu0 %2501  ;;  %v3043_v61 = vrot.slane %v3032_v41, 9  ;;  %v3028_v56 = vld [vmem:[%s3837_s6 + $0x28] sm:$0xe] }
 0x1e3   : > { %v2537_v20 = vmul.f32 %v4416_v37, %v2502_v52  ;;  %v3027_v37 = vld [vmem:[%s3837_s6 + $0x24] sm:$0x1] }
 0x1e4   : > { %v2544_v63 = vpack.c.bf16 %v2529_v23, %v2528_v12  ;;  %3389 = vmatmul.mubr.bf16.gmra.mrb[4].mxu0 %v3021_v10  ;;  %v2455_v22 = vsel %vm4132_vm5, %v3043_v61, %v2454_v60  ;;  %v2442_v19 = vrot.slane %v3027_v37, 5  ;;  %v3035_v10 = vld [vmem:[%s3837_s6 + $0x44] sm:$0x1]  ;;  %v2446_v12 = vrot.slane %v3029_v44, 5  ;;  %v3036_v23 = vld [vmem:[%s3837_s6 + $0x48] sm:$0xe] }
 0x1e5   : > { %3408 = vmatprep.mubr.bf16.mxu0 %v3046_v49  ;;  %v3048_v15 = vcombine.low %v2451_v30, %v2455_v22  ;;  %v3041_v49 = vrot.slane %v3028_v56, 9  ;;  %v3045_v47 = vrot.slane %v3036_v23, 9 }
 0x1e6   : > { %v1152_v38 = vpop.permute.xlu1 %1151  ;;  %3392 = vmatprep.subr.bf16.mxu0 %v2544_v63 }
 0x1e7   : > { %v1169_v1 = vmul.f32 %v4478_v36, %v1152_v38  ;;  %3393 = vmatpush3.bf16.msra.mxu0 %v2544_v63 }
 0x1e9   : > { %v1177_v57 = vpack.c.bf16 %v1169_v1, %v1168_v4  ;;  %v3044_v4 = vrot.slane %v3034_v48, 9  ;;  %v2458_v1 = vrot.slane %v3035_v10, 5 }
 0x1eb   : > { %v2478_v3 = vpop.permute.xlu1 %2477  ;;  %3286 = vmatprep.subr.bf16.mxu1 %v1177_v57 }
 0x1ec   : > { %v2531_v32 = vmul.f32 %v4341_v8, %v2478_v3  ;;  %3287 = vmatpush3.bf16.msra.mxu1 %v1177_v57  ;;  %v2462_v57 = vrot.slane %v3037_v45, 5  ;;  %v2447_v3 = vsel %vm4132_vm5, %v3041_v49, %v2446_v12 }
 0x1ed   : > { %3416 = vmatprep.subr.bf16.mxu1 %v2544_v63 }
 0x1ee   : > { %v2545_v27 = vpack.c.bf16 %v2531_v32, %v2530_v33 }
 0x1ef   : > { %v2482_v28 = vpop.permute.xlu1 %2481  ;;  %3289 = vmatmul.mubr.bf16.vlgmr.msra.gmra.mrb[0].mxu1 %v3593_v50 }
 0x1f0   : > { %v2532_v46 = vmul.f32 %v4367_v58, %v2482_v28  ;;  %3424 = vmatpush3.bf16.msra.mxu1 %v2544_v63  ;;  %3394 = vmatprep.subr.bf16.mxu0 %v2545_v27  ;;  %v2510_v58 = vpop.permute.xlu0 %2509 }
 0x1f1   : > { %3417 = vmatprep.subr.bf16.mxu1 %v2545_v27  ;;  %3395 = vmatpush3.bf16.msra.mxu0 %v2545_v27  ;;  %v2539_v40 = vmul.f32 %v4435_v9, %v2510_v58 }
 0x1f2   : > { %v2546_v8 = vpack.c.bf16 %v2533_v5, %v2532_v46  ;;  %3292 = vmatprep.mubr.bf16.mxu1 %v3594_v34 }
 0x1f3   : > { %v2490_v7 = vpop.permute.xlu1 %2489 }
 0x1f4   : > { %v2534_v26 = vmul.f32 %v4384_v35, %v2490_v7  ;;  %3425 = vmatpush3.bf16.msra.mxu1 %v2545_v27  ;;  %3396 = vmatprep.subr.bf16.mxu0 %v2546_v8  ;;  %v2518_v17 = vpop.permute.xlu0 %2517 }
 0x1f5   : > { %3418 = vmatprep.subr.bf16.mxu1 %v2546_v8  ;;  %3397 = vmatpush3.bf16.msra.mxu0 %v2546_v8  ;;  %v2541_v55 = vmul.f32 %v4454_v0, %v2518_v17 }
 0x1f6   : > { %v2547_v54 = vpack.c.bf16 %v2535_v43, %v2534_v26 }
 0x1f7   : > { %v2498_v51 = vpop.permute.xlu1 %2497  ;;  %3293 = vmatmul.mubr.bf16.gmra.mrb[4].mxu1 %v3595_v16 }
 0x1f8   : > { %v2536_v39 = vmul.f32 %v4410_v31, %v2498_v51  ;;  %3426 = vmatpush3.bf16.msra.mxu1 %v2546_v8  ;;  %3398 = vmatprep.subr.bf16.mxu0 %v2547_v54  ;;  %v3026_v31 = vld [vmem:[%s3837_s6 + $0x20] sm:$0xe]  ;;  %v2526_v14 = vpop.permute.xlu0 %2525  ;;  %s3060_s6 = sshll.u32 %s4705_s15, 5 }
 0x1f9   : > { %3419 = vmatprep.subr.bf16.mxu1 %v2547_v54  ;;  %3399 = vmatpush3.bf16.msra.mxu0 %v2547_v54  ;;  %v2543_v0 = vmul.f32 %v4478_v36, %v2526_v14  ;;  %v2459_v36 = vsel %vm4132_vm5, %v3044_v4, %v2458_v1  ;;  %s246_s25 = scalar_lea.vmem %s4668_s3, %s3060_s6 }
 0x1fa   : > { %v2548_v35 = vpack.c.bf16 %v2537_v20, %v2536_v39  ;;  %3412 = vmatprep.mubr.bf16.mxu1 %v3048_v15 }
 0x1fb   : > { %v2506_v21 = vpop.permute.xlu1 %2505 }
 0x1fc   : > { %v2538_v59 = vmul.f32 %v4427_v11, %v2506_v21  ;;  %3427 = vmatpush3.bf16.msra.mxu1 %v2547_v54  ;;  %3400 = vmatprep.subr.bf16.mxu0 %v2548_v35  ;;  %v3040_v11 = vrot.slane %v3026_v31, 9 }
 0x1fd   : > { %3420 = vmatprep.subr.bf16.mxu1 %v2548_v35  ;;  %3401 = vmatpush3.bf16.msra.mxu0 %v2548_v35 }
 0x1fe   : > { %v2549_v29 = vpack.c.bf16 %v2539_v40, %v2538_v59  ;;  %v2443_v33 = vsel %vm4132_vm5, %v3040_v11, %v2442_v19 }
 0x1ff   : > { %v2514_v53 = vpop.permute.xlu1 %2513  ;;  %v3047_v18 = vcombine.low %v2443_v33, %v2447_v3 }
 0x200   : > { %v2540_v9 = vmul.f32 %v4448_v2, %v2514_v53  ;;  %3428 = vmatpush3.bf16.msra.mxu1 %v2548_v35  ;;  %3402 = vmatprep.subr.bf16.mxu0 %v2549_v29 }
 0x201   : > { %3421 = vmatprep.subr.bf16.mxu1 %v2549_v29  ;;  %3403 = vmatpush3.bf16.msra.mxu0 %v2549_v29 }
 0x202   : > { %v2550_v63 = vpack.c.bf16 %v2541_v55, %v2540_v9 }
 0x203   : > { %v2522_v38 = vpop.permute.xlu1 %2521 }
 0x204   : > { %v2542_v2 = vmul.f32 %v4469_v25, %v2522_v38  ;;  %3429 = vmatpush3.bf16.msra.mxu1 %v2549_v29  ;;  %3404 = vmatprep.subr.bf16.mxu0 %v2550_v63  ;;  %v2463_v25 = vsel %vm4132_vm5, %v3045_v47, %v2462_v57 }
 0x205   : > { %3422 = vmatprep.subr.bf16.mxu1 %v2550_v63  ;;  %3405 = vmatpush3.bf16.msra.mxu0 %v2550_v63  ;;  %v3049_v32 = vcombine.low %v2459_v36, %v2463_v25 }
 0x206   : > { %v2551_v50 = vpack.c.bf16 %v2543_v0, %v2542_v2 }
 0x208   : > { %3430 = vmatpush3.bf16.msra.mxu1 %v2550_v63  ;;  %3406 = vmatprep.subr.bf16.mxu0 %v2551_v50 }
 0x209   : > { %3423 = vmatprep.subr.bf16.mxu1 %v2551_v50  ;;  %3407 = vmatpush3.bf16.msra.mxu0 %v2551_v50 }
 0x20c   : > { %3431 = vmatpush3.bf16.msra.mxu1 %v2551_v50  ;;  %3409 = vmatmul.mubr.bf16.vlgmr.msra.gmra.mrb[0].mxu0 %v3047_v18 }
 0x20f   : > { %3413 = vmatmul.mubr.bf16.vlgmr.msra.gmra.mrb[8].mxu1 %v3049_v32  ;;  %v3661_v32 = vmov 1966171168  }
 0x2b7   : > { %v3390_v6 = vpop.f32.mrb[4].mxu0 }
 0x2b8   : > { %v2361_v41 = vpop.f32.mrb[5].mxu0 }
 0x2b9   : > { %v3391_v62 = vpop.f32.mrb[6].mxu0 }
 0x2ba   : > { %v2364_v27 = vpop.f32.mrb[7].mxu0 }
 0x2c2   : > { %v3290_v34 = vpop.f32.mrb[0].mxu1 }
 0x2c3   : > { %v1236_v52 = vpop.f32.mrb[1].mxu1 }
 0x2c4   : > { %v3291_v28 = vpop.f32.mrb[2].mxu1 }
 0x2c5   : > { %v1239_v42 = vpop.f32.mrb[3].mxu1 }
 0x2ca   : > { %v3294_v24 = vpop.f32.mrb[4].mxu1 }
 0x2cb   : > { %v3436_v61 = vadd.f32 %v3390_v6, %v3294_v24  ;;  %v1252_v60 = vpop.f32.mrb[5].mxu1  ;;  %v2743_v6 = vunpack.c.l.s4 %v3661_v32 }
 0x2cc   : > { %v3438_v13 = vadd.f32 %v2361_v41, %v1252_v60  ;;  %v3295_v5 = vpop.f32.mrb[6].mxu1  ;;  %v2745_v41 = vlaneseq }
 0x2cd   : > { %v3440_v46 = vadd.f32 %v3391_v62, %v3295_v5  ;;  %v1255_v8 = vpop.f32.mrb[7].mxu1 }
 0x2ce   : > { %v3442_v7 = vadd.f32 %v2364_v27, %v1255_v8  ;;  %vm2759_vm6 = vcmp.lt.s32.totalorder %v2745_v41, 256 }
 0x2df   : > { %v3410_v16 = vpop.f32.mrb[0].mxu0 }
 0x2e0   : > { %v3432_v30 = vadd.f32 %v3410_v16, %v3290_v34  ;;  %v2602_v22 = vpop.f32.mrb[1].mxu0 }
 0x2e1   : > { %v3433_v43 = vadd.f32 %v2602_v22, %v1236_v52  ;;  %v3411_v26 = vpop.f32.mrb[2].mxu0 }
 0x2e2   : > { %v3434_v58 = vadd.f32 %v3411_v26, %v3291_v28  ;;  %v2605_v54 = vpop.f32.mrb[3].mxu0  ;;  %v3414_v15 = vpop.f32.mrb[8].mxu1  ;;  %v2720_v53 = vmul.f32 %v3432_v30, %v3432_v30  ;;  %v2744_v28 = vunpack.c.0.s8 %v2743_v6 }
 0x2e3   : > { %v3435_v51 = vadd.f32 %v2605_v54, %v1239_v42  ;;  %v3437_v20 = vadd.f32 %v3436_v61, %v3414_v15  ;;  %v2618_v39 = vpop.f32.mrb[9].mxu1  ;;  %v2718_v40 = vmul.f32 %v3433_v43, %v3433_v43  ;;  %v2746_v42 = vshrl.u32 %v2745_v41, 7 }
 0x2e4   : > { %v3077_v35 = vpack.c.bf16 %v3434_v58, %v3432_v30  ;;  %v3439_v17 = vadd.f32 %v3438_v13, %v2618_v39  ;;  %v3415_v21 = vpop.f32.mrb[10].mxu1  ;;  %v2721_v48 = vmul.f32 %v3434_v58, %v3434_v58 }
 0x2e5   : > { %v3072_v59 = vpack.c.bf16 %v3435_v51, %v3433_v43  ;;  %v2705_v31 = vadd.f32 %v3435_v51, %v3433_v43  ;;  %v2719_v37 = vmul.f32 %v3435_v51, %v3435_v51  ;;  %v2621_v29 = vpop.f32.mrb[11].mxu1  ;;  %v3441_v56 = vadd.f32 %v3440_v46, %v3415_v21 }
 0x2e6   : > { %3089 = vst [vmem:[%s246_s25 + $0x8] sm:$0xff] %v3077_v35   ;;  %v3443_v44 = vadd.f32 %v3442_v7, %v2621_v29  ;;  %v2722_v12 = vmul.f32 %v3439_v17, %v3439_v17  ;;  %v2724_v4 = vmul.f32 %v3437_v20, %v3437_v20  ;;  %v2747_v13 = vsub.s32 %v2744_v28, %v2746_v42 }
 0x2e7   : > { %3073 = vst [vmem:[%s246_s25] sm:$0xff] %v3072_v59   ;;  %v2706_v55 = vadd.f32 %v3432_v30, %v2705_v31  ;;  %v2726_v9 = vadd.f32 %v2719_v37, %v2718_v40  ;;  %v3087_v11 = vpack.c.bf16 %v3441_v56, %v3437_v20  ;;  %v2725_v2 = vmul.f32 %v3441_v56, %v3441_v56 }
 0x2e8   : > { %v3082_v19 = vpack.c.bf16 %v3443_v44, %v3439_v17  ;;  %v2723_v38 = vmul.f32 %v3443_v44, %v3443_v44 }
 0x2e9   : > { %v2727_v10 = vadd.f32 %v2726_v9, %v2720_v53  ;;  %v2707_v14 = vadd.f32 %v3434_v58, %v2706_v55  ;;  %3091 = vst [vmem:[%s246_s25 + $0x18] sm:$0xff] %v3087_v11  }
 0x2ea   : > { %3090 = vst [vmem:[%s246_s25 + $0x10] sm:$0xff] %v3082_v19  }
 0x2eb   : > { %v2708_v49 = vadd.f32 %v3439_v17, %v2707_v14  ;;  %v2728_v23 = vadd.f32 %v2727_v10, %v2721_v48 }
 0x2ed   : > { %v2729_v45 = vadd.f32 %v2728_v23, %v2722_v12  ;;  %v2709_v63 = vadd.f32 %v3443_v44, %v2708_v49 }
 0x2ef   : > { %v2710_v1 = vadd.f32 %v3437_v20, %v2709_v63  ;;  %v2730_v0 = vadd.f32 %v2729_v45, %v2723_v38 }
 0x2f1   : > { %v2711_v47 = vadd.f32 %v3441_v56, %v2710_v1  ;;  %v2731_v57 = vadd.f32 %v2730_v0, %v2724_v4 }
 0x2f3   : > { %v2712_v33 = vrot.slane %v2711_v47, 4  ;;  %v2732_v3 = vadd.f32 %v2731_v57, %v2725_v2 }
 0x2f5   : > { %v2713_v50 = vadd.f32 %v2712_v33, %v2711_v47  ;;  %v2733_v18 = vrot.slane %v2732_v3, 4 }
 0x2f7   : > { %v2714_v36 = vrot.slane %v2713_v50, 2  ;;  %v2734_v25 = vadd.f32 %v2733_v18, %v2732_v3 }
 0x2f9   : > { %v2715_v62 = vadd.f32 %v2714_v36, %v2713_v50  ;;  %v2735_v27 = vrot.slane %v2734_v25, 2 }
 0x2fb   : > { %v2716_v34 = vrot.slane %v2715_v62, 1  ;;  %v2736_v52 = vadd.f32 %v2735_v27, %v2734_v25 }
 0x2fd   : > { %v2737_v24 = vrot.slane %v2736_v52, 1  ;;  %v2717_v61 = vadd.f32 %v2716_v34, %v2715_v62 }
 0x2ff   : > { %v2738_v60 = vadd.f32 %v2737_v24, %v2736_v52 }
 0x301   : > { %v2741_v5 = vcombine.low %v2717_v61, %v2738_v60 }
 0x303   : > { %v2748_v46 = vrot.slane %v2741_v5, %v2747_v13 }
 0x305   : > { %v2755_v8 = vrot.slane %v2748_v46, %v2747_v13 }
 0x307   : > { %2761 = vst.msk [vmem:[%s254_s29] sm:$0x3] %vm2759_vm6, %v2755_v8 }
 0x308 PF: > { %s15_s17 = sadd.s32 1, %s3650_s17   ;;  %s4700_s15 = smov %s3646_s16 }
 0x309   : > { %p12_p5 = scmp.ge.s32.totalorder %s15_s17, 4   ;;  %s4701_s16 = smov %s4703_s18 }
 0x30b   :  { %14 = sbr.rel (!%p12_p5) target bundleno = 2 (0x2), region = 76 }

</bundles_post_ra>
